<compile_context>
chip_gen: v6e
topology: v6e:2x2x1
jax: 0.10.0
libtpu: 0.0.40
codegen_flags: <defaults>
</compile_context>

<pallas_src>
import functools

import jax
import jax.numpy as jnp
from jax import lax
from jax.experimental import pallas as pl
from jax.experimental.pallas import tpu as pltpu

_INV_SQRT2 = 0.7071067811865476  # 1/sqrt(2)


def _gelu_exact(x):
    # PyTorch nn.GELU() default (erf-based), evaluated in x's dtype.
    return (0.5 * x * (1.0 + lax.erf(x * _INV_SQRT2))).astype(x.dtype)


def _gelu_tanh(x):
    # Opt-in tanh approximation: single EUP push instead of the erf chain.
    return jax.nn.gelu(x, approximate=True).astype(x.dtype)


def _make_mlp_kernel(n_sub, sub_rows, gelu_fn):
    def kernel(x_ref, w1_ref, b1_ref, w2_ref, b2_ref, w3_ref, b3_ref, o_ref):
        cdt = w1_ref.dtype                      # compute dtype = weight dtype
        w1 = w1_ref[...]
        w2 = w2_ref[...]
        w3 = w3_ref[...]
        b1 = b1_ref[...]
        b2 = b2_ref[...]
        b3 = b3_ref[...]
        # Statically unrolled sub-tiles: chunks are independent, so the LLO
        # scheduler can run chunk j's GELU (VALU/EUP) under chunk j+1's
        # matmuls (MXU).
        for j in range(n_sub):
            rows = pl.ds(j * sub_rows, sub_rows)
            xj = x_ref[rows, :].astype(cdt)     # cast inside the kernel (no wrapper pass)
            h = jnp.dot(xj, w1, preferred_element_type=jnp.float32) + b1
            h = gelu_fn(h.astype(cdt))          # GELU in compute dtype (bf16 on v6e/v7x)
            h = jnp.dot(h, w2, preferred_element_type=jnp.float32) + b2
            h = gelu_fn(h.astype(cdt))
            h = jnp.dot(h, w3, preferred_element_type=jnp.float32) + b3
            o_ref[rows, :] = h.astype(o_ref.dtype)

    return kernel


def _resident_spec(shape, single_buffer):
    """Constant-index-map BlockSpec (fetched once, stays VMEM-resident)."""
    index_map = lambda *_: (0,) * len(shape)
    if single_buffer:
        # Single-buffer the never-changing block -> halves its VMEM footprint.
        try:
            return pl.BlockSpec(shape, index_map, pipeline_mode=pl.Buffered(1))
        except (TypeError, ValueError):
            pass  # older API without pipeline_mode -> fall back to default buffering
    return pl.BlockSpec(shape, index_map)


def _pick_vmem_limit(needed_bytes):
    """Compute a VMEM limit from actual buffer sizes, capped below physical."""
    try:
        physical = pltpu.get_tpu_info().vmem_capacity_bytes
    except Exception:
        physical = 64 * 1024 * 1024  # conservative: v7x per-TC VMEM
    cap = (physical * 7) // 8        # leave headroom for compiler scratch / semaphores
    return int(min(max(2 * needed_bytes, 32 * 1024 * 1024), cap))


@functools.partial(
    jax.jit,
    static_argnames=("block_b", "n_sub", "out_dtype", "approximate", "single_buffer_weights"),
)
def mlp_pallas(x, w1, b1, w2, b2, w3, b3, *, block_b=256, n_sub=2,
               out_dtype=jnp.float32, approximate=False,
               single_buffer_weights=False):
    """y = gelu(gelu(x@W1+b1)@W2+b2)@W3+b3, fused in one Pallas kernel.

    Weights must be pre-transposed to (in, out) and already stored in the
    desired compute dtype (bf16 recommended on v6e/v7x; cast once at init).
    """
    B, d_in = x.shape
    d_hidden = w1.shape[1]
    d_out = w3.shape[1]

    # --- batch tiling ------------------------------------------------------
    block_b = min(block_b, B)
    grid = (pl.cdiv(B, block_b),)
    # Sub-tiling must keep (8, 128)-aligned row chunks.
    n_sub = max(1, n_sub)
    while n_sub > 1 and (block_b % n_sub != 0 or (block_b // n_sub) % 8 != 0):
        n_sub -= 1
    sub_rows = block_b // n_sub

    gelu_fn = _gelu_tanh if approximate else _gelu_exact
    kernel = _make_mlp_kernel(n_sub, sub_rows, gelu_fn)

    # --- VMEM budget (drives vmem_limit_bytes) -----------------------------
    w_itemsize = jnp.dtype(w1.dtype).itemsize
    out_itemsize = jnp.dtype(out_dtype).itemsize
    w_bytes = (w1.size + w2.size + w3.size) * w_itemsize
    b_bytes = (b1.size + b2.size + b3.size) * jnp.dtype(b1.dtype).itemsize
    x_tile_bytes = block_b * d_in * x.dtype.itemsize
    o_tile_bytes = block_b * d_out * out_itemsize
    h_bytes = sub_rows * d_hidden * 4          # f32 intermediate per sub-tile
    w_buf = 1 if single_buffer_weights else 2  # resident blocks are double-buffered by default
    needed = w_buf * (w_bytes + b_bytes) + 2 * (x_tile_bytes + o_tile_bytes) + 2 * h_bytes
    vmem_limit = _pick_vmem_limit(needed)

    cost = pl.CostEstimate(
        flops=2 * B * (d_in * d_hidden + d_hidden * d_hidden + d_hidden * d_out),
        transcendentals=2 * B * d_hidden,
        bytes_accessed=(
            x.size * x.dtype.itemsize + w_bytes + b_bytes + B * d_out * out_itemsize
        ),
    )

    return pl.pallas_call(
        kernel,
        out_shape=jax.ShapeDtypeStruct((B, d_out), out_dtype),
        grid_spec=pltpu.PrefetchScalarGridSpec(
            num_scalar_prefetch=0,
            grid=grid,
            in_specs=[
                pl.BlockSpec((block_b, d_in), lambda i: (i, 0)),      # x tile (pipelined)
                _resident_spec((d_in, d_hidden), single_buffer_weights),
                _resident_spec((1, d_hidden), single_buffer_weights),
                _resident_spec((d_hidden, d_hidden), single_buffer_weights),
                _resident_spec((1, d_hidden), single_buffer_weights),
                _resident_spec((d_hidden, d_out), single_buffer_weights),
                _resident_spec((1, d_out), single_buffer_weights),
            ],
            out_specs=pl.BlockSpec((block_b, d_out), lambda i: (i, 0)),
        ),
        compiler_params=pltpu.CompilerParams(
            dimension_semantics=("parallel",),
            vmem_limit_bytes=vmem_limit,
        ),
        cost_estimate=cost,
    )(x, w1, b1, w2, b2, w3, b3)
    # TODO(synk): for very large d_hidden (>= ~4K) add a hidden-dim grid axis
    # with an f32 accumulator instead of keeping all three weights resident.


def _init_linear(key, fan_in, fan_out, dtype=jnp.float32):
    # Mirrors nn.Linear's uniform(-1/sqrt(fan_in), 1/sqrt(fan_in)) init.
    kw, kb = jax.random.split(key)
    bound = float(fan_in) ** -0.5
    w = jax.random.uniform(kw, (fan_in, fan_out), dtype, -bound, bound)  # pre-transposed (in, out)
    b = jax.random.uniform(kb, (1, fan_out), dtype, -bound, bound)
    return w, b


def mlp_reference(x, w1, b1, w2, b2, w3, b3, approximate=False):
    # Pure-JAX mirror of the kernel numerics (same operand dtype, f32 accum,
    # GELU in the compute dtype).
    cdt = w1.dtype
    gelu_fn = _gelu_tanh if approximate else _gelu_exact
    h = jnp.dot(x.astype(cdt), w1, preferred_element_type=jnp.float32) + b1
    h = gelu_fn(h.astype(cdt))
    h = jnp.dot(h, w2, preferred_element_type=jnp.float32) + b2
    h = gelu_fn(h.astype(cdt))
    h = jnp.dot(h, w3, preferred_element_type=jnp.float32) + b3
    return h


if __name__ == "__main__":
    key = jax.random.PRNGKey(0)
    k_x, k1, k2, k3 = jax.random.split(key, 4)

    # Lane-dense (multiple-of-128) dims; batch large enough for 4 grid steps
    # (>= 2 per TensorCore on v7x) with a fat block_b that amortizes the
    # ~0.35 us per-step overhead.
    B, d_in, d_hidden, d_out = 1024, 128, 256, 128
    block_b = 256  # 4 grid steps; each split into 2 sub-tiles of 128 rows

    x = jax.random.normal(k_x, (B, d_in), jnp.float32)
    w1, b1 = _init_linear(k1, d_in, d_hidden)  # f32 master weights
    w2, b2 = _init_linear(k2, d_hidden, d_hidden)
    w3, b3 = _init_linear(k3, d_hidden, d_out)

    # 1) Pure-f32 path (f32 weights in, f32 GELU) vs f32 reference.
    out_f32 = mlp_pallas(x, w1, b1, w2, b2, w3, b3, block_b=block_b, n_sub=2)
    out_f32 = jax.block_until_ready(out_f32)
    ref_f32 = mlp_reference(x, w1, b1, w2, b2, w3, b3)
    assert out_f32.shape == (B, d_out)
    # Tolerance covers MXU f32-matmul pass-count differences vs XLA's default.
    assert jnp.allclose(out_f32, ref_f32, atol=5e-3, rtol=5e-3)

    # 2) bf16 compute path: weights cast ONCE here (outside the jitted hot
    #    path); x stays f32 in HBM and is cast inside the kernel.
    w1b, w2b, w3b = (w.astype(jnp.bfloat16) for w in (w1, w2, w3))
    out_bf16 = mlp_pallas(x, w1b, b1, w2b, b2, w3b, b3, block_b=block_b, n_sub=2)
    out_bf16 = jax.block_until_ready(out_bf16)
    ref_bf16 = mlp_reference(x, w1b, b1, w2b, b2, w3b, b3)
    assert out_bf16.shape == (B, d_out)
    assert jnp.allclose(out_bf16, ref_bf16, atol=3e-2, rtol=3e-2)

    print("KERNEL_OK")
</pallas_src>

<mosaic_0001>
module attributes {stable_mosaic.version = 11 : i64} {
  func.func @kernel(%arg0: i32, %arg1: memref<256x128xf32, #tpu.memory_space<vmem>>, %arg2: memref<128x256xf32, #tpu.memory_space<vmem>>, %arg3: memref<1x256xf32, #tpu.memory_space<vmem>>, %arg4: memref<256x256xf32, #tpu.memory_space<vmem>>, %arg5: memref<1x256xf32, #tpu.memory_space<vmem>>, %arg6: memref<256x128xf32, #tpu.memory_space<vmem>>, %arg7: memref<1x128xf32, #tpu.memory_space<vmem>>, %arg8: memref<256x128xf32, #tpu.memory_space<vmem>>) attributes {dimension_semantics = [#tpu.dimension_semantics<parallel>], iteration_bounds = array<i64: 4>, scalar_prefetch = 0 : i64, scratch_operands = 0 : i64, tpu.core_type = #tpu.core_type<tc>, window_params = [{transform_indices = @transform_0, window_bounds = array<i64: 256, 128>}, {pipeline_mode = #tpu.pipeline_mode<synchronous>, transform_indices = @transform_1, window_bounds = array<i64: 128, 256>}, {pipeline_mode = #tpu.pipeline_mode<synchronous>, transform_indices = @transform_2, window_bounds = array<i64: 1, 256>}, {pipeline_mode = #tpu.pipeline_mode<synchronous>, transform_indices = @transform_3, window_bounds = array<i64: 256, 256>}, {pipeline_mode = #tpu.pipeline_mode<synchronous>, transform_indices = @transform_4, window_bounds = array<i64: 1, 256>}, {pipeline_mode = #tpu.pipeline_mode<synchronous>, transform_indices = @transform_5, window_bounds = array<i64: 256, 128>}, {pipeline_mode = #tpu.pipeline_mode<synchronous>, transform_indices = @transform_6, window_bounds = array<i64: 1, 128>}, {transform_indices = @transform_7, window_bounds = array<i64: 256, 128>}]} {
    %c0 = arith.constant 0 : index
    %c0_0 = arith.constant 0 : index
    %0 = vector.load %arg2[%c0, %c0_0] : memref<128x256xf32, #tpu.memory_space<vmem>>, vector<128x256xf32>
    %c0_1 = arith.constant 0 : index
    %c0_2 = arith.constant 0 : index
    %1 = vector.load %arg4[%c0_1, %c0_2] : memref<256x256xf32, #tpu.memory_space<vmem>>, vector<256x256xf32>
    %c0_3 = arith.constant 0 : index
    %c0_4 = arith.constant 0 : index
    %2 = vector.load %arg6[%c0_3, %c0_4] : memref<256x128xf32, #tpu.memory_space<vmem>>, vector<256x128xf32>
    %c0_5 = arith.constant 0 : index
    %c0_6 = arith.constant 0 : index
    %3 = vector.load %arg3[%c0_5, %c0_6] : memref<1x256xf32, #tpu.memory_space<vmem>>, vector<1x256xf32>
    %c0_7 = arith.constant 0 : index
    %c0_8 = arith.constant 0 : index
    %4 = vector.load %arg5[%c0_7, %c0_8] : memref<1x256xf32, #tpu.memory_space<vmem>>, vector<1x256xf32>
    %c0_9 = arith.constant 0 : index
    %c0_10 = arith.constant 0 : index
    %5 = vector.load %arg7[%c0_9, %c0_10] : memref<1x128xf32, #tpu.memory_space<vmem>>, vector<1x128xf32>
    %c0_11 = arith.constant 0 : index
    %c0_12 = arith.constant 0 : index
    %6 = vector.load %arg1[%c0_11, %c0_12] : memref<256x128xf32, #tpu.memory_space<vmem>>, vector<128x128xf32>
    %cst = arith.constant dense<0.000000e+00> : vector<128x256xf32>
    %7 = tpu.matmul %6, %0, %cst {dimension_numbers = #tpu.dot_dimension_numbers<[1], [0], [0], [1], [0, 0, 1, 1], [], []>} : vector<128x128xf32>, vector<128x256xf32>, vector<128x256xf32> -> vector<128x256xf32>
    %8 = vector.broadcast %3 : vector<1x256xf32> to vector<128x256xf32>
    %9 = arith.addf %7, %8 : vector<128x256xf32>
    %cst_13 = arith.constant 5.000000e-01 : f32
    %10 = vector.broadcast %cst_13 : f32 to vector<128x256xf32>
    %11 = arith.mulf %10, %9 : vector<128x256xf32>
    %cst_14 = arith.constant 0.707106769 : f32
    %12 = vector.broadcast %cst_14 : f32 to vector<128x256xf32>
    %13 = arith.mulf %9, %12 : vector<128x256xf32>
    %14 = math.erf %13 : vector<128x256xf32>
    %cst_15 = arith.constant 1.000000e+00 : f32
    %15 = vector.broadcast %cst_15 : f32 to vector<128x256xf32>
    %16 = arith.addf %15, %14 : vector<128x256xf32>
    %17 = arith.mulf %11, %16 : vector<128x256xf32>
    %cst_16 = arith.constant dense<0.000000e+00> : vector<128x256xf32>
    %18 = tpu.matmul %17, %1, %cst_16 {dimension_numbers = #tpu.dot_dimension_numbers<[1], [0], [0], [1], [0, 0, 1, 1], [], []>} : vector<128x256xf32>, vector<256x256xf32>, vector<128x256xf32> -> vector<128x256xf32>
    %19 = vector.broadcast %4 : vector<1x256xf32> to vector<128x256xf32>
    %20 = arith.addf %18, %19 : vector<128x256xf32>
    %cst_17 = arith.constant 5.000000e-01 : f32
    %21 = vector.broadcast %cst_17 : f32 to vector<128x256xf32>
    %22 = arith.mulf %21, %20 : vector<128x256xf32>
    %cst_18 = arith.constant 0.707106769 : f32
    %23 = vector.broadcast %cst_18 : f32 to vector<128x256xf32>
    %24 = arith.mulf %20, %23 : vector<128x256xf32>
    %25 = math.erf %24 : vector<128x256xf32>
    %cst_19 = arith.constant 1.000000e+00 : f32
    %26 = vector.broadcast %cst_19 : f32 to vector<128x256xf32>
    %27 = arith.addf %26, %25 : vector<128x256xf32>
    %28 = arith.mulf %22, %27 : vector<128x256xf32>
    %cst_20 = arith.constant dense<0.000000e+00> : vector<128x128xf32>
    %29 = tpu.matmul %28, %2, %cst_20 {dimension_numbers = #tpu.dot_dimension_numbers<[1], [0], [0], [1], [0, 0, 1, 1], [], []>} : vector<128x256xf32>, vector<256x128xf32>, vector<128x128xf32> -> vector<128x128xf32>
    %30 = vector.broadcast %5 : vector<1x128xf32> to vector<128x128xf32>
    %31 = arith.addf %29, %30 : vector<128x128xf32>
    %c0_21 = arith.constant 0 : index
    %c0_22 = arith.constant 0 : index
    %32 = vector.load %arg8[%c0_21, %c0_22] : memref<256x128xf32, #tpu.memory_space<vmem>>, vector<128x128xf32>
    tpu.vector_store %arg8[%c0_21, %c0_22], %31 {strides = array<i32>} : memref<256x128xf32, #tpu.memory_space<vmem>>, vector<128x128xf32>,
    %c128 = arith.constant 128 : index
    %c0_23 = arith.constant 0 : index
    %33 = vector.load %arg1[%c128, %c0_23] : memref<256x128xf32, #tpu.memory_space<vmem>>, vector<128x128xf32>
    %cst_24 = arith.constant dense<0.000000e+00> : vector<128x256xf32>
    %34 = tpu.matmul %33, %0, %cst_24 {dimension_numbers = #tpu.dot_dimension_numbers<[1], [0], [0], [1], [0, 0, 1, 1], [], []>} : vector<128x128xf32>, vector<128x256xf32>, vector<128x256xf32> -> vector<128x256xf32>
    %35 = vector.broadcast %3 : vector<1x256xf32> to vector<128x256xf32>
    %36 = arith.addf %34, %35 : vector<128x256xf32>
    %cst_25 = arith.constant 5.000000e-01 : f32
    %37 = vector.broadcast %cst_25 : f32 to vector<128x256xf32>
    %38 = arith.mulf %37, %36 : vector<128x256xf32>
    %cst_26 = arith.constant 0.707106769 : f32
    %39 = vector.broadcast %cst_26 : f32 to vector<128x256xf32>
    %40 = arith.mulf %36, %39 : vector<128x256xf32>
    %41 = math.erf %40 : vector<128x256xf32>
    %cst_27 = arith.constant 1.000000e+00 : f32
    %42 = vector.broadcast %cst_27 : f32 to vector<128x256xf32>
    %43 = arith.addf %42, %41 : vector<128x256xf32>
    %44 = arith.mulf %38, %43 : vector<128x256xf32>
    %cst_28 = arith.constant dense<0.000000e+00> : vector<128x256xf32>
    %45 = tpu.matmul %44, %1, %cst_28 {dimension_numbers = #tpu.dot_dimension_numbers<[1], [0], [0], [1], [0, 0, 1, 1], [], []>} : vector<128x256xf32>, vector<256x256xf32>, vector<128x256xf32> -> vector<128x256xf32>
    %46 = vector.broadcast %4 : vector<1x256xf32> to vector<128x256xf32>
    %47 = arith.addf %45, %46 : vector<128x256xf32>
    %cst_29 = arith.constant 5.000000e-01 : f32
    %48 = vector.broadcast %cst_29 : f32 to vector<128x256xf32>
    %49 = arith.mulf %48, %47 : vector<128x256xf32>
    %cst_30 = arith.constant 0.707106769 : f32
    %50 = vector.broadcast %cst_30 : f32 to vector<128x256xf32>
    %51 = arith.mulf %47, %50 : vector<128x256xf32>
    %52 = math.erf %51 : vector<128x256xf32>
    %cst_31 = arith.constant 1.000000e+00 : f32
    %53 = vector.broadcast %cst_31 : f32 to vector<128x256xf32>
    %54 = arith.addf %53, %52 : vector<128x256xf32>
    %55 = arith.mulf %49, %54 : vector<128x256xf32>
    %cst_32 = arith.constant dense<0.000000e+00> : vector<128x128xf32>
    %56 = tpu.matmul %55, %2, %cst_32 {dimension_numbers = #tpu.dot_dimension_numbers<[1], [0], [0], [1], [0, 0, 1, 1], [], []>} : vector<128x256xf32>, vector<256x128xf32>, vector<128x128xf32> -> vector<128x128xf32>
    %57 = vector.broadcast %5 : vector<1x128xf32> to vector<128x128xf32>
    %58 = arith.addf %56, %57 : vector<128x128xf32>
    %c128_33 = arith.constant 128 : index
    %c0_34 = arith.constant 0 : index
    %59 = vector.load %arg8[%c128_33, %c0_34] : memref<256x128xf32, #tpu.memory_space<vmem>>, vector<128x128xf32>
    tpu.vector_store %arg8[%c128_33, %c0_34], %58 {strides = array<i32>} : memref<256x128xf32, #tpu.memory_space<vmem>>, vector<128x128xf32>,
    return
  }
  func.func @transform_0(%arg0: i32) -> (i32, i32) {
    %c0_i32 = arith.constant 0 : i32
    %c0_i32_0 = arith.constant 0 : i32
    return %arg0, %c0_i32 : i32, i32
  }
  func.func @transform_1(%arg0: i32) -> (i32, i32) {
    %c0_i32 = arith.constant 0 : i32
    %c0_i32_0 = arith.constant 0 : i32
    %c0_i32_1 = arith.constant 0 : i32
    return %c0_i32, %c0_i32_0 : i32, i32
  }
  func.func @transform_2(%arg0: i32) -> (i32, i32) {
    %c0_i32 = arith.constant 0 : i32
    %c0_i32_0 = arith.constant 0 : i32
    %c0_i32_1 = arith.constant 0 : i32
    return %c0_i32, %c0_i32_0 : i32, i32
  }
  func.func @transform_3(%arg0: i32) -> (i32, i32) {
    %c0_i32 = arith.constant 0 : i32
    %c0_i32_0 = arith.constant 0 : i32
    %c0_i32_1 = arith.constant 0 : i32
    return %c0_i32, %c0_i32_0 : i32, i32
  }
  func.func @transform_4(%arg0: i32) -> (i32, i32) {
    %c0_i32 = arith.constant 0 : i32
    %c0_i32_0 = arith.constant 0 : i32
    %c0_i32_1 = arith.constant 0 : i32
    return %c0_i32, %c0_i32_0 : i32, i32
  }
  func.func @transform_5(%arg0: i32) -> (i32, i32) {
    %c0_i32 = arith.constant 0 : i32
    %c0_i32_0 = arith.constant 0 : i32
    %c0_i32_1 = arith.constant 0 : i32
    return %c0_i32, %c0_i32_0 : i32, i32
  }
  func.func @transform_6(%arg0: i32) -> (i32, i32) {
    %c0_i32 = arith.constant 0 : i32
    %c0_i32_0 = arith.constant 0 : i32
    %c0_i32_1 = arith.constant 0 : i32
    return %c0_i32, %c0_i32_0 : i32, i32
  }
  func.func @transform_7(%arg0: i32) -> (i32, i32) {
    %c0_i32 = arith.constant 0 : i32
    %c0_i32_0 = arith.constant 0 : i32
    return %arg0, %c0_i32 : i32, i32
  }
}

</mosaic_0001>

<bundles_post_ra>
// kernel: mlp_pallas.1
= control target key start
LH: loop header
LB: loop body
LE: loop exit
PB: predicated region body
PF: predicated region fallthrough
CT: control target
= control target key end

     0   :  { %s4267_s0 = inlined_call_operand.hbm [shape: f32[1024,128], index: 0, kind: input, shape index: {}]   ;;  %s4268_s1 = inlined_call_operand.hbm [shape: f32[128,256], index: 1, kind: input, shape index: {}]   ;;  %s4269_s2 = inlined_call_operand.vmem [shape: f32[1,256], index: 2, kind: input, shape index: {}]   ;;  %s4270_s3 = inlined_call_operand.hbm [shape: f32[256,256], index: 3, kind: input, shape index: {}]   ;;  %s4271_s4 = inlined_call_operand.vmem [shape: f32[1,256], index: 4, kind: input, shape index: {}]   ;;  %s4272_s5 = inlined_call_operand.hbm [shape: f32[256,128], index: 5, kind: input, shape index: {}]   ;;  %s4273_s6 = inlined_call_operand.vmem [shape: f32[1,128], index: 6, kind: input, shape index: {}]   ;;  %s4274_s7 = inlined_call_operand.hbm [shape: f32[1024,128], index: 7, kind: output, shape index: {}]  }
   0x1   :  { %4287 = sst [smem:[#allocation16_spill]] %s4268_s1 }
   0x2   :  { %12 = vsyncpa [#allocation3], 0 }
   0x3   :  { %14 = vsyncpa [#allocation3 + $0x1], 0 }
   0x4   :  { %15 = vsyncpa [#allocation6], 0 }
   0x5   :  { %16 = vsyncpa [#allocation9], 0 }
   0x6   :  { %17 = vsyncpa [#allocation4], 0 }
   0x7   :  { %19 = vsyncpa [#allocation4 + $0x1], 0  ;;  %s3139_s24 = smov 0   ;;  %s3141_s25 = smov 0  }
   0x8   :  { %s3143_s26 = smov 0   ;;  %s3145_s27 = smov 0  }
   0x9 LB: > { %s3160_s28 = sadd.s32 4294967295, %s3085_s27   ;;  %s2256_s29 = sadd.s32 4294967294, %s3085_s27   ;;  %s3085_s27 = sphi %s3145_s27, %s4314_s27   ;;  %s3081_s26 = sphi %s3143_s26, %s4313_s26   ;;  %s3077_s25 = sphi %s3141_s25, %s4312_s25   ;;  %s3073_s24 = sphi %s3139_s24, %s4311_s24  }
   0xa   : > { %p45_p0 = scmp.ne.s32.totalorder %s3077_s25, %s3073_s24  ;;  %p4275_p1 = scmp.eq.s32.totalorder %s3160_s28, 0 }
   0xb   : > { %p201_p3 = scmp.eq.s32.totalorder %s2256_s29, 3  ;;  %p2257_p5 = scmp.ge.s32.totalorder %s3085_s27, 1 }
   0xc   : > { %p3169_p4 = por %p4275_p1, %p45_p0  ;;  %p208_p7 = scmp.lt.s32.totalorder %s3085_s27, 5 }
   0xd   : > { %p3174_p6 = por %p201_p3, %p45_p0  ;;  %s3087_s10 = smov [#allocation5]  }
   0xe   : > { %s4288_s30 = scalar_select %p3169_p4, 1, 0 }
   0xf   : > { %s4289_s8 = scalar_select %p3174_p6, 1, 0 }
  0x10   : > { %p3179_p8 = pnand %p2257_p5, %p208_p7  ;;  %s220_s11 = sshll.u32 %s3087_s10, 4  ;;  %s221_s11 = int_to_ptr.vmem [resolvable:$true] %s220_s11 }
  0x11   : > { %s3088_s13 = smov [#allocation7]   ;;  %s3089_s15 = smov [#allocation8]  }
  0x12   : > { %s4290_s9 = scalar_select %p3179_p8, 1, 0 }
  0x13   : > { %p2487_p9 = pneg %p3179_p8  ;;  %s236_s14 = sshll.u32 %s3088_s13, 4  ;;  %s237_s14 = int_to_ptr.vmem [resolvable:$true] %s236_s14 }
  0x14   : > { %s252_s16 = sshll.u32 %s3089_s15, 4  ;;  %s2918_s17 = scalar_lea.vmem %s221_s11, 4096  ;;  %s253_s16 = int_to_ptr.vmem [resolvable:$true] %s252_s16 }
  0x15   : > { %p3187_p10 = pnand %p2487_p9, %p4275_p1  ;;  %p2919_p12 = scmp.ne.s32.totalorder %s221_s11, %s2918_s17 }
  0x16   : > { %p2926_p3 = scmp.lt.s32.totalorder %s221_s11, %s221_s11  ;;  %p2927_p5 = scmp.lt.s32.totalorder %s2918_s17, %s2918_s17 }
  0x17   : > { %p2909_p11 = pneg %p3187_p10 }
  0x18   : > { %p2928_p7 = por %p2927_p5, %p2926_p3 }
  0x19   : > { %p2921_p13 = pnand %p2919_p12, %p2909_p11 }
  0x1b   : > { %p2922_p0 = pneg %p2921_p13 }
  0x1d   : > { %p2929_p9 = pnand %p2928_p7, %p2922_p0 }
  0x1f   : > { %2932 = shalt.err (!%p2929_p9)
}
  0x20   : > { %s3090_s18 = smov 256   ;;  %s3091_s19 = smov 16  }
  0x21   : > { %s4292_s1 = sld [smem:[#allocation16_spill]]  ;;  %s2944_s22 = scalar_lea.vmem %s237_s14, 8192 }
  0x22   : > { %p2945_p1 = scmp.ne.s32.totalorder %s237_s14, %s2944_s22  ;;  %p2952_p2 = scmp.lt.s32.totalorder %s237_s14, %s237_s14 }
  0x23   : > { %p2953_p6 = scmp.lt.s32.totalorder %s2944_s22, %s2944_s22 }
  0x24   : > { %p2947_p12 = pnand %p2945_p1, %p2909_p11 }
  0x25   : > { %p2954_p3 = por %p2953_p6, %p2952_p2 }
  0x26   : > { %p2948_p13 = pneg %p2947_p12 }
  0x27   : > { %2490 = dma.hbm_to_vmem [thread:$0]  (!%p3187_p10), %s4292_s1, 4096, %s221_s11, [#allocation6], %s3090_s18, %s3090_s18, %s3091_s19  }
  0x28   : > { %p2955_p0 = pnand %p2954_p3, %p2948_p13 }
  0x2a   : > { %2958 = shalt.err (!%p2955_p0)
}
  0x2b   : > { %2493 = dma.hbm_to_vmem [thread:$0]  (!%p3187_p10), %s4270_s3, 8192, %s237_s14, [#allocation6], %s3090_s18, %s3090_s18, %s3091_s19  }
  0x2c   : > { %s2970_s10 = scalar_lea.vmem %s253_s16, 4096  ;;  %p2978_p9 = scmp.lt.s32.totalorder %s253_s16, %s253_s16 }
  0x2d   : > { %p2971_p5 = scmp.ne.s32.totalorder %s253_s16, %s2970_s10  ;;  %p2979_p12 = scmp.lt.s32.totalorder %s2970_s10, %s2970_s10 }
  0x2f   : > { %p2973_p7 = pnand %p2971_p5, %p2909_p11  ;;  %p2980_p4 = por %p2979_p12, %p2978_p9 }
  0x31   : > { %p2974_p1 = pneg %p2973_p7 }
  0x33   : > { %p2981_p2 = pnand %p2980_p4, %p2974_p1 }
  0x35   : > { %2984 = shalt.err (!%p2981_p2)
}
  0x36   : > { %s4277_s11 = smov 128   ;;  %s4278_s13 = smov 8  }
  0x37   : > { %2496 = dma.hbm_to_vmem [thread:$0]  (!%p3187_p10), %s4272_s5, 4096, %s253_s16, [#allocation9], %s4277_s11, %s4277_s11, %s4278_s13  }
  0x38   : > { %s3221_s17 = sadd.s32 1, %s3085_s27   ;;  %s32_s19 = sadd.s32 1, %s3081_s26 }
  0x39   : > { %s29_s18 = ssub.s32 %s3085_s27, %s3221_s17  ;;  %p39_p6 = scmp.ne.s32.totalorder %s3081_s26, %s3077_s25 }
  0x3a   : > { %p30_p4 = scmp.eq.s32.totalorder %s29_s18, 0  ;;  %p40_p11 = scmp.eq.s32.totalorder %s3085_s27, 0 }
  0x3b   : > { %p2508_p13 = scmp.lt.s32.totalorder %s3085_s27, 4  ;;  %p4293_p0 = scmp.eq.s32.totalorder %s3160_s28, 3 }
  0x3c   : > { %s3231_s20 = scalar_select %p30_p4, %s3081_s26, %s32_s19  }
  0x3d   : > { %p41_p3 = por %p40_p11, %p39_p6  ;;  %p3235_p5 = por %p4293_p0, %p39_p6 }
  0x3e   : > { %s269_s21 = sand.u32 1, %s3081_s26   ;;  %s2277_s22 = sshll.u32 %s3085_s27, 12 }
  0x3f   : > { %s4294_s12 = scalar_select %p3235_p5, 1, 0 }
  0x40   : > { %s2262_s16 = sshll.u32 %s269_s21, 8  ;;  %s3244_s10 = scalar_lea.hbm %s4267_s0, %s2277_s22 }
  0x41   : > { %s273_s14 = scalar_lea.vmem [#allocation2], %s2262_s16  ;;  %p3246_p10 = pnand %p2508_p13, %p41_p3 }
  0x42   : > { %s280_s15 = sshll.u32 %s273_s14, 4  ;;  %s3252_s19 = scalar_lea.sflag [#allocation3], %s269_s21  ;;  %s3250_s15 = int_to_ptr.vmem [resolvable:$true] %s280_s15 }
  0x43   : > { %s2985_s11 = scalar_lea.hbm %s3244_s10, 4096  ;;  %p2987_p1 = pneg %p3246_p10 }
  0x44   : > { %p2986_p7 = scmp.ne.s32.totalorder %s3244_s10, %s2985_s11  ;;  %s2990_s16 = scalar_lea.hbm %s4267_s0, 16384 }
  0x45   : > { %p2991_p2 = scmp.lt.s32.totalorder %s3244_s10, %s4267_s0  ;;  %p2992_p4 = scmp.lt.s32.totalorder %s2990_s16, %s2985_s11 }
  0x46   : > { %p2988_p9 = pnand %p2987_p1, %p2986_p7 }
  0x47   : > { %p2993_p6 = por %p2992_p4, %p2991_p2 }
  0x48   : > { %p2989_p12 = pneg %p2988_p9 }
  0x4a   : > { %p2994_p11 = pnand %p2993_p6, %p2989_p12 }
  0x4c   : > { %2997 = shalt.err (!%p2994_p11)
}
  0x4d   : > { %s2998_s21 = scalar_lea.vmem %s3250_s15, 4096  ;;  %s3094_s13 = smov [#allocation2]  }
  0x4e   : > { %p2999_p13 = scmp.ne.s32.totalorder %s3250_s15, %s2998_s21  ;;  %s3003_s1 = sshll.u32 %s3094_s13, 4  ;;  %s3004_s1 = int_to_ptr.vmem [resolvable:$false] %s3003_s1 }
  0x4f   : > { %s3005_s22 = scalar_lea.vmem %s3004_s1, 8192  ;;  %p3006_p7 = scmp.lt.s32.totalorder %s3250_s15, %s3004_s1 }
  0x50   : > { %p3001_p3 = pnand %p2999_p13, %p2987_p1  ;;  %p3007_p9 = scmp.lt.s32.totalorder %s3005_s22, %s2998_s21 }
  0x52   : > { %p3002_p0 = pneg %p3001_p3  ;;  %p3008_p5 = por %p3007_p9, %p3006_p7 }
  0x54   : > { %p3009_p8 = pnand %p3008_p5, %p3002_p0 }
  0x56   : > { %3012 = shalt.err (!%p3009_p8)
}
  0x57   : > { %s4296_s11 = smov 8   ;;  %s4297_s23 = smov 128  }
  0x58   : > { %2500 = dma.hbm_to_vmem [thread:$0]  (!%p3246_p10), %s3244_s10, 4096, %s3250_s15, %s3252_s19, %s4297_s23, %s4297_s23, %s4296_s11  }
  0x59   : > { %p4298_p1 = scmp.ne.s32.totalorder %s4290_s9, 0 }
  0x5b   : > { %292 = sbr.rel (%p4298_p1) target bundleno = 1131 (0x46b), region = 48 }
  0x60   : > { %s3279_s13 = sand.u32 1, %s3077_s25   ;;  %p4299_p8 = scmp.ne.s32.totalorder %s4288_s30, 0 }
  0x61   : > { %s2266_s1 = sshll.u32 %s3279_s13, 8  ;;  %s295_s16 = scalar_lea.sflag [#allocation3], %s3279_s13 }
  0x62   : > { %s3285_s18 = scalar_lea.vmem [#allocation2], %s2266_s1 }
  0x63   : > { %3056 = dma.done.wait (%p4299_p8), %s295_s16, 4096  }
  0x64   : > { %3058 = vsyncadd (%p4299_p8), %s295_s16, 4294963200  ;;  %p4300_p5 = scmp.eq.s32.totalorder %s3160_s28, 0 }
  0x66   : > { %3060 = dma.done.wait (%p4300_p5), [#allocation6], 12288   ;;  %p4301_p10 = pmov %p4300_p5 }
  0x67   : > { %p4302_p12 = pmov %p4300_p5 }
  0x68   : > { %3062 = vsyncadd (%p4301_p10), [#allocation6], 4294955008 }
  0x69   : > { %3064 = dma.done.wait (%p4302_p12), [#allocation9], 4096   ;;  %p4303_p2 = pmov %p4300_p5 }
  0x6a   : > { %v4283_v0 = vmov 0.0   ;;  %v3300_v1 = vld [vmem:[#allocation5 + $0xf8] sm:$0xff]  ;;  %v3302_v2 = vld [vmem:[#allocation5 + $0xf0] sm:$0xff]  ;;  %v3304_v3 = vld [vmem:[#allocation5 + $0xe8] sm:$0xff]  ;;  %s4033_s14 = scalar_lea.vmem [#allocation10], %s2266_s1  ;;  %s2278_s21 = sshll.u32 %s3160_s28, 12 }
  0x6b   : > { %3066 = vsyncadd (%p4303_p2), [#allocation9], 4294963200  ;;  %565 = vmatprep.mubr.f32.mxu0 %v4283_v0  ;;  %501 = vmatprep.subr.mxu0 %v3300_v1  ;;  %v3307_v4 = vld [vmem:[#allocation5 + $0xe0] sm:$0xff]  ;;  %v3310_v5 = vld [vmem:[#allocation5 + $0xd8] sm:$0xff]  ;;  %s2154_s22 = sshll.u32 %s4033_s14, 4  ;;  %s4221_s1 = scalar_lea.hbm %s4274_s7, %s2278_s21  ;;  %s4223_s22 = int_to_ptr.vmem [resolvable:$true] %s2154_s22 }
  0x6c   : > { %502 = vmatpush1.msra.mxu0 %v3302_v2  ;;  %v3313_v6 = vld [vmem:[#allocation5 + $0xd0] sm:$0xff]  ;;  %v3316_v7 = vld [vmem:[#allocation5 + $0xc8] sm:$0xff]  ;;  %v3319_v8 = vld [vmem:[#allocation5 + $0xc0] sm:$0xff]  ;;  %s2141_s16 = scalar_lea.sflag [#allocation4], %s3279_s13  ;;  %p4309_p6 = scmp.ne.s32.totalorder %s4294_s12, 0 }
  0x6d   : > { %503 = vmatprep.subr.mxu0 %v3304_v3  ;;  %v3322_v9 = vld [vmem:[#allocation5 + $0xb8] sm:$0xff]  ;;  %v3325_v10 = vld [vmem:[#allocation5 + $0xb0] sm:$0xff]  ;;  %v3328_v11 = vld [vmem:[#allocation5 + $0xa8] sm:$0xff]  ;;  %s3096_s28 = smov [#allocation10]  }
  0x6e   : > { %504 = vmatpush1.msra.mxu0 %v3307_v4  ;;  %v3331_v12 = vld [vmem:[#allocation5 + $0xa0] sm:$0xff]  ;;  %v3334_v13 = vld [vmem:[#allocation5 + $0x98] sm:$0xff]  ;;  %v3337_v14 = vld [vmem:[#allocation5 + $0x90] sm:$0xff]  ;;  %s3017_s30 = sshll.u32 %s3096_s28, 4  ;;  %s3018_s30 = int_to_ptr.vmem [resolvable:$false] %s3017_s30 }
  0x6f   : > { %505 = vmatprep.subr.mxu0 %v3310_v5  ;;  %v3340_v15 = vld [vmem:[#allocation5 + $0x88] sm:$0xff]  ;;  %v3343_v16 = vld [vmem:[#allocation5 + $0x80] sm:$0xff]  ;;  %v3346_v17 = vld [vmem:[#allocation5 + $0x78] sm:$0xff]  ;;  %s3019_s9 = scalar_lea.vmem %s3018_s30, 8192  ;;  %p3020_p3 = scmp.lt.s32.totalorder %s4223_s22, %s3018_s30 }
  0x70   : > { %506 = vmatpush1.msra.mxu0 %v3313_v6  ;;  %v3349_v18 = vld [vmem:[#allocation5 + $0x70] sm:$0xff]  ;;  %v3351_v19 = vld [vmem:[#allocation5 + $0x68] sm:$0xff]  ;;  %v406_v20 = vld [vmem:[#allocation7 + $0xf8] sm:$0xff] }
  0x71   : > { %507 = vmatprep.subr.mxu0 %v3316_v7  ;;  %v405_v21 = vld [vmem:[#allocation7 + $0xf0] sm:$0xff]  ;;  %v404_v22 = vld [vmem:[#allocation7 + $0xe8] sm:$0xff]  ;;  %v3355_v23 = vld [vmem:[#allocation5 + $0x60] sm:$0xff]  ;;  %833 = vmatprep.subr.mxu1 %v406_v20 }
  0x72   : > { %508 = vmatpush1.msra.mxu0 %v3319_v8  ;;  %v403_v24 = vld [vmem:[#allocation7 + $0xe0] sm:$0xff]  ;;  %v3358_v25 = vld [vmem:[#allocation5 + $0x58] sm:$0xff]  ;;  %834 = vmatpush1.msra.mxu1 %v405_v21  ;;  %v3361_v27 = vld [vmem:[#allocation5 + $0x50] sm:$0xff] }
  0x73   : > { %509 = vmatprep.subr.mxu0 %v3322_v9  ;;  %v402_v26 = vld [vmem:[#allocation7 + $0xd8] sm:$0xff]  ;;  %835 = vmatprep.subr.mxu1 %v404_v22  ;;  %v401_v28 = vld [vmem:[#allocation7 + $0xd0] sm:$0xff]  ;;  %v3364_v29 = vld [vmem:[#allocation5 + $0x48] sm:$0xff] }
  0x74   : > { %510 = vmatpush1.msra.mxu0 %v3325_v10  ;;  %836 = vmatpush1.msra.mxu1 %v403_v24  ;;  %v400_v30 = vld [vmem:[#allocation7 + $0xc8] sm:$0xff]  ;;  %v3367_v31 = vld [vmem:[#allocation5 + $0x40] sm:$0xff]  ;;  %v3370_v33 = vld [vmem:[#allocation5 + $0x38] sm:$0xff] }
  0x75   : > { %511 = vmatprep.subr.mxu0 %v3328_v11  ;;  %837 = vmatprep.subr.mxu1 %v402_v26  ;;  %v399_v32 = vld [vmem:[#allocation7 + $0xc0] sm:$0xff]  ;;  %v398_v34 = vld [vmem:[#allocation7 + $0xb8] sm:$0xff]  ;;  %v3373_v35 = vld [vmem:[#allocation5 + $0x30] sm:$0xff] }
  0x76   : > { %512 = vmatpush1.msra.mxu0 %v3331_v12  ;;  %838 = vmatpush1.msra.mxu1 %v401_v28  ;;  %v397_v36 = vld [vmem:[#allocation7 + $0xb0] sm:$0xff]  ;;  %v3376_v37 = vld [vmem:[#allocation5 + $0x28] sm:$0xff]  ;;  %v3379_v39 = vld [vmem:[#allocation5 + $0x20] sm:$0xff] }
  0x77   : > { %513 = vmatprep.subr.mxu0 %v3334_v13  ;;  %839 = vmatprep.subr.mxu1 %v400_v30  ;;  %v396_v38 = vld [vmem:[#allocation7 + $0xa8] sm:$0xff]  ;;  %v395_v40 = vld [vmem:[#allocation7 + $0xa0] sm:$0xff]  ;;  %v3382_v41 = vld [vmem:[#allocation5 + $0x18] sm:$0xff] }
  0x78   : > { %514 = vmatpush1.msra.mxu0 %v3337_v14  ;;  %840 = vmatpush1.msra.mxu1 %v399_v32  ;;  %v394_v42 = vld [vmem:[#allocation7 + $0x98] sm:$0xff]  ;;  %v3385_v43 = vld [vmem:[#allocation5 + $0x10] sm:$0xff]  ;;  %v3388_v45 = vld [vmem:[#allocation5 + $0x8] sm:$0xff] }
  0x79   : > { %515 = vmatprep.subr.mxu0 %v3340_v15  ;;  %841 = vmatprep.subr.mxu1 %v398_v34  ;;  %v393_v44 = vld [vmem:[#allocation7 + $0x90] sm:$0xff]  ;;  %v392_v46 = vld [vmem:[#allocation7 + $0x88] sm:$0xff]  ;;  %v3391_v47 = vld [vmem:[#allocation5] sm:$0xff] }
  0x7a   : > { %516 = vmatpush1.msra.mxu0 %v3343_v16  ;;  %842 = vmatpush1.msra.mxu1 %v397_v36  ;;  %v391_v48 = vld [vmem:[#allocation7 + $0x80] sm:$0xff]  ;;  %v390_v50 = vld [vmem:[#allocation7 + $0x78] sm:$0xff]  ;;  %v389_v51 = vld [vmem:[#allocation7 + $0x70] sm:$0xff] }
  0x7b   : > { %517 = vmatprep.subr.mxu0 %v3346_v17  ;;  %843 = vmatprep.subr.mxu1 %v396_v38  ;;  %v474_v49 = vld [vmem:[%s3285_s18] sm:$0xff]  ;;  %v388_v52 = vld [vmem:[#allocation7 + $0x68] sm:$0xff]  ;;  %v386_v55 = vld [vmem:[#allocation7 + $0x58] sm:$0xff] }
  0x7c   : > { %518 = vmatpush1.msra.mxu0 %v3349_v18  ;;  %844 = vmatpush1.msra.mxu1 %v395_v40  ;;  %v387_v53 = vld [vmem:[#allocation7 + $0x60] sm:$0xff]  ;;  %v475_v54 = vld [vmem:[%s3285_s18 + $0x8] sm:$0xff]  ;;  %v385_v56 = vld [vmem:[#allocation7 + $0x50] sm:$0xff] }
  0x7d   : > { %519 = vmatprep.subr.mxu0 %v3351_v19  ;;  %845 = vmatprep.subr.mxu1 %v394_v42  ;;  %v384_v57 = vld [vmem:[#allocation7 + $0x48] sm:$0xff]  ;;  %v383_v58 = vld [vmem:[#allocation7 + $0x40] sm:$0xff]  ;;  %v476_v59 = vld [vmem:[%s3285_s18 + $0x10] sm:$0xff] }
  0x7e   : > { %520 = vmatpush1.msra.mxu0 %v3355_v23  ;;  %846 = vmatpush1.msra.mxu1 %v393_v44  ;;  %v382_v60 = vld [vmem:[#allocation7 + $0x38] sm:$0xff]  ;;  %v381_v61 = vld [vmem:[#allocation7 + $0x30] sm:$0xff]  ;;  %v380_v62 = vld [vmem:[#allocation7 + $0x28] sm:$0xff] }
  0x7f   : > { %521 = vmatprep.subr.mxu0 %v3358_v25  ;;  %847 = vmatprep.subr.mxu1 %v392_v46  ;;  %v379_v63 = vld [vmem:[#allocation7 + $0x20] sm:$0xff]  ;;  %v477_v20 = vld [vmem:[%s3285_s18 + $0x18] sm:$0xff]  ;;  %v377_v22 = vld [vmem:[#allocation7 + $0x10] sm:$0xff] }
  0x80   : > { %522 = vmatpush1.msra.mxu0 %v3361_v27  ;;  %848 = vmatpush1.msra.mxu1 %v391_v48  ;;  %v378_v21 = vld [vmem:[#allocation7 + $0x18] sm:$0xff]  ;;  %v376_v24 = vld [vmem:[#allocation7 + $0x8] sm:$0xff]  ;;  %v375_v26 = vld [vmem:[#allocation7] sm:$0xff] }
  0x81   : > { %523 = vmatprep.subr.mxu0 %v3364_v29  ;;  %849 = vmatprep.subr.mxu1 %v390_v50  ;;  %v478_v28 = vld [vmem:[%s3285_s18 + $0x20] sm:$0xff]  ;;  %v438_v30 = vld [vmem:[#allocation7 + $0x1f8] sm:$0xff]  ;;  %v437_v32 = vld [vmem:[#allocation7 + $0x1f0] sm:$0xff] }
  0x82   : > { %524 = vmatpush1.msra.mxu0 %v3367_v31  ;;  %850 = vmatpush1.msra.mxu1 %v389_v51  ;;  %v436_v34 = vld [vmem:[#allocation7 + $0x1e8] sm:$0xff]  ;;  %v435_v36 = vld [vmem:[#allocation7 + $0x1e0] sm:$0xff]  ;;  %v434_v40 = vld [vmem:[#allocation7 + $0x1d8] sm:$0xff] }
  0x83   : > { %525 = vmatprep.subr.mxu0 %v3370_v33  ;;  %851 = vmatprep.subr.mxu1 %v388_v52  ;;  %v479_v38 = vld [vmem:[%s3285_s18 + $0x28] sm:$0xff]  ;;  %v433_v42 = vld [vmem:[#allocation7 + $0x1d0] sm:$0xff]  ;;  %v481_v48 = vld [vmem:[%s3285_s18 + $0x38] sm:$0xff] }
  0x84   : > { %526 = vmatpush1.msra.mxu0 %v3373_v35  ;;  %852 = vmatpush1.msra.mxu1 %v387_v53  ;;  %v432_v44 = vld [vmem:[#allocation7 + $0x1c8] sm:$0xff]  ;;  %v480_v46 = vld [vmem:[%s3285_s18 + $0x30] sm:$0xff]  ;;  %v485_v52 = vld [vmem:[%s3285_s18 + $0x58] sm:$0xff] }
  0x85   : > { %527 = vmatprep.subr.mxu0 %v3376_v37  ;;  %853 = vmatprep.subr.mxu1 %v386_v55  ;;  %v483_v50 = vld [vmem:[%s3285_s18 + $0x48] sm:$0xff]  ;;  %v484_v51 = vld [vmem:[%s3285_s18 + $0x50] sm:$0xff]  ;;  %v486_v53 = vld [vmem:[%s3285_s18 + $0x60] sm:$0xff] }
  0x86   : > { %528 = vmatpush1.msra.mxu0 %v3379_v39  ;;  %854 = vmatpush1.msra.mxu1 %v385_v56  ;;  %v488_v55 = vld [vmem:[%s3285_s18 + $0x70] sm:$0xff]  ;;  %v489_v56 = vld [vmem:[%s3285_s18 + $0x78] sm:$0xff] }
  0x87   : > { %529 = vmatprep.subr.mxu0 %v3382_v41  ;;  %855 = vmatprep.subr.mxu1 %v384_v57  ;;  %v431_v57 = vld [vmem:[#allocation7 + $0x1c0] sm:$0xff] }
  0x88   : > { %530 = vmatpush1.msra.mxu0 %v3385_v43  ;;  %856 = vmatpush1.msra.mxu1 %v383_v58  ;;  %v430_v58 = vld [vmem:[#allocation7 + $0x1b8] sm:$0xff] }
  0x89   : > { %531 = vmatprep.subr.mxu0 %v3388_v45  ;;  %857 = vmatprep.subr.mxu1 %v382_v60  ;;  %v428_v60 = vld [vmem:[#allocation7 + $0x1a8] sm:$0xff] }
  0x8a   : > { %532 = vmatpush1.msra.mxu0 %v3391_v47  ;;  %858 = vmatpush1.msra.mxu1 %v381_v61  ;;  %v427_v61 = vld [vmem:[#allocation7 + $0x1a0] sm:$0xff] }
  0x8b   : > { %566 = vmatmul.mubr.f32.vlgmr.msra.gmra.mxu0 %v474_v49  ;;  %859 = vmatprep.subr.mxu1 %v380_v62  ;;  %v482_v49 = vld [vmem:[%s3285_s18 + $0x40] sm:$0xff]  ;;  %v426_v62 = vld [vmem:[#allocation7 + $0x198] sm:$0xff] }
  0x8c   : > { %571 = vmatprep.mubr.f32.mxu0 %v4283_v0  ;;  %860 = vmatpush1.msra.mxu1 %v379_v63  ;;  %v425_v63 = vld [vmem:[#allocation7 + $0x190] sm:$0xff] }
  0x8d   : > { %861 = vmatprep.subr.mxu1 %v378_v21  ;;  %v423_v21 = vld [vmem:[#allocation7 + $0x180] sm:$0xff] }
  0x8e   : > { %862 = vmatpush1.msra.mxu1 %v377_v22  ;;  %v422_v22 = vld [vmem:[#allocation7 + $0x178] sm:$0xff] }
  0x8f   : > { %572 = vmatmul.mubr.f32.gmra.mxu0 %v475_v54  ;;  %863 = vmatprep.subr.mxu1 %v376_v24  ;;  %v487_v54 = vld [vmem:[%s3285_s18 + $0x68] sm:$0xff]  ;;  %v421_v24 = vld [vmem:[#allocation7 + $0x170] sm:$0xff] }
  0x90   : > { %577 = vmatprep.mubr.f32.mxu0 %v4283_v0  ;;  %864 = vmatpush1.msra.mxu1 %v375_v26  ;;  %v420_v26 = vld [vmem:[#allocation7 + $0x168] sm:$0xff] }
  0x91   : > { %865 = vmatprep.subr.mxu1 %v438_v30  ;;  %v418_v30 = vld [vmem:[#allocation7 + $0x158] sm:$0xff] }
  0x92   : > { %866 = vmatpush2.msra.mxu1 %v437_v32  ;;  %v417_v32 = vld [vmem:[#allocation7 + $0x150] sm:$0xff] }
  0x93   : > { %578 = vmatmul.mubr.f32.gmra.mxu0 %v476_v59  ;;  %867 = vmatprep.subr.mxu1 %v436_v34  ;;  %v429_v59 = vld [vmem:[#allocation7 + $0x1b0] sm:$0xff]  ;;  %v416_v34 = vld [vmem:[#allocation7 + $0x148] sm:$0xff] }
  0x94   : > { %583 = vmatprep.mubr.f32.mxu0 %v4283_v0  ;;  %868 = vmatpush2.msra.mxu1 %v435_v36  ;;  %v415_v36 = vld [vmem:[#allocation7 + $0x140] sm:$0xff] }
  0x95   : > { %869 = vmatprep.subr.mxu1 %v434_v40  ;;  %v413_v40 = vld [vmem:[#allocation7 + $0x130] sm:$0xff] }
  0x96   : > { %870 = vmatpush2.msra.mxu1 %v433_v42  ;;  %v412_v42 = vld [vmem:[#allocation7 + $0x128] sm:$0xff] }
  0x97   : > { %584 = vmatmul.mubr.f32.gmra.mxu0 %v477_v20  ;;  %871 = vmatprep.subr.mxu1 %v432_v44  ;;  %v424_v20 = vld [vmem:[#allocation7 + $0x188] sm:$0xff]  ;;  %v411_v44 = vld [vmem:[#allocation7 + $0x120] sm:$0xff] }
  0x98   : > { %589 = vmatprep.mubr.f32.mxu0 %v4283_v0  ;;  %872 = vmatpush2.msra.mxu1 %v431_v57 }
  0x99   : > { %873 = vmatprep.subr.mxu1 %v430_v58 }
  0x9a   : > { %874 = vmatpush2.msra.mxu1 %v429_v59 }
  0x9b   : > { %590 = vmatmul.mubr.f32.gmra.mxu0 %v478_v28  ;;  %875 = vmatprep.subr.mxu1 %v428_v60  ;;  %v419_v28 = vld [vmem:[#allocation7 + $0x160] sm:$0xff] }
  0x9c   : > { %595 = vmatprep.mubr.f32.mxu0 %v4283_v0  ;;  %876 = vmatpush2.msra.mxu1 %v427_v61 }
  0x9d   : > { %877 = vmatprep.subr.mxu1 %v426_v62 }
  0x9e   : > { %878 = vmatpush2.msra.mxu1 %v425_v63 }
  0x9f   : > { %596 = vmatmul.mubr.f32.gmra.mxu0 %v479_v38  ;;  %879 = vmatprep.subr.mxu1 %v424_v20  ;;  %v414_v38 = vld [vmem:[#allocation7 + $0x138] sm:$0xff] }
  0xa0   : > { %601 = vmatprep.mubr.f32.mxu0 %v4283_v0  ;;  %880 = vmatpush2.msra.mxu1 %v423_v21 }
  0xa1   : > { %881 = vmatprep.subr.mxu1 %v422_v22 }
  0xa2   : > { %882 = vmatpush2.msra.mxu1 %v421_v24 }
  0xa3   : > { %602 = vmatmul.mubr.f32.gmra.mxu0 %v480_v46  ;;  %883 = vmatprep.subr.mxu1 %v420_v26  ;;  %v410_v46 = vld [vmem:[#allocation7 + $0x118] sm:$0xff] }
  0xa4   : > { %607 = vmatprep.mubr.f32.mxu0 %v4283_v0  ;;  %884 = vmatpush2.msra.mxu1 %v419_v28 }
  0xa5   : > { %885 = vmatprep.subr.mxu1 %v418_v30 }
  0xa6   : > { %886 = vmatpush2.msra.mxu1 %v417_v32 }
  0xa7   : > { %608 = vmatmul.mubr.f32.gmra.mxu0 %v481_v48  ;;  %887 = vmatprep.subr.mxu1 %v416_v34  ;;  %v409_v48 = vld [vmem:[#allocation7 + $0x110] sm:$0xff] }
  0xa8   : > { %613 = vmatprep.mubr.f32.mxu0 %v4283_v0  ;;  %888 = vmatpush2.msra.mxu1 %v415_v36 }
  0xa9   : > { %889 = vmatprep.subr.mxu1 %v414_v38 }
  0xaa   : > { %890 = vmatpush2.msra.mxu1 %v413_v40 }
  0xab   : > { %614 = vmatmul.mubr.f32.gmra.mxu0 %v482_v49  ;;  %891 = vmatprep.subr.mxu1 %v412_v42  ;;  %v408_v49 = vld [vmem:[#allocation7 + $0x108] sm:$0xff] }
  0xac   : > { %619 = vmatprep.mubr.f32.mxu0 %v4283_v0  ;;  %892 = vmatpush2.msra.mxu1 %v411_v44 }
  0xad   : > { %893 = vmatprep.subr.mxu1 %v410_v46 }
  0xae   : > { %894 = vmatpush2.msra.mxu1 %v409_v48 }
  0xaf   : > { %620 = vmatmul.mubr.f32.gmra.mxu0 %v483_v50  ;;  %895 = vmatprep.subr.mxu1 %v408_v49  ;;  %v407_v50 = vld [vmem:[#allocation7 + $0x100] sm:$0xff] }
  0xb0   : > { %625 = vmatprep.mubr.f32.mxu0 %v4283_v0  ;;  %896 = vmatpush2.msra.mxu1 %v407_v50 }
  0xb1   : > { %1337 = vmatprep.subr.mxu1 %v3300_v1 }
  0xb3   : > { %626 = vmatmul.mubr.f32.gmra.mxu0 %v484_v51  ;;  %v491_v51 = vlaneseq }
  0xb4   : > { %631 = vmatprep.mubr.f32.mxu0 %v4283_v0 }
  0xb7   : > { %632 = vmatmul.mubr.f32.gmra.mxu0 %v485_v52  ;;  %v3428_v52 = vshrl.u32 %v491_v51, 7 }
  0xb8   : > { %637 = vmatprep.mubr.f32.mxu0 %v4283_v0 }
  0xb9   : > { %4304 = vst [vmem:[#allocation15_spill] sm:$0xff] %v3428_v52 }
  0xbb   : > { %638 = vmatmul.mubr.f32.gmra.mxu0 %v486_v53  ;;  %v4282_v53 = vsub.s32 0, %v3428_v52 }
  0xbc   : > { %643 = vmatprep.mubr.f32.mxu0 %v4283_v0 }
  0xbf   : > { %644 = vmatmul.mubr.f32.gmra.mxu0 %v487_v54  ;;  %v471_v54 = vld [vmem:[%s4269_s2] sm:$0x3] }
  0xc0   : > { %649 = vmatprep.mubr.f32.mxu0 %v4283_v0 }
  0xc3   : > { %650 = vmatmul.mubr.f32.gmra.mxu0 %v488_v55  ;;  %v4281_v55 = vsub.s32 1, %v3428_v52 }
  0xc4   : > { %655 = vmatprep.mubr.f32.mxu0 %v4283_v0 }
  0xc5   : > { %v3441_v57 = vrot.slane %v471_v54, %v4281_v55 }
  0xc7   : > { %656 = vmatmul.mubr.f32.gmra.mxu0 %v489_v56  ;;  %v3437_v56 = vrot.slane %v471_v54, %v4282_v53 }
 0x14b   : > { %v567_v1 = vpop.f32.mrf.mxu0 }
 0x14c   : > { %v568_v58 = vadd.f32 %v567_v1, %v3437_v56 }
 0x14d   : > { %v569_v59 = vpop.f32.mrf.mxu0 }
 0x14e   : > { %v694_v60 = vmul.f32 0.70710677, %v568_v58  ;;  %v570_v61 = vadd.f32 %v569_v59, %v3441_v57 }
 0x14f   : > { %v573_v62 = vpop.f32.mrf.mxu0 }
 0x150   : > { %2555 = verf.f32 %v694_v60  ;;  %v695_v63 = vmul.f32 0.70710677, %v570_v61  ;;  %v3446_v20 = vadd.f32 %v573_v62, %v3437_v56 }
 0x151   : > { %v575_v21 = vpop.f32.mrf.mxu0 }
 0x152   : > { %2557 = verf.f32 %v695_v63  ;;  %v696_v22 = vmul.f32 0.70710677, %v3446_v20  ;;  %v576_v24 = vadd.f32 %v575_v21, %v3441_v57 }
 0x153   : > { %v579_v26 = vpop.f32.mrf.mxu0 }
 0x154   : > { %2559 = verf.f32 %v696_v22  ;;  %v697_v28 = vmul.f32 0.70710677, %v576_v24  ;;  %v3451_v30 = vadd.f32 %v579_v26, %v3437_v56  ;;  %v665_v0 = vmul.f32 0.5, %v576_v24 }
 0x155   : > { %v581_v32 = vpop.f32.mrf.mxu0 }
 0x156   : > { %2561 = verf.f32 %v697_v28  ;;  %v698_v34 = vmul.f32 0.70710677, %v3451_v30  ;;  %v3455_v36 = vadd.f32 %v581_v32, %v3441_v57  ;;  %v662_v32 = vmul.f32 0.5, %v568_v58  ;;  %v3488_v58 = vld [vmem:[#allocation8 + $0x70] sm:$0xff] }
 0x157   : > { %v585_v38 = vpop.f32.mrf.mxu0 }
 0x158   : > { %2563 = verf.f32 %v698_v34  ;;  %v699_v40 = vmul.f32 0.70710677, %v3455_v36  ;;  %v3459_v42 = vadd.f32 %v585_v38, %v3437_v56  ;;  %v663_v38 = vmul.f32 0.5, %v570_v61 }
 0x159   : > { %v587_v44 = vpop.f32.mrf.mxu0 }
 0x15a   : > { %2565 = verf.f32 %v699_v40  ;;  %v700_v46 = vmul.f32 0.70710677, %v3459_v42  ;;  %v3463_v48 = vadd.f32 %v587_v44, %v3441_v57 }
 0x15b   : > { %v591_v49 = vpop.f32.mrf.mxu0 }
 0x15c   : > { %2567 = verf.f32 %v700_v46  ;;  %v701_v50 = vmul.f32 0.70710677, %v3463_v48  ;;  %v3467_v51 = vadd.f32 %v591_v49, %v3437_v56  ;;  %v3481_v49 = vld [vmem:[#allocation8 + $0xf8] sm:$0xff] }
 0x15d   : > { %v2556_v54 = vpop.eup %2555  ;;  %v593_v1 = vpop.f32.mrf.mxu0  ;;  %2279 = vmatprep.subr.mxu0 %v3481_v49 }
 0x15e   : > { %2569 = verf.f32 %v701_v50  ;;  %v702_v59 = vmul.f32 0.70710677, %v3467_v51  ;;  %v3471_v60 = vadd.f32 %v593_v1, %v3441_v57  ;;  %v758_v21 = vadd.f32 1.0, %v2556_v54  ;;  %v3483_v50 = vld [vmem:[#allocation8 + $0x78] sm:$0xff]  ;;  %v3485_v54 = vld [vmem:[#allocation8 + $0xf0] sm:$0xff] }
 0x15f   : > { %v2558_v62 = vpop.eup %2557  ;;  %v597_v63 = vpop.f32.mrf.mxu0  ;;  %2280 = vmatpush3.msra.mxu0 %v3483_v50 }
 0x160   : > { %2571 = verf.f32 %v702_v59  ;;  %v703_v22 = vmul.f32 0.70710677, %v3471_v60  ;;  %v3475_v26 = vadd.f32 %v597_v63, %v3437_v56  ;;  %v759_v40 = vadd.f32 1.0, %v2558_v62  ;;  %2281 = vmatprep.subr.mxu0 %v3485_v54 }
 0x161   : > { %v2560_v28 = vpop.eup %2559  ;;  %v599_v34 = vpop.f32.mrf.mxu0  ;;  %v790_v55 = vmul.f32 %v758_v21, %v662_v32  ;;  %v3498_v32 = vld [vmem:[#allocation8 + $0x68] sm:$0xff]  ;;  %2282 = vmatpush3.msra.mxu0 %v3488_v58 }
 0x162   : > { %2573 = verf.f32 %v703_v22  ;;  %v704_v44 = vmul.f32 0.70710677, %v3475_v26  ;;  %v3479_v46 = vadd.f32 %v599_v34, %v3441_v57  ;;  %v791_v63 = vmul.f32 %v759_v40, %v663_v38  ;;  %v3495_v34 = vld [vmem:[#allocation8 + $0xe8] sm:$0xff] }
 0x163   : > { %v2562_v1 = vpop.eup %2561  ;;  %v603_v59 = vpop.f32.mrf.mxu0  ;;  %v760_v22 = vadd.f32 1.0, %v2560_v28  ;;  %v664_v40 = vmul.f32 0.5, %v3446_v20  ;;  %2283 = vmatprep.subr.mxu0 %v3495_v34 }
 0x164   : > { %2575 = verf.f32 %v704_v44  ;;  %v705_v61 = vmul.f32 0.70710677, %v3479_v46  ;;  %v3492_v62 = vadd.f32 %v603_v59, %v3437_v56  ;;  %897 = vmatprep.mubr.f32.mxu1 %v791_v63  ;;  %v761_v21 = vadd.f32 1.0, %v2562_v1  ;;  %2284 = vmatpush3.msra.mxu0 %v3498_v32 }
 0x165   : > { %v2564_v53 = vpop.eup %2563  ;;  %v605_v38 = vpop.f32.mrf.mxu0  ;;  %898 = vmatmul.mubr.f32.vlgmr.msra.gmra.mxu1 %v790_v55  ;;  %v3514_v55 = vld [vmem:[#allocation8 + $0xe0] sm:$0xff] }
 0x166   : > { %2577 = verf.f32 %v705_v61  ;;  %v706_v44 = vmul.f32 0.70710677, %v3492_v62  ;;  %v3503_v28 = vadd.f32 %v605_v38, %v3441_v57  ;;  %1338 = vmatpush1.msra.mxu1 %v3302_v2  ;;  %v793_v1 = vmul.f32 %v761_v21, %v665_v0  ;;  %2285 = vmatprep.subr.mxu0 %v3514_v55 }
 0x167   : > { %v2566_v59 = vpop.eup %2565  ;;  %v609_v24 = vpop.f32.mrf.mxu0  ;;  %v762_v63 = vadd.f32 1.0, %v2564_v53  ;;  %1339 = vmatprep.subr.mxu1 %v3304_v3  ;;  %v792_v38 = vmul.f32 %v760_v22, %v664_v40  ;;  %v666_v2 = vmul.f32 0.5, %v3451_v30  ;;  %v667_v0 = vmul.f32 0.5, %v3455_v36 }
 0x168   : > { %2579 = verf.f32 %v706_v44  ;;  %v707_v20 = vmul.f32 0.70710677, %v3503_v28  ;;  %v3510_v61 = vadd.f32 %v609_v24, %v3437_v56  ;;  %903 = vmatprep.mubr.f32.mxu1 %v793_v1  ;;  %1340 = vmatpush1.msra.mxu1 %v3307_v4  ;;  %v763_v21 = vadd.f32 1.0, %v2566_v59  ;;  %v3519_v44 = vld [vmem:[#allocation8 + $0x60] sm:$0xff] }
 0x169   : > { %v2568_v52 = vpop.eup %2567  ;;  %v611_v53 = vpop.f32.mrf.mxu0  ;;  %904 = vmatmul.mubr.f32.gmra.mxu1 %v792_v38  ;;  %1341 = vmatprep.subr.mxu1 %v3310_v5  ;;  %v794_v36 = vmul.f32 %v762_v63, %v666_v2  ;;  %v3534_v5 = vld [vmem:[#allocation8 + $0xd8] sm:$0xff]  ;;  %v669_v63 = vmul.f32 0.5, %v3463_v48 }
 0x16a   : > { %2581 = verf.f32 %v707_v20  ;;  %v708_v3 = vmul.f32 0.70710677, %v3510_v61  ;;  %v3523_v22 = vadd.f32 %v611_v53, %v3441_v57  ;;  %v795_v24 = vmul.f32 %v763_v21, %v667_v0  ;;  %1342 = vmatpush1.msra.mxu1 %v3313_v6  ;;  %2286 = vmatpush3.msra.mxu0 %v3519_v44  ;;  %v3538_v2 = vld [vmem:[#allocation8 + $0x58] sm:$0xff] }
 0x16b   : > { %v2570_v40 = vpop.eup %2569  ;;  %v615_v30 = vpop.f32.mrf.mxu0  ;;  %1343 = vmatprep.subr.mxu1 %v3316_v7  ;;  %v764_v1 = vadd.f32 1.0, %v2568_v52  ;;  %v668_v0 = vmul.f32 0.5, %v3459_v42  ;;  %2287 = vmatprep.subr.mxu0 %v3534_v5 }
 0x16c   : > { %2583 = verf.f32 %v708_v3  ;;  %v709_v4 = vmul.f32 0.70710677, %v3523_v22  ;;  %v3530_v59 = vadd.f32 %v615_v30, %v3437_v56  ;;  %909 = vmatprep.mubr.f32.mxu1 %v795_v24  ;;  %v765_v38 = vadd.f32 1.0, %v2570_v40  ;;  %1344 = vmatpush1.msra.mxu1 %v3319_v8 }
 0x16d   : > { %v2572_v20 = vpop.eup %2571  ;;  %v617_v6 = vpop.f32.mrf.mxu0  ;;  %910 = vmatmul.mubr.f32.gmra.mxu1 %v794_v36  ;;  %1345 = vmatprep.subr.mxu1 %v3322_v9  ;;  %v796_v40 = vmul.f32 %v764_v1, %v668_v0  ;;  %v3554_v9 = vld [vmem:[#allocation8 + $0xd0] sm:$0xff]  ;;  %v670_v24 = vmul.f32 0.5, %v3467_v51 }
 0x16e   : > { %2585 = verf.f32 %v709_v4  ;;  %v710_v7 = vmul.f32 0.70710677, %v3530_v59  ;;  %v3543_v52 = vadd.f32 %v617_v6, %v3441_v57  ;;  %v797_v21 = vmul.f32 %v765_v38, %v669_v63  ;;  %1346 = vmatpush1.msra.mxu1 %v3325_v10  ;;  %2288 = vmatpush3.msra.mxu0 %v3538_v2 }
 0x16f   : > { %v2574_v53 = vpop.eup %2573  ;;  %v621_v48 = vpop.f32.mrf.mxu0  ;;  %v766_v3 = vadd.f32 1.0, %v2572_v20  ;;  %1347 = vmatprep.subr.mxu1 %v3328_v11  ;;  %v671_v10 = vmul.f32 0.5, %v3471_v60  ;;  %v3559_v20 = vld [vmem:[#allocation8 + $0x50] sm:$0xff]  ;;  %2289 = vmatprep.subr.mxu0 %v3554_v9 }
 0x170   : > { %2587 = verf.f32 %v710_v7  ;;  %v711_v8 = vmul.f32 0.70710677, %v3543_v52  ;;  %v3550_v42 = vadd.f32 %v621_v48, %v3437_v56  ;;  %915 = vmatprep.mubr.f32.mxu1 %v797_v21  ;;  %v767_v4 = vadd.f32 1.0, %v2574_v53  ;;  %1348 = vmatpush1.msra.mxu1 %v3331_v12  ;;  %v3578_v21 = vld [vmem:[#allocation8 + $0x48] sm:$0xff] }
 0x171   : > { %v2576_v30 = vpop.eup %2575  ;;  %v623_v36 = vpop.f32.mrf.mxu0  ;;  %916 = vmatmul.mubr.f32.gmra.mxu1 %v796_v40  ;;  %1349 = vmatprep.subr.mxu1 %v3334_v13  ;;  %v798_v60 = vmul.f32 %v766_v3, %v670_v24  ;;  %v3574_v13 = vld [vmem:[#allocation8 + $0xc8] sm:$0xff]  ;;  %v673_v53 = vmul.f32 0.5, %v3479_v46  ;;  %v672_v3 = vmul.f32 0.5, %v3475_v26 }
 0x172   : > { %2589 = verf.f32 %v711_v8  ;;  %v712_v1 = vmul.f32 0.70710677, %v3550_v42  ;;  %v3563_v11 = vadd.f32 %v623_v36, %v3441_v57  ;;  %v799_v6 = vmul.f32 %v767_v4, %v671_v10  ;;  %1350 = vmatpush1.msra.mxu1 %v3337_v14  ;;  %2290 = vmatpush3.msra.mxu0 %v3559_v20 }
 0x173   : > { %v2578_v63 = vpop.eup %2577  ;;  %v627_v51 = vpop.f32.mrf.mxu0  ;;  %v768_v0 = vadd.f32 1.0, %v2576_v30  ;;  %1351 = vmatprep.subr.mxu1 %v3340_v15  ;;  %2291 = vmatprep.subr.mxu0 %v3574_v13  ;;  %v674_v4 = vmul.f32 0.5, %v3492_v62 }
 0x174   : > { %2591 = verf.f32 %v712_v1  ;;  %v713_v12 = vmul.f32 0.70710677, %v3563_v11  ;;  %v3570_v38 = vadd.f32 %v627_v51, %v3437_v56  ;;  %921 = vmatprep.mubr.f32.mxu1 %v799_v6  ;;  %v769_v48 = vadd.f32 1.0, %v2578_v63  ;;  %1352 = vmatpush1.msra.mxu1 %v3343_v16  ;;  %v3599_v51 = vld [vmem:[#allocation8 + $0x40] sm:$0xff] }
 0x175   : > { %v2580_v7 = vpop.eup %2579  ;;  %v629_v14 = vpop.f32.mrf.mxu0  ;;  %922 = vmatmul.mubr.f32.gmra.mxu1 %v798_v60  ;;  %1353 = vmatprep.subr.mxu1 %v3346_v17  ;;  %v800_v10 = vmul.f32 %v768_v0, %v672_v3  ;;  %v3594_v17 = vld [vmem:[#allocation8 + $0xc0] sm:$0xff]  ;;  %v3618_v3 = vld [vmem:[#allocation8 + $0x38] sm:$0xff] }
 0x176   : > { %2593 = verf.f32 %v713_v12  ;;  %v714_v8 = vmul.f32 0.70710677, %v3570_v38  ;;  %v3583_v15 = vadd.f32 %v629_v14, %v3441_v57  ;;  %v801_v30 = vmul.f32 %v769_v48, %v673_v53  ;;  %1354 = vmatpush1.msra.mxu1 %v3349_v18  ;;  %2292 = vmatpush3.msra.mxu0 %v3578_v21 }
 0x177   : > { %v2582_v40 = vpop.eup %2581  ;;  %v633_v46 = vpop.f32.mrf.mxu0  ;;  %v770_v24 = vadd.f32 1.0, %v2580_v7  ;;  %1355 = vmatprep.subr.mxu1 %v3351_v19  ;;  %v675_v18 = vmul.f32 0.5, %v3503_v28  ;;  %2293 = vmatprep.subr.mxu0 %v3594_v17  ;;  %v677_v14 = vmul.f32 0.5, %v3523_v22 }
 0x178   : > { %2595 = verf.f32 %v714_v8  ;;  %v715_v16 = vmul.f32 0.70710677, %v3583_v15  ;;  %v3590_v26 = vadd.f32 %v633_v46, %v3437_v56  ;;  %927 = vmatprep.mubr.f32.mxu1 %v801_v30  ;;  %v771_v63 = vadd.f32 1.0, %v2582_v40  ;;  %1356 = vmatpush1.msra.mxu1 %v3355_v23 }
 0x179   : > { %v2584_v36 = vpop.eup %2583  ;;  %v635_v1 = vpop.f32.mrf.mxu0  ;;  %928 = vmatmul.mubr.f32.gmra.mxu1 %v800_v10  ;;  %1357 = vmatprep.subr.mxu1 %v3358_v25  ;;  %v802_v28 = vmul.f32 %v770_v24, %v674_v4  ;;  %v3614_v25 = vld [vmem:[#allocation8 + $0xb8] sm:$0xff]  ;;  %v676_v8 = vmul.f32 0.5, %v3510_v61 }
 0x17a   : > { %2597 = verf.f32 %v715_v16  ;;  %v716_v6 = vmul.f32 0.70710677, %v3590_v26  ;;  %v3603_v19 = vadd.f32 %v635_v1, %v3441_v57  ;;  %v803_v12 = vmul.f32 %v771_v63, %v675_v18  ;;  %1358 = vmatpush1.msra.mxu1 %v3361_v27  ;;  %2294 = vmatpush3.msra.mxu0 %v3599_v51  ;;  %v3639_v1 = vld [vmem:[#allocation8 + $0x30] sm:$0xff] }
 0x17b   : > { %v2586_v60 = vpop.eup %2585  ;;  %v639_v62 = vpop.f32.mrf.mxu0  ;;  %v772_v7 = vadd.f32 1.0, %v2584_v36  ;;  %1359 = vmatprep.subr.mxu1 %v3364_v29  ;;  %2295 = vmatprep.subr.mxu0 %v3614_v25  ;;  %v678_v36 = vmul.f32 0.5, %v3530_v59 }
 0x17c   : > { %2599 = verf.f32 %v716_v6  ;;  %v717_v23 = vmul.f32 0.70710677, %v3603_v19  ;;  %v3610_v0 = vadd.f32 %v639_v62, %v3437_v56  ;;  %933 = vmatprep.mubr.f32.mxu1 %v803_v12  ;;  %v773_v48 = vadd.f32 1.0, %v2586_v60  ;;  %1360 = vmatpush1.msra.mxu1 %v3367_v31 }
 0x17d   : > { %v2588_v53 = vpop.eup %2587  ;;  %v641_v27 = vpop.f32.mrf.mxu0  ;;  %934 = vmatmul.mubr.f32.gmra.mxu1 %v802_v28  ;;  %1361 = vmatprep.subr.mxu1 %v3370_v33  ;;  %v804_v16 = vmul.f32 %v772_v7, %v676_v8  ;;  %v3634_v33 = vld [vmem:[#allocation8 + $0xb0] sm:$0xff]  ;;  %v681_v28 = vmul.f32 0.5, %v3563_v11 }
 0x17e   : > { %2601 = verf.f32 %v717_v23  ;;  %v718_v40 = vmul.f32 0.70710677, %v3610_v0  ;;  %v3623_v29 = vadd.f32 %v641_v27, %v3441_v57  ;;  %v805_v30 = vmul.f32 %v773_v48, %v677_v14  ;;  %1362 = vmatpush1.msra.mxu1 %v3373_v35  ;;  %2296 = vmatpush3.msra.mxu0 %v3618_v3 }
 0x17f   : > { %v2590_v46 = vpop.eup %2589  ;;  %v645_v22 = vpop.f32.mrf.mxu0  ;;  %v774_v24 = vadd.f32 1.0, %v2588_v53  ;;  %1363 = vmatprep.subr.mxu1 %v3376_v37  ;;  %v679_v35 = vmul.f32 0.5, %v3543_v52  ;;  %2297 = vmatprep.subr.mxu0 %v3634_v33 }
 0x180   : > { %2603 = verf.f32 %v718_v40  ;;  %v719_v31 = vmul.f32 0.70710677, %v3623_v29  ;;  %v3630_v61 = vadd.f32 %v645_v22, %v3437_v56  ;;  %939 = vmatprep.mubr.f32.mxu1 %v805_v30  ;;  %v775_v18 = vadd.f32 1.0, %v2590_v46  ;;  %1364 = vmatpush1.msra.mxu1 %v3379_v39 }
 0x181   : > { %v2592_v10 = vpop.eup %2591  ;;  %v647_v4 = vpop.f32.mrf.mxu0  ;;  %940 = vmatmul.mubr.f32.gmra.mxu1 %v804_v16  ;;  %1365 = vmatprep.subr.mxu1 %v3382_v41  ;;  %v806_v52 = vmul.f32 %v774_v24, %v678_v36  ;;  %v683_v22 = vmul.f32 0.5, %v3583_v15  ;;  %v684_v15 = vmul.f32 0.5, %v3590_v26 }
 0x182   : > { %2605 = verf.f32 %v719_v31  ;;  %v720_v63 = vmul.f32 0.70710677, %v3630_v61  ;;  %v3643_v37 = vadd.f32 %v647_v4, %v3441_v57  ;;  %v807_v60 = vmul.f32 %v775_v18, %v679_v35  ;;  %1366 = vmatpush1.msra.mxu1 %v3385_v43  ;;  %2298 = vmatpush3.msra.mxu0 %v3639_v1 }
 0x183   : > { %v2594_v6 = vpop.eup %2593  ;;  %v651_v59 = vpop.f32.mrf.mxu0  ;;  %v776_v12 = vadd.f32 1.0, %v2592_v10  ;;  %1367 = vmatprep.subr.mxu1 %v3388_v45  ;;  %v680_v43 = vmul.f32 0.5, %v3550_v42  ;;  %v682_v42 = vmul.f32 0.5, %v3570_v38  ;;  %v685_v10 = vmul.f32 0.5, %v3603_v19 }
 0x184   : > { %2607 = verf.f32 %v720_v63  ;;  %v721_v39 = vmul.f32 0.70710677, %v3643_v37  ;;  %v3650_v62 = vadd.f32 %v651_v59, %v3437_v56  ;;  %945 = vmatprep.mubr.f32.mxu1 %v807_v60  ;;  %v777_v7 = vadd.f32 1.0, %v2594_v6  ;;  %1368 = vmatpush1.msra.mxu1 %v3391_v47 }
 0x185   : > { %v2596_v41 = vpop.eup %2595  ;;  %v653_v23 = vpop.f32.mrf.mxu0  ;;  %946 = vmatmul.mubr.f32.gmra.mxu1 %v806_v52  ;;  %2439 = vmatprep.subr.mxu1 %v3481_v49  ;;  %v808_v46 = vmul.f32 %v776_v12, %v680_v43  ;;  %v687_v60 = vmul.f32 0.5, %v3623_v29 }
 0x186   : > { %2609 = verf.f32 %v721_v39  ;;  %v722_v53 = vmul.f32 0.70710677, %v3650_v62  ;;  %v654_v14 = vadd.f32 %v653_v23, %v3441_v57  ;;  %v809_v48 = vmul.f32 %v777_v7, %v681_v28 }
 0x187   : > { %v2598_v45 = vpop.eup %2597  ;;  %v657_v27 = vpop.f32.mrf.mxu0  ;;  %v778_v8 = vadd.f32 1.0, %v2596_v41  ;;  %v686_v41 = vmul.f32 0.5, %v3610_v0  ;;  %v689_v7 = vmul.f32 0.5, %v3643_v37 }
 0x188   : > { %2611 = verf.f32 %v722_v53  ;;  %v723_v11 = vmul.f32 0.70710677, %v654_v14  ;;  %v658_v40 = vadd.f32 %v657_v27, %v3437_v56  ;;  %951 = vmatprep.mubr.f32.mxu1 %v809_v48  ;;  %v779_v24 = vadd.f32 1.0, %v2598_v45 }
 0x189   : > { %v2600_v47 = vpop.eup %2599  ;;  %v659_v30 = vpop.f32.mrf.mxu0  ;;  %952 = vmatmul.mubr.f32.gmra.mxu1 %v808_v46  ;;  %v810_v35 = vmul.f32 %v778_v8, %v682_v42  ;;  %v688_v27 = vmul.f32 0.5, %v3630_v61  ;;  %v691_v8 = vmul.f32 0.5, %v654_v14  ;;  %v690_v42 = vmul.f32 0.5, %v3650_v62  ;;  %v1321_v62 = vld [vmem:[%s3285_s18 + $0x80] sm:$0xff] }
 0x18a   : > { %2613 = verf.f32 %v723_v11  ;;  %v724_v31 = vmul.f32 0.70710677, %v658_v40  ;;  %v660_v49 = vadd.f32 %v659_v30, %v3441_v57  ;;  %v811_v36 = vmul.f32 %v779_v24, %v683_v22 }
 0x18b   : > { %v2602_v16 = vpop.eup %2601  ;;  %v780_v63 = vadd.f32 1.0, %v2600_v47 }
 0x18c   : > { %2615 = verf.f32 %v724_v31  ;;  %v725_v4 = vmul.f32 0.70710677, %v660_v49  ;;  %v781_v18 = vadd.f32 1.0, %v2602_v16  ;;  %957 = vmatprep.mubr.f32.mxu1 %v811_v36  ;;  %v693_v30 = vmul.f32 0.5, %v660_v49  ;;  %v2811_v49 = vld [vmem:[#allocation7 + $0xf8] sm:$0xff] }
 0x18d   : > { %v2604_v38 = vpop.eup %2603  ;;  %958 = vmatmul.mubr.f32.gmra.mxu1 %v810_v35  ;;  %v812_v52 = vmul.f32 %v780_v63, %v684_v15  ;;  %v692_v16 = vmul.f32 0.5, %v658_v40  ;;  %v4305_v36 = vmov 0.0   ;;  %v1322_v35 = vld [vmem:[%s3285_s18 + $0x88] sm:$0xff]  ;;  %v1323_v40 = vld [vmem:[%s3285_s18 + $0x90] sm:$0xff]  ;;  %v1333_v63 = vld [vmem:[%s3285_s18 + $0xe0] sm:$0xff] }
 0x18e   : > { %2617 = verf.f32 %v725_v4  ;;  %v813_v6 = vmul.f32 %v781_v18, %v685_v10  ;;  %v782_v19 = vadd.f32 1.0, %v2604_v38  ;;  %v1331_v4 = vld [vmem:[%s3285_s18 + $0xd0] sm:$0xff]  ;;  %v1332_v18 = vld [vmem:[%s3285_s18 + $0xd8] sm:$0xff]  ;;  %v1334_v38 = vld [vmem:[%s3285_s18 + $0xe8] sm:$0xff] }
 0x18f   : > { %v2606_v59 = vpop.eup %2605  ;;  %v1335_v15 = vld [vmem:[%s3285_s18 + $0xf0] sm:$0xff] }
 0x190   : > { %963 = vmatprep.mubr.f32.mxu1 %v813_v6  ;;  %v783_v39 = vadd.f32 1.0, %v2606_v59  ;;  %v814_v26 = vmul.f32 %v782_v19, %v686_v41  ;;  %v1336_v6 = vld [vmem:[%s3285_s18 + $0xf8] sm:$0xff]  ;;  %v472_v59 = vld [vmem:[%s4271_s4] sm:$0x3] }
 0x191   : > { %v2608_v12 = vpop.eup %2607  ;;  %964 = vmatmul.mubr.f32.gmra.mxu1 %v812_v52 }
 0x192   : > { %v815_v28 = vmul.f32 %v783_v39, %v687_v60  ;;  %v784_v53 = vadd.f32 1.0, %v2608_v12  ;;  %v4306_v60 = vld [vmem:[#allocation15_spill] sm:$0xff] }
 0x193   : > { %v2610_v23 = vpop.eup %2609  ;;  %v4307_v52 = vsub.s32 0, %v4306_v60  ;;  %v4308_v19 = vsub.s32 1, %v4306_v60 }
 0x194   : > { %969 = vmatprep.mubr.f32.mxu1 %v815_v28  ;;  %v785_v43 = vadd.f32 1.0, %v2610_v23  ;;  %v816_v11 = vmul.f32 %v784_v53, %v688_v27 }
 0x195   : > { %v2612_v45 = vpop.eup %2611  ;;  %970 = vmatmul.mubr.f32.gmra.mxu1 %v814_v26  ;;  %v3727_v39 = vrot.slane %v472_v59, %v4307_v52  ;;  %v3731_v12 = vrot.slane %v472_v59, %v4308_v19  ;;  %v2812_v59 = vld [vmem:[#allocation7 + $0xf0] sm:$0xff]  ;;  %v2813_v52 = vld [vmem:[#allocation7 + $0xe8] sm:$0xff] }
 0x196   : > { %v817_v29 = vmul.f32 %v785_v43, %v689_v7  ;;  %v786_v0 = vadd.f32 1.0, %v2612_v45 }
 0x197   : > { %v2614_v48 = vpop.eup %2613 }
 0x198   : > { %975 = vmatprep.mubr.f32.mxu1 %v817_v29  ;;  %v787_v46 = vadd.f32 1.0, %v2614_v48  ;;  %v818_v24 = vmul.f32 %v786_v0, %v690_v42 }
 0x199   : > { %v2616_v47 = vpop.eup %2615  ;;  %976 = vmatmul.mubr.f32.gmra.mxu1 %v816_v11 }
 0x19a   : > { %v819_v37 = vmul.f32 %v787_v46, %v691_v8  ;;  %v788_v31 = vadd.f32 1.0, %v2616_v47 }
 0x19b   : > { %v2618_v22 = vpop.eup %2617 }
 0x19c   : > { %981 = vmatprep.mubr.f32.mxu1 %v819_v37  ;;  %v789_v61 = vadd.f32 1.0, %v2618_v22  ;;  %v820_v10 = vmul.f32 %v788_v31, %v692_v16 }
 0x19d   : > { %982 = vmatmul.mubr.f32.gmra.mxu1 %v818_v24 }
 0x19e   : > { %v821_v14 = vmul.f32 %v789_v61, %v693_v30 }
 0x1a0   : > { %987 = vmatprep.mubr.f32.mxu1 %v821_v14 }
 0x1a1   : > { %988 = vmatmul.mubr.f32.gmra.mxu1 %v820_v10 }
 0x1a2   : > { %1401 = vmatprep.mubr.f32.mxu1 %v4305_v36 }
 0x1a5   : > { %1402 = vmatmul.mubr.f32.vlgmr.msra.gmra.mxu1 %v1321_v62 }
 0x1a6   : > { %1407 = vmatprep.mubr.f32.mxu1 %v4305_v36  ;;  %2455 = vmatpush3.msra.mxu1 %v3483_v50  ;;  %v1324_v50 = vld [vmem:[%s3285_s18 + $0x98] sm:$0xff] }
 0x1a7   : > { %2440 = vmatprep.subr.mxu1 %v3485_v54  ;;  %v1325_v54 = vld [vmem:[%s3285_s18 + $0xa0] sm:$0xff] }
 0x1a8   : > { %2456 = vmatpush3.msra.mxu1 %v3488_v58  ;;  %v460_v58 = vld [vmem:[#allocation8 + $0xa8] sm:$0xff] }
 0x1a9   : > { %1408 = vmatmul.mubr.f32.gmra.mxu1 %v1322_v35  ;;  %2441 = vmatprep.subr.mxu1 %v3495_v34  ;;  %v444_v34 = vld [vmem:[#allocation8 + $0x28] sm:$0xff] }
 0x1aa   : > { %1413 = vmatprep.mubr.f32.mxu1 %v4305_v36  ;;  %2457 = vmatpush3.msra.mxu1 %v3498_v32  ;;  %v459_v32 = vld [vmem:[#allocation8 + $0xa0] sm:$0xff] }
 0x1ab   : > { %2442 = vmatprep.subr.mxu1 %v3514_v55  ;;  %2299 = vmatprep.subr.mxu0 %v460_v58  ;;  %v443_v55 = vld [vmem:[#allocation8 + $0x20] sm:$0xff] }
 0x1ac   : > { %2458 = vmatpush3.msra.mxu1 %v3519_v44  ;;  %2300 = vmatpush3.msra.mxu0 %v444_v34  ;;  %v1326_v44 = vld [vmem:[%s3285_s18 + $0xa8] sm:$0xff] }
 0x1ad   : > { %1414 = vmatmul.mubr.f32.gmra.mxu1 %v1323_v40  ;;  %2443 = vmatprep.subr.mxu1 %v3534_v5  ;;  %v458_v5 = vld [vmem:[#allocation8 + $0x98] sm:$0xff] }
 0x1ae   : > { %1419 = vmatprep.mubr.f32.mxu1 %v4305_v36  ;;  %2459 = vmatpush3.msra.mxu1 %v3538_v2  ;;  %v442_v2 = vld [vmem:[#allocation8 + $0x18] sm:$0xff] }
 0x1af   : > { %2444 = vmatprep.subr.mxu1 %v3554_v9  ;;  %2301 = vmatprep.subr.mxu0 %v459_v32  ;;  %v457_v9 = vld [vmem:[#allocation8 + $0x90] sm:$0xff] }
 0x1b0   : > { %2460 = vmatpush3.msra.mxu1 %v3559_v20  ;;  %2302 = vmatpush3.msra.mxu0 %v443_v55  ;;  %v441_v20 = vld [vmem:[#allocation8 + $0x10] sm:$0xff] }
 0x1b1   : > { %1420 = vmatmul.mubr.f32.gmra.mxu1 %v1324_v50  ;;  %2445 = vmatprep.subr.mxu1 %v3574_v13  ;;  %v1327_v13 = vld [vmem:[%s3285_s18 + $0xb0] sm:$0xff] }
 0x1b2   : > { %1425 = vmatprep.mubr.f32.mxu1 %v4305_v36  ;;  %2461 = vmatpush3.msra.mxu1 %v3578_v21  ;;  %v456_v21 = vld [vmem:[#allocation8 + $0x88] sm:$0xff] }
 0x1b3   : > { %2446 = vmatprep.subr.mxu1 %v3594_v17  ;;  %2303 = vmatprep.subr.mxu0 %v458_v5  ;;  %v440_v17 = vld [vmem:[#allocation8 + $0x8] sm:$0xff] }
 0x1b4   : > { %2462 = vmatpush3.msra.mxu1 %v3599_v51  ;;  %2304 = vmatpush3.msra.mxu0 %v442_v2  ;;  %v455_v51 = vld [vmem:[#allocation8 + $0x80] sm:$0xff] }
 0x1b5   : > { %1426 = vmatmul.mubr.f32.gmra.mxu1 %v1325_v54  ;;  %2447 = vmatprep.subr.mxu1 %v3614_v25  ;;  %v1328_v25 = vld [vmem:[%s3285_s18 + $0xb8] sm:$0xff] }
 0x1b6   : > { %1431 = vmatprep.mubr.f32.mxu1 %v4305_v36  ;;  %2463 = vmatpush3.msra.mxu1 %v3618_v3  ;;  %v439_v3 = vld [vmem:[#allocation8] sm:$0xff] }
 0x1b7   : > { %2305 = vmatprep.subr.mxu0 %v457_v9  ;;  %2448 = vmatprep.subr.mxu1 %v3634_v33  ;;  %v1329_v33 = vld [vmem:[%s3285_s18 + $0xc0] sm:$0xff] }
 0x1b8   : > { %2306 = vmatpush3.msra.mxu0 %v441_v20  ;;  %2464 = vmatpush3.msra.mxu1 %v3639_v1  ;;  %v1330_v1 = vld [vmem:[%s3285_s18 + $0xc8] sm:$0xff]  ;;  %s3013_s18 = scalar_lea.vmem %s4223_s22, 4096 }
 0x1b9   : > { %1432 = vmatmul.mubr.f32.gmra.mxu1 %v1326_v44  ;;  %2307 = vmatprep.subr.mxu0 %v456_v21  ;;  %p3014_p4 = scmp.ne.s32.totalorder %s4223_s22, %s3013_s18  ;;  %p3021_p0 = scmp.lt.s32.totalorder %s3019_s9, %s3013_s18 }
 0x1ba   : > { %1437 = vmatprep.mubr.f32.mxu1 %v4305_v36  ;;  %2308 = vmatpush3.msra.mxu0 %v440_v17 }
 0x1bb   : > { %2309 = vmatprep.subr.mxu0 %v455_v51  ;;  %2449 = vmatprep.subr.mxu1 %v460_v58  ;;  %p3015_p11 = pnand %p3014_p4, %p4309_p6  ;;  %p3022_p7 = por %p3021_p0, %p3020_p3 }
 0x1bc   : > { %2310 = vmatpush3.msra.mxu0 %v439_v3  ;;  %2465 = vmatpush3.msra.mxu1 %v444_v34 }
 0x1bd   : > { %1438 = vmatmul.mubr.f32.gmra.mxu1 %v1327_v13  ;;  %1658 = vmatprep.subr.mxu0 %v2811_v49  ;;  %p3016_p13 = pneg %p3015_p11 }
 0x1be   : > { %1443 = vmatprep.mubr.f32.mxu1 %v4305_v36  ;;  %2450 = vmatprep.subr.mxu1 %v459_v32 }
 0x1bf   : > { %2466 = vmatpush3.msra.mxu1 %v443_v55  ;;  %p3023_p9 = pnand %p3022_p7, %p3016_p13 }
 0x1c0   : > { %2451 = vmatprep.subr.mxu1 %v458_v5 }
 0x1c1   : > { %1444 = vmatmul.mubr.f32.gmra.mxu1 %v1328_v25 }
 0x1c2   : > { %1449 = vmatprep.mubr.f32.mxu1 %v4305_v36  ;;  %2467 = vmatpush3.msra.mxu1 %v442_v2 }
 0x1c3   : > { %2452 = vmatprep.subr.mxu1 %v457_v9 }
 0x1c4   : > { %2468 = vmatpush3.msra.mxu1 %v441_v20 }
 0x1c5   : > { %1450 = vmatmul.mubr.f32.gmra.mxu1 %v1329_v33  ;;  %2453 = vmatprep.subr.mxu1 %v456_v21 }
 0x1c6   : > { %1455 = vmatprep.mubr.f32.mxu1 %v4305_v36  ;;  %2469 = vmatpush3.msra.mxu1 %v440_v17 }
 0x1c7   : > { %2454 = vmatprep.subr.mxu1 %v455_v51 }
 0x1c8   : > { %2470 = vmatpush3.msra.mxu1 %v439_v3 }
 0x1c9   : > { %1456 = vmatmul.mubr.f32.gmra.mxu1 %v1330_v1 }
 0x1ca   : > { %1461 = vmatprep.mubr.f32.mxu1 %v4305_v36 }
 0x1cd   : > { %1462 = vmatmul.mubr.f32.gmra.mxu1 %v1331_v4 }
 0x1ce   : > { %1467 = vmatprep.mubr.f32.mxu1 %v4305_v36 }
 0x1d1   : > { %1468 = vmatmul.mubr.f32.gmra.mxu1 %v1332_v18 }
 0x1d2   : > { %1473 = vmatprep.mubr.f32.mxu1 %v4305_v36 }
 0x1d5   : > { %1474 = vmatmul.mubr.f32.gmra.mxu1 %v1333_v63 }
 0x1d6   : > { %1479 = vmatprep.mubr.f32.mxu1 %v4305_v36 }
 0x1d9   : > { %1480 = vmatmul.mubr.f32.gmra.mxu1 %v1334_v38 }
 0x1da   : > { %1485 = vmatprep.mubr.f32.mxu1 %v4305_v36 }
 0x1dd   : > { %1486 = vmatmul.mubr.f32.gmra.mxu1 %v1335_v15 }
 0x1de   : > { %1491 = vmatprep.mubr.f32.mxu1 %v4305_v36 }
 0x1e1   : > { %1492 = vmatmul.mubr.f32.gmra.mxu1 %v1336_v6 }
 0x225   : > { %v899_v41 = vpop.f32.mrf.mxu1 }
 0x226   : > { %v900_v28 = vadd.f32 %v899_v41, %v3727_v39 }
 0x227   : > { %v901_v23 = vpop.f32.mrf.mxu1 }
 0x228   : > { %v1026_v7 = vmul.f32 0.70710677, %v900_v28  ;;  %v902_v26 = vadd.f32 %v901_v23, %v3731_v12  ;;  %v994_v5 = vmul.f32 0.5, %v900_v28 }
 0x229   : > { %v905_v43 = vpop.f32.mrf.mxu1 }
 0x22a   : > { %2619 = verf.f32 %v1026_v7  ;;  %v1027_v53 = vmul.f32 0.70710677, %v902_v26  ;;  %v906_v45 = vadd.f32 %v905_v43, %v3727_v39  ;;  %v995_v34 = vmul.f32 0.5, %v902_v26  ;;  %v2814_v26 = vld [vmem:[#allocation7 + $0xe0] sm:$0xff] }
 0x22b   : > { %v907_v27 = vpop.f32.mrf.mxu1 }
 0x22c   : > { %2621 = verf.f32 %v1027_v53  ;;  %v1028_v29 = vmul.f32 0.70710677, %v906_v45  ;;  %v908_v48 = vadd.f32 %v907_v27, %v3731_v12  ;;  %v996_v38 = vmul.f32 0.5, %v906_v45 }
 0x22d   : > { %v911_v8 = vpop.f32.mrf.mxu1 }
 0x22e   : > { %2623 = verf.f32 %v1028_v29  ;;  %v1029_v11 = vmul.f32 0.70710677, %v908_v48  ;;  %v3738_v46 = vadd.f32 %v911_v8, %v3727_v39  ;;  %v997_v4 = vmul.f32 0.5, %v908_v48  ;;  %v2815_v29 = vld [vmem:[#allocation7 + $0xd8] sm:$0xff] }
 0x22f   : > { %v913_v0 = vpop.f32.mrf.mxu1 }
 0x230   : > { %2625 = verf.f32 %v1029_v11  ;;  %v1030_v47 = vmul.f32 0.70710677, %v3738_v46  ;;  %v3742_v42 = vadd.f32 %v913_v0, %v3731_v12  ;;  %v998_v45 = vmul.f32 0.5, %v3738_v46 }
 0x231   : > { %v917_v37 = vpop.f32.mrf.mxu1 }
 0x232   : > { %2627 = verf.f32 %v1030_v47  ;;  %v1031_v22 = vmul.f32 0.70710677, %v3742_v42  ;;  %v3746_v30 = vadd.f32 %v917_v37, %v3727_v39  ;;  %v999_v27 = vmul.f32 0.5, %v3742_v42  ;;  %v2816_v37 = vld [vmem:[#allocation7 + $0xd0] sm:$0xff] }
 0x233   : > { %v919_v24 = vpop.f32.mrf.mxu1 }
 0x234   : > { %2629 = verf.f32 %v1031_v22  ;;  %v1032_v61 = vmul.f32 0.70710677, %v3746_v30  ;;  %v3750_v31 = vadd.f32 %v919_v24, %v3731_v12 }
 0x235   : > { %v923_v16 = vpop.f32.mrf.mxu1 }
 0x236   : > { %2631 = verf.f32 %v1032_v61  ;;  %v1033_v14 = vmul.f32 0.70710677, %v3750_v31  ;;  %v3754_v10 = vadd.f32 %v923_v16, %v3727_v39  ;;  %v2817_v61 = vld [vmem:[#allocation7 + $0xc8] sm:$0xff] }
 0x237   : > { %v2620_v36 = vpop.eup %2619  ;;  %v925_v62 = vpop.f32.mrf.mxu1 }
 0x238   : > { %2633 = verf.f32 %v1033_v14  ;;  %v1034_v35 = vmul.f32 0.70710677, %v3754_v10  ;;  %v1090_v50 = vadd.f32 1.0, %v2620_v36  ;;  %v3758_v54 = vadd.f32 %v925_v62, %v3731_v12 }
 0x239   : > { %v2622_v40 = vpop.eup %2621  ;;  %v929_v58 = vpop.f32.mrf.mxu1  ;;  %v1001_v62 = vmul.f32 0.5, %v3750_v31 }
 0x23a   : > { %2635 = verf.f32 %v1034_v35  ;;  %v3761_v32 = vadd.f32 %v929_v58, %v3727_v39  ;;  %v1091_v55 = vadd.f32 1.0, %v2622_v40  ;;  %v1035_v2 = vmul.f32 0.70710677, %v3758_v54  ;;  %v2818_v35 = vld [vmem:[#allocation7 + $0xc0] sm:$0xff] }
 0x23b   : > { %v2624_v44 = vpop.eup %2623  ;;  %v931_v9 = vpop.f32.mrf.mxu1  ;;  %v1122_v51 = vmul.f32 %v1090_v50, %v994_v5  ;;  %v1000_v58 = vmul.f32 0.5, %v3746_v30  ;;  %v2820_v5 = vld [vmem:[#allocation7 + $0xb0] sm:$0xff] }
 0x23c   : > { %v1036_v20 = vmul.f32 0.70710677, %v3761_v32  ;;  %v3766_v13 = vadd.f32 %v931_v9, %v3731_v12  ;;  %v1123_v21 = vmul.f32 %v1091_v55, %v995_v34  ;;  %2637 = verf.f32 %v1035_v2  ;;  %v2819_v55 = vld [vmem:[#allocation7 + $0xb8] sm:$0xff] }
 0x23d   : > { %v2626_v17 = vpop.eup %2625  ;;  %v935_v25 = vpop.f32.mrf.mxu1  ;;  %v1092_v33 = vadd.f32 1.0, %v2624_v44 }
 0x23e   : > { %2639 = verf.f32 %v1036_v20  ;;  %v1037_v3 = vmul.f32 0.70710677, %v3766_v13  ;;  %v3770_v49 = vadd.f32 %v935_v25, %v3727_v39  ;;  %1224 = vmatprep.mubr.f32.mxu0 %v1123_v21  ;;  %v1093_v63 = vadd.f32 1.0, %v2626_v17  ;;  %v2821_v17 = vld [vmem:[#allocation7 + $0xa8] sm:$0xff] }
 0x23f   : > { %v2628_v1 = vpop.eup %2627  ;;  %v937_v18 = vpop.f32.mrf.mxu1  ;;  %1225 = vmatmul.mubr.f32.vlgmr.msra.gmra.mxu0 %v1122_v51  ;;  %v1124_v43 = vmul.f32 %v1092_v33, %v996_v38  ;;  %v1003_v33 = vmul.f32 0.5, %v3758_v54  ;;  %v2823_v38 = vld [vmem:[#allocation7 + $0x98] sm:$0xff] }
 0x240   : > { %2641 = verf.f32 %v1037_v3  ;;  %v1038_v15 = vmul.f32 0.70710677, %v3770_v49  ;;  %v3774_v6 = vadd.f32 %v937_v18, %v3731_v12  ;;  %1659 = vmatpush1.msra.mxu0 %v2812_v59  ;;  %v1125_v41 = vmul.f32 %v1093_v63, %v997_v4 }
 0x241   : > { %v2630_v60 = vpop.eup %2629  ;;  %1660 = vmatprep.subr.mxu0 %v2813_v52  ;;  %v941_v19 = vpop.f32.mrf.mxu1  ;;  %v1094_v28 = vadd.f32 1.0, %v2628_v1  ;;  %v1002_v3 = vmul.f32 0.5, %v3754_v10  ;;  %v2822_v1 = vld [vmem:[#allocation7 + $0xa0] sm:$0xff] }
 0x242   : > { %2643 = verf.f32 %v1038_v15  ;;  %v1039_v23 = vmul.f32 0.70710677, %v3774_v6  ;;  %v3778_v7 = vadd.f32 %v941_v19, %v3727_v39  ;;  %1661 = vmatpush1.msra.mxu0 %v2814_v26  ;;  %1229 = vmatprep.mubr.f32.mxu0 %v1125_v41  ;;  %v1095_v8 = vadd.f32 1.0, %v2630_v60  ;;  %v2824_v60 = vld [vmem:[#allocation7 + $0x90] sm:$0xff]  ;;  %v2825_v41 = vld [vmem:[#allocation7 + $0x88] sm:$0xff] }
 0x243   : > { %v2632_v53 = vpop.eup %2631  ;;  %1662 = vmatprep.subr.mxu0 %v2815_v29  ;;  %v943_v48 = vpop.f32.mrf.mxu1  ;;  %1230 = vmatmul.mubr.f32.gmra.mxu0 %v1124_v43  ;;  %v1126_v46 = vmul.f32 %v1094_v28, %v998_v45  ;;  %v1005_v43 = vmul.f32 0.5, %v3766_v13  ;;  %v1004_v29 = vmul.f32 0.5, %v3761_v32 }
 0x244   : > { %2645 = verf.f32 %v1039_v23  ;;  %v1040_v11 = vmul.f32 0.70710677, %v3778_v7  ;;  %v3784_v0 = vadd.f32 %v943_v48, %v3731_v12  ;;  %1663 = vmatpush1.msra.mxu0 %v2816_v37  ;;  %v1127_v24 = vmul.f32 %v1095_v8, %v999_v27  ;;  %v2827_v8 = vld [vmem:[#allocation7 + $0x78] sm:$0xff]  ;;  %v2828_v37 = vld [vmem:[#allocation7 + $0x70] sm:$0xff] }
 0x245   : > { %v2634_v47 = vpop.eup %2633  ;;  %v947_v22 = vpop.f32.mrf.mxu1  ;;  %1664 = vmatprep.subr.mxu0 %v2817_v61  ;;  %v1096_v14 = vadd.f32 1.0, %v2632_v53  ;;  %v2826_v53 = vld [vmem:[#allocation7 + $0x80] sm:$0xff] }
 0x246   : > { %2647 = verf.f32 %v1040_v11  ;;  %v1041_v42 = vmul.f32 0.70710677, %v3784_v0  ;;  %v3788_v16 = vadd.f32 %v947_v22, %v3727_v39  ;;  %1665 = vmatpush1.msra.mxu0 %v2818_v35  ;;  %1234 = vmatprep.mubr.f32.mxu0 %v1127_v24  ;;  %v1097_v50 = vadd.f32 1.0, %v2634_v47  ;;  %v2830_v35 = vld [vmem:[#allocation7 + $0x60] sm:$0xff] }
 0x247   : > { %v2636_v36 = vpop.eup %2635  ;;  %v949_v40 = vpop.f32.mrf.mxu1  ;;  %1666 = vmatprep.subr.mxu0 %v2819_v55  ;;  %1235 = vmatmul.mubr.f32.gmra.mxu0 %v1126_v46  ;;  %v1128_v51 = vmul.f32 %v1096_v14, %v1000_v58 }
 0x248   : > { %2649 = verf.f32 %v1041_v42  ;;  %v1042_v34 = vmul.f32 0.70710677, %v3788_v16  ;;  %v3794_v44 = vadd.f32 %v949_v40, %v3731_v12  ;;  %1667 = vmatpush1.msra.mxu0 %v2820_v5  ;;  %v1129_v31 = vmul.f32 %v1097_v50, %v1001_v62  ;;  %v2829_v42 = vld [vmem:[#allocation7 + $0x68] sm:$0xff] }
 0x249   : > { %v953_v2 = vpop.f32.mrf.mxu1  ;;  %v1098_v9 = vadd.f32 1.0, %v2636_v36  ;;  %v2638_v20 = vpop.eup %2637  ;;  %1668 = vmatprep.subr.mxu0 %v2821_v17  ;;  %v1006_v36 = vmul.f32 0.5, %v3770_v49  ;;  %v1007_v62 = vmul.f32 0.5, %v3774_v6 }
 0x24a   : > { %2651 = verf.f32 %v1042_v34  ;;  %v1043_v21 = vmul.f32 0.70710677, %v3794_v44  ;;  %v3798_v30 = vadd.f32 %v953_v2, %v3727_v39  ;;  %1669 = vmatpush1.msra.mxu0 %v2822_v1  ;;  %1239 = vmatprep.mubr.f32.mxu0 %v1129_v31  ;;  %v1099_v18 = vadd.f32 1.0, %v2638_v20  ;;  %v2831_v34 = vld [vmem:[#allocation7 + $0x58] sm:$0xff]  ;;  %v2832_v2 = vld [vmem:[#allocation7 + $0x50] sm:$0xff]  ;;  %v2833_v20 = vld [vmem:[#allocation7 + $0x48] sm:$0xff] }
 0x24b   : > { %v2640_v25 = vpop.eup %2639  ;;  %v955_v4 = vpop.f32.mrf.mxu1  ;;  %1670 = vmatprep.subr.mxu0 %v2823_v38  ;;  %1240 = vmatmul.mubr.f32.gmra.mxu0 %v1128_v51  ;;  %v1130_v54 = vmul.f32 %v1098_v9, %v1002_v3  ;;  %v2834_v3 = vld [vmem:[#allocation7 + $0x40] sm:$0xff] }
 0x24c   : > { %2653 = verf.f32 %v1043_v21  ;;  %v1044_v63 = vmul.f32 0.70710677, %v3798_v30  ;;  %v3804_v15 = vadd.f32 %v955_v4, %v3731_v12  ;;  %1671 = vmatpush1.msra.mxu0 %v2824_v60  ;;  %v1131_v52 = vmul.f32 %v1099_v18, %v1003_v33  ;;  %v2836_v60 = vld [vmem:[#allocation7 + $0x30] sm:$0xff] }
 0x24d   : > { %v2642_v59 = vpop.eup %2641  ;;  %v959_v10 = vpop.f32.mrf.mxu1  ;;  %1672 = vmatprep.subr.mxu0 %v2825_v41  ;;  %v1100_v23 = vadd.f32 1.0, %v2640_v25  ;;  %v1009_v25 = vmul.f32 0.5, %v3784_v0  ;;  %v1008_v4 = vmul.f32 0.5, %v3778_v7 }
 0x24e   : > { %2655 = verf.f32 %v1044_v63  ;;  %v1045_v19 = vmul.f32 0.70710677, %v3804_v15  ;;  %v3808_v28 = vadd.f32 %v959_v10, %v3727_v39  ;;  %1673 = vmatpush1.msra.mxu0 %v2826_v53  ;;  %1244 = vmatprep.mubr.f32.mxu0 %v1131_v52  ;;  %v1101_v27 = vadd.f32 1.0, %v2642_v59  ;;  %v2835_v63 = vld [vmem:[#allocation7 + $0x38] sm:$0xff]  ;;  %v2838_v53 = vld [vmem:[#allocation7 + $0x20] sm:$0xff] }
 0x24f   : > { %v2644_v26 = vpop.eup %2643  ;;  %v961_v45 = vpop.f32.mrf.mxu1  ;;  %1674 = vmatprep.subr.mxu0 %v2827_v8  ;;  %1245 = vmatmul.mubr.f32.gmra.mxu0 %v1130_v54  ;;  %v1132_v61 = vmul.f32 %v1100_v23, %v1004_v29 }
 0x250   : > { %2657 = verf.f32 %v1045_v19  ;;  %v1046_v48 = vmul.f32 0.70710677, %v3808_v28  ;;  %v3814_v11 = vadd.f32 %v961_v45, %v3731_v12  ;;  %1675 = vmatpush1.msra.mxu0 %v2828_v37  ;;  %v1133_v22 = vmul.f32 %v1101_v27, %v1005_v43  ;;  %v2837_v19 = vld [vmem:[#allocation7 + $0x28] sm:$0xff]  ;;  %v2840_v37 = vld [vmem:[#allocation7 + $0x10] sm:$0xff] }
 0x251   : > { %v2646_v47 = vpop.eup %2645  ;;  %v965_v13 = vpop.f32.mrf.mxu1  ;;  %v1102_v24 = vadd.f32 1.0, %v2644_v26  ;;  %1676 = vmatprep.subr.mxu0 %v2829_v42  ;;  %v1010_v26 = vmul.f32 0.5, %v3788_v16  ;;  %v1011_v43 = vmul.f32 0.5, %v3794_v44 }
 0x252   : > { %2659 = verf.f32 %v1046_v48  ;;  %v1047_v46 = vmul.f32 0.70710677, %v3814_v11  ;;  %v3818_v32 = vadd.f32 %v965_v13, %v3727_v39  ;;  %1677 = vmatpush1.msra.mxu0 %v2830_v35  ;;  %1249 = vmatprep.mubr.f32.mxu0 %v1133_v22  ;;  %v1103_v50 = vadd.f32 1.0, %v2646_v47  ;;  %v2839_v48 = vld [vmem:[#allocation7 + $0x18] sm:$0xff] }
 0x253   : > { %v2648_v14 = vpop.eup %2647  ;;  %v967_v40 = vpop.f32.mrf.mxu1  ;;  %1678 = vmatprep.subr.mxu0 %v2831_v34  ;;  %1250 = vmatmul.mubr.f32.gmra.mxu0 %v1132_v61  ;;  %v1134_v6 = vmul.f32 %v1102_v24, %v1006_v36  ;;  %v2841_v24 = vld [vmem:[#allocation7 + $0x8] sm:$0xff]  ;;  %v2842_v36 = vld [vmem:[#allocation7] sm:$0xff] }
 0x254   : > { %2661 = verf.f32 %v1047_v46  ;;  %v1048_v58 = vmul.f32 0.70710677, %v3818_v32  ;;  %v3824_v55 = vadd.f32 %v967_v40, %v3731_v12  ;;  %1679 = vmatpush1.msra.mxu0 %v2832_v2  ;;  %v1135_v31 = vmul.f32 %v1103_v50, %v1007_v62  ;;  %v2844_v2 = vld [vmem:[#allocation7 + $0x1f0] sm:$0xff] }
 0x255   : > { %v2650_v5 = vpop.eup %2649  ;;  %v971_v49 = vpop.f32.mrf.mxu1  ;;  %1680 = vmatprep.subr.mxu0 %v2833_v20  ;;  %v1104_v17 = vadd.f32 1.0, %v2648_v14  ;;  %v1013_v14 = vmul.f32 0.5, %v3804_v15  ;;  %v1012_v40 = vmul.f32 0.5, %v3798_v30 }
 0x256   : > { %2663 = verf.f32 %v1048_v58  ;;  %v1049_v9 = vmul.f32 0.70710677, %v3824_v55  ;;  %v3828_v21 = vadd.f32 %v971_v49, %v3727_v39  ;;  %1681 = vmatpush1.msra.mxu0 %v2834_v3  ;;  %1254 = vmatprep.mubr.f32.mxu0 %v1135_v31  ;;  %v1105_v1 = vadd.f32 1.0, %v2650_v5  ;;  %v2843_v58 = vld [vmem:[#allocation7 + $0x1f8] sm:$0xff]  ;;  %v2846_v3 = vld [vmem:[#allocation7 + $0x1e0] sm:$0xff] }
 0x257   : > { %v2652_v51 = vpop.eup %2651  ;;  %v973_v33 = vpop.f32.mrf.mxu1  ;;  %1682 = vmatprep.subr.mxu0 %v2835_v63  ;;  %1255 = vmatmul.mubr.f32.gmra.mxu0 %v1134_v6  ;;  %v1136_v41 = vmul.f32 %v1104_v17, %v1008_v4 }
 0x258   : > { %2665 = verf.f32 %v1049_v9  ;;  %v1050_v18 = vmul.f32 0.70710677, %v3828_v21  ;;  %v3834_v38 = vadd.f32 %v973_v33, %v3731_v12  ;;  %1683 = vmatpush1.msra.mxu0 %v2836_v60  ;;  %v1137_v10 = vmul.f32 %v1105_v1, %v1009_v25  ;;  %v2845_v9 = vld [vmem:[#allocation7 + $0x1e8] sm:$0xff]  ;;  %v2848_v60 = vld [vmem:[#allocation7 + $0x1d0] sm:$0xff] }
 0x259   : > { %v2654_v59 = vpop.eup %2653  ;;  %v977_v0 = vpop.f32.mrf.mxu1  ;;  %v1106_v52 = vadd.f32 1.0, %v2652_v51  ;;  %1684 = vmatprep.subr.mxu0 %v2837_v19  ;;  %v1014_v51 = vmul.f32 0.5, %v3808_v28  ;;  %v1015_v25 = vmul.f32 0.5, %v3814_v11 }
 0x25a   : > { %2667 = verf.f32 %v1050_v18  ;;  %v1051_v54 = vmul.f32 0.70710677, %v3834_v38  ;;  %v3838_v7 = vadd.f32 %v977_v0, %v3727_v39  ;;  %1685 = vmatpush1.msra.mxu0 %v2838_v53  ;;  %1259 = vmatprep.mubr.f32.mxu0 %v1137_v10  ;;  %v1107_v27 = vadd.f32 1.0, %v2654_v59  ;;  %v2847_v18 = vld [vmem:[#allocation7 + $0x1d8] sm:$0xff] }
 0x25b   : > { %v2656_v23 = vpop.eup %2655  ;;  %v979_v45 = vpop.f32.mrf.mxu1  ;;  %1686 = vmatprep.subr.mxu0 %v2839_v48  ;;  %1260 = vmatmul.mubr.f32.gmra.mxu0 %v1136_v41  ;;  %v1138_v44 = vmul.f32 %v1106_v52, %v1010_v26  ;;  %v2849_v52 = vld [vmem:[#allocation7 + $0x1c8] sm:$0xff]  ;;  %v2850_v26 = vld [vmem:[#allocation7 + $0x1c0] sm:$0xff] }
 0x25c   : > { %2669 = verf.f32 %v1051_v54  ;;  %v1052_v29 = vmul.f32 0.70710677, %v3838_v7  ;;  %v3844_v8 = vadd.f32 %v979_v45, %v3731_v12  ;;  %1687 = vmatpush1.msra.mxu0 %v2840_v37  ;;  %v1139_v13 = vmul.f32 %v1107_v27, %v1011_v43  ;;  %v2852_v37 = vld [vmem:[#allocation7 + $0x1b0] sm:$0xff] }
 0x25d   : > { %v2658_v47 = vpop.eup %2657  ;;  %v983_v16 = vpop.f32.mrf.mxu1  ;;  %1688 = vmatprep.subr.mxu0 %v2841_v24  ;;  %v1108_v42 = vadd.f32 1.0, %v2656_v23  ;;  %v1017_v23 = vmul.f32 0.5, %v3824_v55  ;;  %v1016_v45 = vmul.f32 0.5, %v3818_v32 }
 0x25e   : > { %2671 = verf.f32 %v1052_v29  ;;  %v1053_v22 = vmul.f32 0.70710677, %v3844_v8  ;;  %v3848_v46 = vadd.f32 %v983_v16, %v3727_v39  ;;  %1689 = vmatpush1.msra.mxu0 %v2842_v36  ;;  %1264 = vmatprep.mubr.f32.mxu0 %v1139_v13  ;;  %v1109_v35 = vadd.f32 1.0, %v2658_v47  ;;  %v2851_v29 = vld [vmem:[#allocation7 + $0x1b8] sm:$0xff]  ;;  %v2854_v36 = vld [vmem:[#allocation7 + $0x1a0] sm:$0xff] }
 0x25f   : > { %v2660_v61 = vpop.eup %2659  ;;  %v985_v62 = vpop.f32.mrf.mxu1  ;;  %1690 = vmatprep.subr.mxu0 %v2843_v58  ;;  %1265 = vmatmul.mubr.f32.gmra.mxu0 %v1138_v44  ;;  %v1140_v20 = vmul.f32 %v1108_v42, %v1012_v40 }
 0x260   : > { %2673 = verf.f32 %v1053_v22  ;;  %v1054_v50 = vmul.f32 0.70710677, %v3848_v46  ;;  %v3854_v34 = vadd.f32 %v985_v62, %v3731_v12  ;;  %1691 = vmatpush2.msra.mxu0 %v2844_v2  ;;  %v1141_v49 = vmul.f32 %v1109_v35, %v1013_v14  ;;  %v2853_v22 = vld [vmem:[#allocation7 + $0x1a8] sm:$0xff]  ;;  %v2856_v2 = vld [vmem:[#allocation7 + $0x190] sm:$0xff] }
 0x261   : > { %v2662_v5 = vpop.eup %2661  ;;  %v989_v15 = vpop.f32.mrf.mxu1  ;;  %v1110_v31 = vadd.f32 1.0, %v2660_v61  ;;  %1692 = vmatprep.subr.mxu0 %v2845_v9  ;;  %v1018_v61 = vmul.f32 0.5, %v3828_v21  ;;  %v1019_v14 = vmul.f32 0.5, %v3834_v38 }
 0x262   : > { %2675 = verf.f32 %v1054_v50  ;;  %v1055_v6 = vmul.f32 0.70710677, %v3854_v34  ;;  %v3858_v30 = vadd.f32 %v989_v15, %v3727_v39  ;;  %1693 = vmatpush2.msra.mxu0 %v2846_v3  ;;  %1269 = vmatprep.mubr.f32.mxu0 %v1141_v49  ;;  %v1111_v1 = vadd.f32 1.0, %v2662_v5  ;;  %v2855_v50 = vld [vmem:[#allocation7 + $0x198] sm:$0xff] }
 0x263   : > { %v2664_v17 = vpop.eup %2663  ;;  %v991_v33 = vpop.f32.mrf.mxu1  ;;  %1694 = vmatprep.subr.mxu0 %v2847_v18  ;;  %1270 = vmatmul.mubr.f32.gmra.mxu0 %v1140_v20  ;;  %v1142_v11 = vmul.f32 %v1110_v31, %v1014_v51  ;;  %v2857_v31 = vld [vmem:[#allocation7 + $0x188] sm:$0xff]  ;;  %v2858_v51 = vld [vmem:[#allocation7 + $0x180] sm:$0xff] }
 0x264   : > { %2677 = verf.f32 %v1055_v6  ;;  %v1056_v4 = vmul.f32 0.70710677, %v3858_v30  ;;  %v3864_v63 = vadd.f32 %v991_v33, %v3731_v12  ;;  %1695 = vmatpush2.msra.mxu0 %v2848_v60  ;;  %v1143_v0 = vmul.f32 %v1111_v1, %v1015_v25  ;;  %v2860_v60 = vld [vmem:[#allocation7 + $0x170] sm:$0xff] }
 0x265   : > { %v2666_v59 = vpop.eup %2665  ;;  %v1403_v28 = vpop.f32.mrf.mxu1  ;;  %1696 = vmatprep.subr.mxu0 %v2849_v52  ;;  %v1112_v19 = vadd.f32 1.0, %v2664_v17  ;;  %v1021_v17 = vmul.f32 0.5, %v3844_v8  ;;  %v1020_v33 = vmul.f32 0.5, %v3838_v7 }
 0x266   : > { %2679 = verf.f32 %v1056_v4  ;;  %v1057_v10 = vmul.f32 0.70710677, %v3864_v63  ;;  %v3868_v54 = vadd.f32 %v1403_v28, %v3437_v56  ;;  %1697 = vmatpush2.msra.mxu0 %v2850_v26  ;;  %1274 = vmatprep.mubr.f32.mxu0 %v1143_v0  ;;  %v1113_v53 = vadd.f32 1.0, %v2666_v59  ;;  %v2859_v4 = vld [vmem:[#allocation7 + $0x178] sm:$0xff]  ;;  %v2862_v26 = vld [vmem:[#allocation7 + $0x160] sm:$0xff] }
 0x267   : > { %v2668_v41 = vpop.eup %2667  ;;  %v1405_v43 = vpop.f32.mrf.mxu1  ;;  %1698 = vmatprep.subr.mxu0 %v2851_v29  ;;  %1275 = vmatmul.mubr.f32.gmra.mxu0 %v1142_v11  ;;  %v1144_v24 = vmul.f32 %v1112_v19, %v1016_v45 }
 0x268   : > { %2681 = verf.f32 %v1057_v10  ;;  %v1530_v27 = vmul.f32 0.70710677, %v3868_v54  ;;  %v3874_v48 = vadd.f32 %v1405_v43, %v3441_v57  ;;  %1699 = vmatpush2.msra.mxu0 %v2852_v37  ;;  %v1145_v16 = vmul.f32 %v1113_v53, %v1017_v23  ;;  %v2861_v10 = vld [vmem:[#allocation7 + $0x168] sm:$0xff]  ;;  %v2864_v37 = vld [vmem:[#allocation7 + $0x150] sm:$0xff] }
 0x269   : > { %v2670_v47 = vpop.eup %2669  ;;  %v1409_v55 = vpop.f32.mrf.mxu1  ;;  %v1114_v13 = vadd.f32 1.0, %v2668_v41  ;;  %1700 = vmatprep.subr.mxu0 %v2853_v22  ;;  %v1022_v41 = vmul.f32 0.5, %v3848_v46  ;;  %v1023_v23 = vmul.f32 0.5, %v3854_v34 }
 0x26a   : > { %2683 = verf.f32 %v1530_v27  ;;  %v1531_v44 = vmul.f32 0.70710677, %v3874_v48  ;;  %v3878_v32 = vadd.f32 %v1409_v55, %v3437_v56  ;;  %1701 = vmatpush2.msra.mxu0 %v2854_v36  ;;  %1279 = vmatprep.mubr.f32.mxu0 %v1145_v16  ;;  %v1115_v35 = vadd.f32 1.0, %v2670_v47  ;;  %v2863_v27 = vld [vmem:[#allocation7 + $0x158] sm:$0xff] }
 0x26b   : > { %v2672_v42 = vpop.eup %2671  ;;  %v1411_v62 = vpop.f32.mrf.mxu1  ;;  %1702 = vmatprep.subr.mxu0 %v2855_v50  ;;  %1280 = vmatmul.mubr.f32.gmra.mxu0 %v1144_v24  ;;  %v1146_v38 = vmul.f32 %v1114_v13, %v1018_v61  ;;  %v2865_v13 = vld [vmem:[#allocation7 + $0x148] sm:$0xff]  ;;  %v2866_v61 = vld [vmem:[#allocation7 + $0x140] sm:$0xff] }
 0x26c   : > { %2685 = verf.f32 %v1531_v44  ;;  %v1532_v40 = vmul.f32 0.70710677, %v3878_v32  ;;  %v3884_v58 = vadd.f32 %v1411_v62, %v3441_v57  ;;  %1703 = vmatpush2.msra.mxu0 %v2856_v2  ;;  %v1147_v15 = vmul.f32 %v1115_v35, %v1019_v14 }
 0x26d   : > { %v2674_v5 = vpop.eup %2673  ;;  %v1415_v21 = vpop.f32.mrf.mxu1  ;;  %1704 = vmatprep.subr.mxu0 %v2857_v31  ;;  %v1116_v9 = vadd.f32 1.0, %v2672_v42  ;;  %v1025_v42 = vmul.f32 0.5, %v3864_v63  ;;  %v1024_v62 = vmul.f32 0.5, %v3858_v30  ;;  %v1499_v2 = vmul.f32 0.5, %v3874_v48  ;;  %v2868_v63 = vld [vmem:[#allocation7 + $0x130] sm:$0xff] }
 0x26e   : > { %2687 = verf.f32 %v1532_v40  ;;  %v1533_v49 = vmul.f32 0.70710677, %v3884_v58  ;;  %v3888_v6 = vadd.f32 %v1415_v21, %v3437_v56  ;;  %1705 = vmatpush2.msra.mxu0 %v2858_v51  ;;  %1284 = vmatprep.mubr.f32.mxu0 %v1147_v15  ;;  %v1117_v3 = vadd.f32 1.0, %v2674_v5  ;;  %v2867_v40 = vld [vmem:[#allocation7 + $0x138] sm:$0xff]  ;;  %v2870_v51 = vld [vmem:[#allocation7 + $0x120] sm:$0xff] }
 0x26f   : > { %v2676_v20 = vpop.eup %2675  ;;  %v1417_v25 = vpop.f32.mrf.mxu1  ;;  %1706 = vmatprep.subr.mxu0 %v2859_v4  ;;  %1285 = vmatmul.mubr.f32.gmra.mxu0 %v1146_v38  ;;  %v1148_v52 = vmul.f32 %v1116_v9, %v1020_v33  ;;  %v2871_v33 = vld [vmem:[#allocation7 + $0x118] sm:$0xff] }
 0x270   : > { %2689 = verf.f32 %v1533_v49  ;;  %v1534_v1 = vmul.f32 0.70710677, %v3888_v6  ;;  %v3894_v18 = vadd.f32 %v1417_v25, %v3441_v57  ;;  %1707 = vmatpush2.msra.mxu0 %v2860_v60  ;;  %v1149_v28 = vmul.f32 %v1117_v3, %v1021_v17  ;;  %v2869_v49 = vld [vmem:[#allocation7 + $0x128] sm:$0xff] }
 0x271   : > { %v2678_v59 = vpop.eup %2677  ;;  %v1421_v8 = vpop.f32.mrf.mxu1  ;;  %v1118_v0 = vadd.f32 1.0, %v2676_v20  ;;  %1708 = vmatprep.subr.mxu0 %v2861_v10  ;;  %v1498_v17 = vmul.f32 0.5, %v3868_v54 }
 0x272   : > { %2691 = verf.f32 %v1534_v1  ;;  %v1535_v11 = vmul.f32 0.70710677, %v3894_v18  ;;  %v3898_v7 = vadd.f32 %v1421_v8, %v3437_v56  ;;  %1709 = vmatpush2.msra.mxu0 %v2862_v26  ;;  %1289 = vmatprep.mubr.f32.mxu0 %v1149_v28  ;;  %v1119_v53 = vadd.f32 1.0, %v2678_v59  ;;  %v2872_v8 = vld [vmem:[#allocation7 + $0x110] sm:$0xff] }
 0x273   : > { %v2680_v19 = vpop.eup %2679  ;;  %v1423_v43 = vpop.f32.mrf.mxu1  ;;  %1710 = vmatprep.subr.mxu0 %v2863_v27  ;;  %1290 = vmatmul.mubr.f32.gmra.mxu0 %v1148_v52  ;;  %v1150_v34 = vmul.f32 %v1118_v0, %v1022_v41  ;;  %v2873_v0 = vld [vmem:[#allocation7 + $0x108] sm:$0xff]  ;;  %v2874_v41 = vld [vmem:[#allocation7 + $0x100] sm:$0xff]  ;;  %v2875_v27 = vld [vmem:[#allocation8 + $0xf8] sm:$0xff] }
 0x274   : > { %2693 = verf.f32 %v1535_v11  ;;  %v1536_v45 = vmul.f32 0.70710677, %v3898_v7  ;;  %v3904_v29 = vadd.f32 %v1423_v43, %v3441_v57  ;;  %1711 = vmatpush2.msra.mxu0 %v2864_v37  ;;  %v1151_v55 = vmul.f32 %v1119_v53, %v1023_v23 }
 0x275   : > { %v2682_v47 = vpop.eup %2681  ;;  %v1427_v46 = vpop.f32.mrf.mxu1  ;;  %1712 = vmatprep.subr.mxu0 %v2865_v13  ;;  %v1120_v22 = vadd.f32 1.0, %v2680_v19  ;;  %v1501_v19 = vmul.f32 0.5, %v3884_v58  ;;  %v1500_v43 = vmul.f32 0.5, %v3878_v32  ;;  %v2876_v58 = vld [vmem:[#allocation8 + $0x78] sm:$0xff]  ;;  %v2877_v13 = vld [vmem:[#allocation8 + $0xf0] sm:$0xff] }
 0x276   : > { %2695 = verf.f32 %v1536_v45  ;;  %v1537_v16 = vmul.f32 0.70710677, %v3904_v29  ;;  %v3908_v44 = vadd.f32 %v1427_v46, %v3437_v56  ;;  %1713 = vmatpush2.msra.mxu0 %v2866_v61  ;;  %1294 = vmatprep.mubr.f32.mxu0 %v1151_v55  ;;  %v1121_v36 = vadd.f32 1.0, %v2682_v47 }
 0x277   : > { %v2684_v24 = vpop.eup %2683  ;;  %v1429_v14 = vpop.f32.mrf.mxu1  ;;  %1714 = vmatprep.subr.mxu0 %v2867_v40  ;;  %1295 = vmatmul.mubr.f32.gmra.mxu0 %v1150_v34  ;;  %v1152_v31 = vmul.f32 %v1120_v22, %v1024_v62  ;;  %v2879_v40 = vld [vmem:[#allocation8 + $0xe8] sm:$0xff] }
 0x278   : > { %2697 = verf.f32 %v1537_v16  ;;  %v1538_v35 = vmul.f32 0.70710677, %v3908_v44  ;;  %v1594_v5 = vadd.f32 1.0, %v2684_v24  ;;  %v3915_v21 = vadd.f32 %v1429_v14, %v3441_v57  ;;  %1715 = vmatpush2.msra.mxu0 %v2868_v63  ;;  %v2880_v63 = vld [vmem:[#allocation8 + $0x68] sm:$0xff] }
 0x279   : > { %v2686_v50 = vpop.eup %2685  ;;  %v1433_v15 = vpop.f32.mrf.mxu1  ;;  %v1153_v38 = vmul.f32 %v1121_v36, %v1025_v42  ;;  %1716 = vmatprep.subr.mxu0 %v2869_v49  ;;  %v1502_v24 = vmul.f32 0.5, %v3888_v6  ;;  %v1503_v42 = vmul.f32 0.5, %v3894_v18  ;;  %v2878_v36 = vld [vmem:[#allocation8 + $0x70] sm:$0xff]  ;;  %v2881_v49 = vld [vmem:[#allocation8 + $0xe0] sm:$0xff] }
 0x27a   : > { %2699 = verf.f32 %v1538_v35  ;;  %v3918_v30 = vadd.f32 %v1433_v15, %v3437_v56  ;;  %v1595_v9 = vadd.f32 1.0, %v2686_v50  ;;  %v1539_v48 = vmul.f32 0.70710677, %v3915_v21  ;;  %1717 = vmatpush2.msra.mxu0 %v2870_v51 }
 0x27b   : > { %v2688_v20 = vpop.eup %2687  ;;  %1299 = vmatprep.mubr.f32.mxu0 %v1153_v38  ;;  %v1435_v25 = vpop.f32.mrf.mxu1  ;;  %1718 = vmatprep.subr.mxu0 %v2871_v33  ;;  %v1626_v60 = vmul.f32 %v1594_v5, %v1498_v17  ;;  %v1504_v51 = vmul.f32 0.5, %v3898_v7  ;;  %v2883_v33 = vld [vmem:[#allocation8 + $0xd8] sm:$0xff] }
 0x27c   : > { %v1540_v3 = vmul.f32 0.70710677, %v3918_v30  ;;  %1300 = vmatmul.mubr.f32.gmra.mxu0 %v1152_v31  ;;  %v3924_v1 = vadd.f32 %v1435_v25, %v3441_v57  ;;  %v1627_v4 = vmul.f32 %v1595_v9, %v1499_v2  ;;  %2701 = verf.f32 %v1539_v48  ;;  %v2882_v48 = vld [vmem:[#allocation8 + $0x60] sm:$0xff] }
 0x27d   : > { %v2690_v59 = vpop.eup %2689  ;;  %1719 = vmatpush2.msra.mxu0 %v2872_v8  ;;  %v1439_v54 = vpop.f32.mrf.mxu1  ;;  %v1596_v10 = vadd.f32 1.0, %v2688_v20  ;;  %v1505_v9 = vmul.f32 0.5, %v3904_v29  ;;  %v2884_v29 = vld [vmem:[#allocation8 + $0x58] sm:$0xff] }
 0x27e   : > { %2703 = verf.f32 %v1540_v3  ;;  %v1541_v28 = vmul.f32 0.70710677, %v3924_v1  ;;  %1720 = vmatprep.subr.mxu0 %v2873_v0  ;;  %v3928_v11 = vadd.f32 %v1439_v54, %v3437_v56  ;;  %1722 = vmatprep.mubr.f32.mxu0 %v1627_v4  ;;  %v1597_v26 = vadd.f32 1.0, %v2690_v59  ;;  %v2885_v0 = vld [vmem:[#allocation8 + $0xd0] sm:$0xff] }
 0x27f   : > { %v2692_v52 = vpop.eup %2691  ;;  %1721 = vmatpush2.msra.mxu0 %v2874_v41  ;;  %v1441_v23 = vpop.f32.mrf.mxu1  ;;  %v1628_v16 = vmul.f32 %v1596_v10, %v1500_v43 }
 0x280   : > { %2705 = verf.f32 %v1541_v28  ;;  %v1542_v53 = vmul.f32 0.70710677, %v3928_v11  ;;  %v3934_v45 = vadd.f32 %v1441_v23, %v3441_v57  ;;  %1723 = vmatmul.mubr.f32.vlgmr.msra.gmra.mxu0 %v1626_v60  ;;  %2359 = vmatprep.subr.mxu0 %v2875_v27  ;;  %v1629_v46 = vmul.f32 %v1597_v26, %v1501_v19  ;;  %v2886_v26 = vld [vmem:[#allocation8 + $0x50] sm:$0xff]  ;;  %v2887_v27 = vld [vmem:[#allocation8 + $0xc8] sm:$0xff] }
 0x281   : > { %v2694_v47 = vpop.eup %2693  ;;  %v1445_v37 = vpop.f32.mrf.mxu1  ;;  %v1598_v55 = vadd.f32 1.0, %v2692_v52  ;;  %2360 = vmatpush3.msra.mxu0 %v2876_v58  ;;  %v1506_v52 = vmul.f32 0.5, %v3908_v44  ;;  %v1507_v19 = vmul.f32 0.5, %v3915_v21 }
 0x282   : > { %2707 = verf.f32 %v1542_v53  ;;  %v1543_v34 = vmul.f32 0.70710677, %v3934_v45  ;;  %v3938_v32 = vadd.f32 %v1445_v37, %v3437_v56  ;;  %2361 = vmatprep.subr.mxu0 %v2877_v13  ;;  %1728 = vmatprep.mubr.f32.mxu0 %v1629_v46  ;;  %v1599_v14 = vadd.f32 1.0, %v2694_v47 }
 0x283   : > { %v2696_v22 = vpop.eup %2695  ;;  %v1447_v61 = vpop.f32.mrf.mxu1  ;;  %2362 = vmatpush3.msra.mxu0 %v2878_v36  ;;  %v1630_v6 = vmul.f32 %v1598_v55, %v1502_v24  ;;  %v2888_v55 = vld [vmem:[#allocation8 + $0x48] sm:$0xff] }
 0x284   : > { %2709 = verf.f32 %v1543_v34  ;;  %v1544_v62 = vmul.f32 0.70710677, %v3938_v32  ;;  %v3944_v35 = vadd.f32 %v1447_v61, %v3441_v57  ;;  %1729 = vmatmul.mubr.f32.gmra.mxu0 %v1628_v16  ;;  %2363 = vmatprep.subr.mxu0 %v2879_v40  ;;  %v1631_v2 = vmul.f32 %v1599_v14, %v1503_v42  ;;  %v2889_v16 = vld [vmem:[#allocation8 + $0xc0] sm:$0xff]  ;;  %v2891_v40 = vld [vmem:[#allocation8 + $0xb8] sm:$0xff] }
 0x285   : > { %v2698_v50 = vpop.eup %2697  ;;  %v1451_v5 = vpop.f32.mrf.mxu1  ;;  %2364 = vmatpush3.msra.mxu0 %v2880_v63  ;;  %v1600_v38 = vadd.f32 1.0, %v2696_v22  ;;  %v1509_v22 = vmul.f32 0.5, %v3924_v1  ;;  %v2890_v61 = vld [vmem:[#allocation8 + $0x40] sm:$0xff]  ;;  %v1508_v14 = vmul.f32 0.5, %v3918_v30 }
 0x286   : > { %2711 = verf.f32 %v1544_v62  ;;  %v1545_v18 = vmul.f32 0.70710677, %v3944_v35  ;;  %v3948_v15 = vadd.f32 %v1451_v5, %v3437_v56  ;;  %2365 = vmatprep.subr.mxu0 %v2881_v49  ;;  %1734 = vmatprep.mubr.f32.mxu0 %v1631_v2  ;;  %v1601_v17 = vadd.f32 1.0, %v2698_v50 }
 0x287   : > { %v2700_v31 = vpop.eup %2699  ;;  %v1453_v20 = vpop.f32.mrf.mxu1  ;;  %2366 = vmatpush3.msra.mxu0 %v2882_v48  ;;  %v1632_v28 = vmul.f32 %v1600_v38, %v1504_v51  ;;  %v2893_v38 = vld [vmem:[#allocation8 + $0xb0] sm:$0xff] }
 0x288   : > { %2713 = verf.f32 %v1545_v18  ;;  %v1546_v25 = vmul.f32 0.70710677, %v3948_v15  ;;  %v3954_v3 = vadd.f32 %v1453_v20, %v3441_v57  ;;  %1735 = vmatmul.mubr.f32.gmra.mxu0 %v1630_v6  ;;  %2367 = vmatprep.subr.mxu0 %v2883_v33  ;;  %v1633_v59 = vmul.f32 %v1601_v17, %v1505_v9  ;;  %v2892_v6 = vld [vmem:[#allocation8 + $0x38] sm:$0xff]  ;;  %v2894_v48 = vld [vmem:[#allocation8 + $0x30] sm:$0xff]  ;;  %v2895_v33 = vld [vmem:[#allocation8 + $0xa8] sm:$0xff] }
 0x289   : > { %v1457_v4 = vpop.f32.mrf.mxu1  ;;  %v1602_v60 = vadd.f32 1.0, %v2700_v31  ;;  %2368 = vmatpush3.msra.mxu0 %v2884_v29  ;;  %v2702_v8 = vpop.eup %2701  ;;  %v1510_v31 = vmul.f32 0.5, %v3928_v11  ;;  %v1511_v9 = vmul.f32 0.5, %v3934_v45  ;;  %v2896_v29 = vld [vmem:[#allocation8 + $0x28] sm:$0xff] }
 0x28a   : > { %2715 = verf.f32 %v1546_v25  ;;  %v1547_v54 = vmul.f32 0.70710677, %v3954_v3  ;;  %v3958_v7 = vadd.f32 %v1457_v4, %v3437_v56  ;;  %2369 = vmatprep.subr.mxu0 %v2885_v0  ;;  %1740 = vmatprep.mubr.f32.mxu0 %v1633_v59  ;;  %v1603_v23 = vadd.f32 1.0, %v2702_v8 }
 0x28b   : > { %v2704_v10 = vpop.eup %2703  ;;  %v1459_v41 = vpop.f32.mrf.mxu1  ;;  %2370 = vmatpush3.msra.mxu0 %v2886_v26  ;;  %v1634_v44 = vmul.f32 %v1602_v60, %v1506_v52 }
 0x28c   : > { %2717 = verf.f32 %v1547_v54  ;;  %v1548_v43 = vmul.f32 0.70710677, %v3958_v7  ;;  %v3964_v53 = vadd.f32 %v1459_v41, %v3441_v57  ;;  %1741 = vmatmul.mubr.f32.gmra.mxu0 %v1632_v28  ;;  %2371 = vmatprep.subr.mxu0 %v2887_v27  ;;  %v1635_v46 = vmul.f32 %v1603_v23, %v1507_v19  ;;  %v2897_v28 = vld [vmem:[#allocation8 + $0xa0] sm:$0xff]  ;;  %v2899_v27 = vld [vmem:[#allocation8 + $0x98] sm:$0xff] }
 0x28d   : > { %v2706_v47 = vpop.eup %2705  ;;  %v1463_v37 = vpop.f32.mrf.mxu1  ;;  %2372 = vmatpush3.msra.mxu0 %v2888_v55  ;;  %v1604_v34 = vadd.f32 1.0, %v2704_v10  ;;  %v1513_v10 = vmul.f32 0.5, %v3944_v35  ;;  %v2898_v41 = vld [vmem:[#allocation8 + $0x20] sm:$0xff]  ;;  %v1512_v23 = vmul.f32 0.5, %v3938_v32 }
 0x28e   : > { %2719 = verf.f32 %v1548_v43  ;;  %v1549_v21 = vmul.f32 0.70710677, %v3964_v53  ;;  %v3968_v58 = vadd.f32 %v1463_v37, %v3437_v56  ;;  %2373 = vmatprep.subr.mxu0 %v2889_v16  ;;  %1746 = vmatprep.mubr.f32.mxu0 %v1635_v46  ;;  %v1605_v42 = vadd.f32 1.0, %v2706_v47 }
 0x28f   : > { %v2708_v13 = vpop.eup %2707  ;;  %v1465_v24 = vpop.f32.mrf.mxu1  ;;  %2374 = vmatpush3.msra.mxu0 %v2890_v61  ;;  %v1636_v18 = vmul.f32 %v1604_v34, %v1508_v14  ;;  %v2901_v34 = vld [vmem:[#allocation8 + $0x90] sm:$0xff] }
 0x290   : > { %2721 = verf.f32 %v1549_v21  ;;  %v1550_v36 = vmul.f32 0.70710677, %v3968_v58  ;;  %v3974_v62 = vadd.f32 %v1465_v24, %v3441_v57  ;;  %1747 = vmatmul.mubr.f32.gmra.mxu0 %v1634_v44  ;;  %2375 = vmatprep.subr.mxu0 %v2891_v40  ;;  %v1637_v2 = vmul.f32 %v1605_v42, %v1509_v22  ;;  %v2900_v44 = vld [vmem:[#allocation8 + $0x18] sm:$0xff]  ;;  %v2902_v61 = vld [vmem:[#allocation8 + $0x10] sm:$0xff]  ;;  %v2903_v40 = vld [vmem:[#allocation8 + $0x88] sm:$0xff] }
 0x291   : > { %v2710_v50 = vpop.eup %2709  ;;  %v1469_v5 = vpop.f32.mrf.mxu1  ;;  %v1606_v1 = vadd.f32 1.0, %v2708_v13  ;;  %2376 = vmatpush3.msra.mxu0 %v2892_v6  ;;  %v1514_v13 = vmul.f32 0.5, %v3948_v15  ;;  %v1515_v22 = vmul.f32 0.5, %v3954_v3 }
 0x292   : > { %2723 = verf.f32 %v1550_v36  ;;  %v1551_v63 = vmul.f32 0.70710677, %v3974_v62  ;;  %v3978_v30 = vadd.f32 %v1469_v5, %v3437_v56  ;;  %2377 = vmatprep.subr.mxu0 %v2893_v38  ;;  %1752 = vmatprep.mubr.f32.mxu0 %v1637_v2  ;;  %v1607_v17 = vadd.f32 1.0, %v2710_v50 }
 0x293   : > { %v2712_v49 = vpop.eup %2711  ;;  %v1471_v20 = vpop.f32.mrf.mxu1  ;;  %2378 = vmatpush3.msra.mxu0 %v2894_v48  ;;  %v1638_v11 = vmul.f32 %v1606_v1, %v1510_v31  ;;  %v2904_v1 = vld [vmem:[#allocation8 + $0x8] sm:$0xff] }
 0x294   : > { %2725 = verf.f32 %v1551_v63  ;;  %v1552_v51 = vmul.f32 0.70710677, %v3978_v30  ;;  %v3984_v25 = vadd.f32 %v1471_v20, %v3441_v57  ;;  %1753 = vmatmul.mubr.f32.gmra.mxu0 %v1636_v18  ;;  %2379 = vmatprep.subr.mxu0 %v2895_v33  ;;  %v1639_v60 = vmul.f32 %v1607_v17, %v1511_v9  ;;  %v2905_v18 = vld [vmem:[#allocation8 + $0x80] sm:$0xff] }
 0x295   : > { %v2714_v4 = vpop.eup %2713  ;;  %v1475_v59 = vpop.f32.mrf.mxu1  ;;  %2380 = vmatpush3.msra.mxu0 %v2896_v29  ;;  %v1608_v54 = vadd.f32 1.0, %v2712_v49  ;;  %v1517_v49 = vmul.f32 0.5, %v3964_v53  ;;  %v2906_v20 = vld [vmem:[#allocation8] sm:$0xff]  ;;  %v1516_v17 = vmul.f32 0.5, %v3958_v7  ;;  %v1519_v7 = vmul.f32 0.5, %v3974_v62 }
 0x296   : > { %2727 = verf.f32 %v1552_v51  ;;  %v1553_v45 = vmul.f32 0.70710677, %v3984_v25  ;;  %v3988_v8 = vadd.f32 %v1475_v59, %v3437_v56  ;;  %2381 = vmatprep.subr.mxu0 %v2897_v28  ;;  %1758 = vmatprep.mubr.f32.mxu0 %v1639_v60  ;;  %v1609_v19 = vadd.f32 1.0, %v2714_v4 }
 0x297   : > { %v2716_v0 = vpop.eup %2715  ;;  %v1477_v52 = vpop.f32.mrf.mxu1  ;;  %2382 = vmatpush3.msra.mxu0 %v2898_v41  ;;  %v1640_v21 = vmul.f32 %v1608_v54, %v1512_v23  ;;  %v1518_v54 = vmul.f32 0.5, %v3968_v58  ;;  %v1521_v41 = vmul.f32 0.5, %v3984_v25  ;;  %v1520_v62 = vmul.f32 0.5, %v3978_v30 }
 0x298   : > { %2729 = verf.f32 %v1553_v45  ;;  %v1554_v26 = vmul.f32 0.70710677, %v3988_v8  ;;  %v3994_v43 = vadd.f32 %v1477_v52, %v3441_v57  ;;  %1759 = vmatmul.mubr.f32.gmra.mxu0 %v1638_v11  ;;  %2383 = vmatprep.subr.mxu0 %v2899_v27  ;;  %v1641_v46 = vmul.f32 %v1609_v19, %v1513_v10 }
 0x299   : > { %v2718_v47 = vpop.eup %2717  ;;  %v1481_v37 = vpop.f32.mrf.mxu1  ;;  %v1610_v35 = vadd.f32 1.0, %v2716_v0  ;;  %2384 = vmatpush3.msra.mxu0 %v2900_v44 }
 0x29a   : > { %2731 = verf.f32 %v1554_v26  ;;  %v1555_v55 = vmul.f32 0.70710677, %v3994_v43  ;;  %v3998_v32 = vadd.f32 %v1481_v37, %v3437_v56  ;;  %2385 = vmatprep.subr.mxu0 %v2901_v34  ;;  %1764 = vmatprep.mubr.f32.mxu0 %v1641_v46  ;;  %v1611_v42 = vadd.f32 1.0, %v2718_v47 }
 0x29b   : > { %v2720_v16 = vpop.eup %2719  ;;  %v1483_v24 = vpop.f32.mrf.mxu1  ;;  %2386 = vmatpush3.msra.mxu0 %v2902_v61  ;;  %v1642_v15 = vmul.f32 %v1610_v35, %v1514_v13 }
 0x29c   : > { %2733 = verf.f32 %v1555_v55  ;;  %v1556_v14 = vmul.f32 0.70710677, %v3998_v32  ;;  %v4004_v36 = vadd.f32 %v1483_v24, %v3441_v57  ;;  %1765 = vmatmul.mubr.f32.gmra.mxu0 %v1640_v21  ;;  %2387 = vmatprep.subr.mxu0 %v2903_v40  ;;  %v1643_v2 = vmul.f32 %v1611_v42, %v1515_v22 }
 0x29d   : > { %v2722_v50 = vpop.eup %2721  ;;  %v1487_v5 = vpop.f32.mrf.mxu1  ;;  %2388 = vmatpush3.msra.mxu0 %v2904_v1  ;;  %v1612_v63 = vadd.f32 1.0, %v2720_v16  ;;  %v1522_v21 = vmul.f32 0.5, %v3988_v8  ;;  %v1524_v61 = vmul.f32 0.5, %v3998_v32 }
 0x29e   : > { %2735 = verf.f32 %v1556_v14  ;;  %v1557_v3 = vmul.f32 0.70710677, %v4004_v36  ;;  %v4008_v6 = vadd.f32 %v1487_v5, %v3437_v56  ;;  %2389 = vmatprep.subr.mxu0 %v2905_v18  ;;  %1770 = vmatprep.mubr.f32.mxu0 %v1643_v2  ;;  %v1613_v9 = vadd.f32 1.0, %v2722_v50 }
 0x29f   : > { %v2724_v38 = vpop.eup %2723  ;;  %v1489_v31 = vpop.f32.mrf.mxu1  ;;  %2390 = vmatpush3.msra.mxu0 %v2906_v20  ;;  %v1644_v29 = vmul.f32 %v1612_v63, %v1516_v17  ;;  %v1525_v13 = vmul.f32 0.5, %v4004_v36 }
 0x2a0   : > { %2737 = verf.f32 %v1557_v3  ;;  %v1558_v48 = vmul.f32 0.70710677, %v4008_v6  ;;  %v1490_v51 = vadd.f32 %v1489_v31, %v3441_v57  ;;  %1771 = vmatmul.mubr.f32.gmra.mxu0 %v1642_v15  ;;  %v1645_v59 = vmul.f32 %v1613_v9, %v1517_v49 }
 0x2a1   : > { %v2726_v33 = vpop.eup %2725  ;;  %v1493_v4 = vpop.f32.mrf.mxu1  ;;  %v1614_v60 = vadd.f32 1.0, %v2724_v38  ;;  %v1526_v15 = vmul.f32 0.5, %v4008_v6  ;;  %v4028_v6 = vld [vmem:[%s4273_s6] ss:$0 sm:$0xff] }
 0x2a2   : > { %2739 = verf.f32 %v1558_v48  ;;  %v1559_v11 = vmul.f32 0.70710677, %v1490_v51  ;;  %v1494_v53 = vadd.f32 %v1493_v4, %v3437_v56  ;;  %1776 = vmatprep.mubr.f32.mxu0 %v1645_v59  ;;  %v1615_v0 = vadd.f32 1.0, %v2726_v33 }
 0x2a3   : > { %v2728_v45 = vpop.eup %2727  ;;  %v1495_v28 = vpop.f32.mrf.mxu1  ;;  %v1646_v26 = vmul.f32 %v1614_v60, %v1518_v54  ;;  %v1527_v40 = vmul.f32 0.5, %v1490_v51 }
 0x2a4   : > { %2741 = verf.f32 %v1559_v11  ;;  %v1560_v10 = vmul.f32 0.70710677, %v1494_v53  ;;  %v1496_v52 = vadd.f32 %v1495_v28, %v3441_v57  ;;  %1777 = vmatmul.mubr.f32.gmra.mxu0 %v1644_v29  ;;  %v1647_v23 = vmul.f32 %v1615_v0, %v1519_v7 }
 0x2a5   : > { %v2730_v19 = vpop.eup %2729  ;;  %v1616_v47 = vadd.f32 1.0, %v2728_v45  ;;  %v1523_v57 = vmul.f32 0.5, %v3994_v43  ;;  %v1528_v38 = vmul.f32 0.5, %v1494_v53 }
 0x2a6   : > { %2743 = verf.f32 %v1560_v10  ;;  %v1561_v56 = vmul.f32 0.70710677, %v1496_v52  ;;  %v1617_v27 = vadd.f32 1.0, %v2730_v19  ;;  %1782 = vmatprep.mubr.f32.mxu0 %v1647_v23  ;;  %v1529_v3 = vmul.f32 0.5, %v1496_v52 }
 0x2a7   : > { %v2732_v58 = vpop.eup %2731  ;;  %v1648_v35 = vmul.f32 %v1616_v47, %v1520_v62 }
 0x2a8   : > { %2745 = verf.f32 %v1561_v56  ;;  %1783 = vmatmul.mubr.f32.gmra.mxu0 %v1646_v26  ;;  %v1649_v37 = vmul.f32 %v1617_v27, %v1521_v41  ;;  %v1618_v25 = vadd.f32 1.0, %v2732_v58 }
 0x2a9   : > { %v2734_v46 = vpop.eup %2733 }
 0x2aa   : > { %1788 = vmatprep.mubr.f32.mxu0 %v1649_v37  ;;  %v1619_v44 = vadd.f32 1.0, %v2734_v46  ;;  %v1650_v30 = vmul.f32 %v1618_v25, %v1522_v21 }
 0x2ab   : > { %v2736_v55 = vpop.eup %2735 }
 0x2ac   : > { %1789 = vmatmul.mubr.f32.gmra.mxu0 %v1648_v35  ;;  %v1651_v34 = vmul.f32 %v1619_v44, %v1523_v57  ;;  %v1620_v24 = vadd.f32 1.0, %v2736_v55 }
 0x2ad   : > { %v2738_v16 = vpop.eup %2737 }
 0x2ae   : > { %1794 = vmatprep.mubr.f32.mxu0 %v1651_v34  ;;  %v1621_v22 = vadd.f32 1.0, %v2738_v16  ;;  %v1652_v50 = vmul.f32 %v1620_v24, %v1524_v61 }
 0x2af   : > { %v2740_v42 = vpop.eup %2739 }
 0x2b0   : > { %1795 = vmatmul.mubr.f32.gmra.mxu0 %v1650_v30  ;;  %v1653_v43 = vmul.f32 %v1621_v22, %v1525_v13  ;;  %v1622_v8 = vadd.f32 1.0, %v2740_v42 }
 0x2b1   : > { %v2742_v14 = vpop.eup %2741 }
 0x2b2   : > { %1800 = vmatprep.mubr.f32.mxu0 %v1653_v43  ;;  %v1623_v5 = vadd.f32 1.0, %v2742_v14  ;;  %v1654_v63 = vmul.f32 %v1622_v8, %v1526_v15 }
 0x2b3   : > { %v2744_v2 = vpop.eup %2743 }
 0x2b4   : > { %1801 = vmatmul.mubr.f32.gmra.mxu0 %v1652_v50  ;;  %v1655_v36 = vmul.f32 %v1623_v5, %v1527_v40  ;;  %v1624_v32 = vadd.f32 1.0, %v2744_v2 }
 0x2b5   : > { %v2746_v1 = vpop.eup %2745 }
 0x2b6   : > { %1806 = vmatprep.mubr.f32.mxu0 %v1655_v36  ;;  %v1625_v18 = vadd.f32 1.0, %v2746_v1  ;;  %v1656_v31 = vmul.f32 %v1624_v32, %v1528_v38 }
 0x2b8   : > { %1807 = vmatmul.mubr.f32.gmra.mxu0 %v1654_v63  ;;  %v1657_v49 = vmul.f32 %v1625_v18, %v1529_v3 }
 0x2ba   : > { %1812 = vmatprep.mubr.f32.mxu0 %v1657_v49 }
 0x2bc   : > { %1813 = vmatmul.mubr.f32.gmra.mxu0 %v1656_v31 }
 0x2ff   : > { %v2311_v9 = vpop.f32.mrf.mxu0 }
 0x301   : > { %v2312_v20 = vpop.f32.mrf.mxu0 }
 0x302   : > { %v2313_v17 = vadd.f32 %v2312_v20, %v2311_v9 }
 0x303   : > { %v2314_v51 = vpop.f32.mrf.mxu0 }
 0x304   : > { %v1227_v48 = vadd.f32 %v2313_v17, %v4028_v6 }
 0x305   : > { %v2315_v33 = vpop.f32.mrf.mxu0 }
 0x306   : > { %1305 = vst [vmem:[%s4033_s14] sm:$0xff] %v1227_v48  ;;  %v2316_v4 = vadd.f32 %v2315_v33, %v2314_v51 }
 0x307   : > { %v2317_v59 = vpop.f32.mrf.mxu0 }
 0x308   : > { %v1232_v60 = vadd.f32 %v2316_v4, %v4028_v6 }
 0x309   : > { %v2318_v11 = vpop.f32.mrf.mxu0 }
 0x30a   : > { %1306 = vst [vmem:[%s4033_s14 + $0x8] sm:$0xff] %v1232_v60  ;;  %v2319_v53 = vadd.f32 %v2318_v11, %v2317_v59 }
 0x30b   : > { %v2320_v29 = vpop.f32.mrf.mxu0 }
 0x30c   : > { %v1237_v45 = vadd.f32 %v2319_v53, %v4028_v6 }
 0x30d   : > { %v2321_v54 = vpop.f32.mrf.mxu0 }
 0x30e   : > { %1307 = vst [vmem:[%s4033_s14 + $0x10] sm:$0xff] %v1237_v45  ;;  %v2322_v7 = vadd.f32 %v2321_v54, %v2320_v29 }
 0x30f   : > { %v2323_v28 = vpop.f32.mrf.mxu0 }
 0x310   : > { %v1242_v0 = vadd.f32 %v2322_v7, %v4028_v6 }
 0x311   : > { %v2324_v10 = vpop.f32.mrf.mxu0 }
 0x312   : > { %1308 = vst [vmem:[%s4033_s14 + $0x18] sm:$0xff] %v1242_v0  ;;  %v2325_v52 = vadd.f32 %v2324_v10, %v2323_v28 }
 0x313   : > { %v2326_v19 = vpop.f32.mrf.mxu0 }
 0x314   : > { %v1247_v41 = vadd.f32 %v2325_v52, %v4028_v6 }
 0x315   : > { %v2327_v23 = vpop.f32.mrf.mxu0 }
 0x316   : > { %1309 = vst [vmem:[%s4033_s14 + $0x20] sm:$0xff] %v1247_v41  ;;  %v2328_v26 = vadd.f32 %v2327_v23, %v2326_v19 }
 0x317   : > { %v2329_v56 = vpop.f32.mrf.mxu0 }
 0x318   : > { %v1252_v27 = vadd.f32 %v2328_v26, %v4028_v6 }
 0x319   : > { %v2330_v47 = vpop.f32.mrf.mxu0 }
 0x31a   : > { %1310 = vst [vmem:[%s4033_s14 + $0x28] sm:$0xff] %v1252_v27  ;;  %v2331_v58 = vadd.f32 %v2330_v47, %v2329_v56 }
 0x31b   : > { %v2332_v62 = vpop.f32.mrf.mxu0 }
 0x31c   : > { %v1257_v37 = vadd.f32 %v2331_v58, %v4028_v6 }
 0x31d   : > { %v2333_v46 = vpop.f32.mrf.mxu0 }
 0x31e   : > { %1311 = vst [vmem:[%s4033_s14 + $0x30] sm:$0xff] %v1257_v37  ;;  %v2334_v57 = vadd.f32 %v2333_v46, %v2332_v62 }
 0x31f   : > { %v2335_v35 = vpop.f32.mrf.mxu0 }
 0x320   : > { %v1262_v44 = vadd.f32 %v2334_v57, %v4028_v6 }
 0x321   : > { %v2336_v25 = vpop.f32.mrf.mxu0 }
 0x322   : > { %1312 = vst [vmem:[%s4033_s14 + $0x38] sm:$0xff] %v1262_v44  ;;  %v2337_v55 = vadd.f32 %v2336_v25, %v2335_v35 }
 0x323   : > { %v2338_v21 = vpop.f32.mrf.mxu0 }
 0x324   : > { %v1267_v34 = vadd.f32 %v2337_v55, %v4028_v6 }
 0x325   : > { %v2339_v16 = vpop.f32.mrf.mxu0 }
 0x326   : > { %1313 = vst [vmem:[%s4033_s14 + $0x40] sm:$0xff] %v1267_v34  ;;  %v2340_v13 = vadd.f32 %v2339_v16, %v2338_v21 }
 0x327   : > { %v2341_v30 = vpop.f32.mrf.mxu0 }
 0x328   : > { %v1272_v22 = vadd.f32 %v2340_v13, %v4028_v6 }
 0x329   : > { %v2342_v24 = vpop.f32.mrf.mxu0 }
 0x32a   : > { %1314 = vst [vmem:[%s4033_s14 + $0x48] sm:$0xff] %v1272_v22  ;;  %v2343_v42 = vadd.f32 %v2342_v24, %v2341_v30 }
 0x32b   : > { %v2344_v61 = vpop.f32.mrf.mxu0 }
 0x32c   : > { %v1277_v43 = vadd.f32 %v2343_v42, %v4028_v6 }
 0x32d   : > { %v2345_v14 = vpop.f32.mrf.mxu0 }
 0x32e   : > { %1315 = vst [vmem:[%s4033_s14 + $0x50] sm:$0xff] %v1277_v43  ;;  %v2346_v40 = vadd.f32 %v2345_v14, %v2344_v61 }
 0x32f   : > { %v2347_v50 = vpop.f32.mrf.mxu0 }
 0x330   : > { %v1282_v5 = vadd.f32 %v2346_v40, %v4028_v6 }
 0x331   : > { %v2348_v8 = vpop.f32.mrf.mxu0 }
 0x332   : > { %1316 = vst [vmem:[%s4033_s14 + $0x58] sm:$0xff] %v1282_v5  ;;  %v2349_v2 = vadd.f32 %v2348_v8, %v2347_v50 }
 0x333   : > { %v2350_v15 = vpop.f32.mrf.mxu0 }
 0x334   : > { %v1287_v36 = vadd.f32 %v2349_v2, %v4028_v6 }
 0x335   : > { %v2351_v1 = vpop.f32.mrf.mxu0 }
 0x336   : > { %1317 = vst [vmem:[%s4033_s14 + $0x60] sm:$0xff] %v1287_v36  ;;  %v2352_v3 = vadd.f32 %v2351_v1, %v2350_v15 }
 0x337   : > { %v2353_v63 = vpop.f32.mrf.mxu0 }
 0x338   : > { %v1292_v18 = vadd.f32 %v2352_v3, %v4028_v6 }
 0x339   : > { %v2354_v32 = vpop.f32.mrf.mxu0 }
 0x33a   : > { %1318 = vst [vmem:[%s4033_s14 + $0x68] sm:$0xff] %v1292_v18  ;;  %v2355_v38 = vadd.f32 %v2354_v32, %v2353_v63 }
 0x33c   : > { %v2356_v49 = vpop.f32.mrf.mxu0  ;;  %v1297_v31 = vadd.f32 %v2355_v38, %v4028_v6 }
 0x33e   : > { %v2357_v9 = vpop.f32.mrf.mxu0  ;;  %1319 = vst [vmem:[%s4033_s14 + $0x70] sm:$0xff] %v1297_v31 }
 0x33f   : > { %v2358_v20 = vadd.f32 %v2357_v9, %v2356_v49 }
 0x340   : > { %v1724_v17 = vpop.f32.mrf.mxu0 }
 0x341   : > { %v1302_v48 = vadd.f32 %v2358_v20, %v4028_v6  ;;  %v1725_v51 = vadd.f32 %v1724_v17, %v3727_v39 }
 0x342   : > { %v1726_v33 = vpop.f32.mrf.mxu0 }
 0x343   : > { %1320 = vst [vmem:[%s4033_s14 + $0x78] sm:$0xff] %v1302_v48  ;;  %v1851_v4 = vmul.f32 0.70710677, %v1725_v51  ;;  %v1727_v59 = vadd.f32 %v1726_v33, %v3731_v12  ;;  %v1819_v22 = vmul.f32 0.5, %v1725_v51 }
 0x344   : > { %v1730_v60 = vpop.f32.mrf.mxu0 }
 0x345   : > { %2747 = verf.f32 %v1851_v4  ;;  %v1852_v11 = vmul.f32 0.70710677, %v1727_v59  ;;  %v1731_v53 = vadd.f32 %v1730_v60, %v3727_v39  ;;  %v1820_v34 = vmul.f32 0.5, %v1727_v59 }
 0x346   : > { %v1732_v29 = vpop.f32.mrf.mxu0 }
 0x347   : > { %2749 = verf.f32 %v1852_v11  ;;  %v1853_v45 = vmul.f32 0.70710677, %v1731_v53  ;;  %v1733_v54 = vadd.f32 %v1732_v29, %v3731_v12  ;;  %v1821_v18 = vmul.f32 0.5, %v1731_v53 }
 0x348   : > { %v1736_v7 = vpop.f32.mrf.mxu0 }
 0x349   : > { %2751 = verf.f32 %v1853_v45  ;;  %v1854_v28 = vmul.f32 0.70710677, %v1733_v54  ;;  %v1737_v0 = vadd.f32 %v1736_v7, %v3727_v39  ;;  %v1822_v1 = vmul.f32 0.5, %v1733_v54 }
 0x34a   : > { %v1738_v10 = vpop.f32.mrf.mxu0 }
 0x34b   : > { %2753 = verf.f32 %v1854_v28  ;;  %v1855_v52 = vmul.f32 0.70710677, %v1737_v0  ;;  %v1739_v19 = vadd.f32 %v1738_v10, %v3731_v12  ;;  %v1823_v4 = vmul.f32 0.5, %v1737_v0 }
 0x34c   : > { %v1742_v41 = vpop.f32.mrf.mxu0 }
 0x34d   : > { %2755 = verf.f32 %v1855_v52  ;;  %v1856_v23 = vmul.f32 0.70710677, %v1739_v19  ;;  %v4073_v26 = vadd.f32 %v1742_v41, %v3727_v39  ;;  %v1824_v59 = vmul.f32 0.5, %v1739_v19 }
 0x34e   : > { %v1744_v56 = vpop.f32.mrf.mxu0 }
 0x34f   : > { %2757 = verf.f32 %v1856_v23  ;;  %v1857_v27 = vmul.f32 0.70710677, %v4073_v26  ;;  %v4077_v47 = vadd.f32 %v1744_v56, %v3731_v12 }
 0x350   : > { %v1748_v58 = vpop.f32.mrf.mxu0 }
 0x351   : > { %2759 = verf.f32 %v1857_v27  ;;  %v1858_v62 = vmul.f32 0.70710677, %v4077_v47  ;;  %v4081_v37 = vadd.f32 %v1748_v58, %v3727_v39  ;;  %v1826_v41 = vmul.f32 0.5, %v4077_v47 }
 0x352   : > { %v2748_v46 = vpop.eup %2747  ;;  %v1750_v57 = vpop.f32.mrf.mxu0  ;;  %v1825_v27 = vmul.f32 0.5, %v4073_v26 }
 0x353   : > { %2761 = verf.f32 %v1858_v62  ;;  %v1859_v35 = vmul.f32 0.70710677, %v4081_v37  ;;  %v1915_v25 = vadd.f32 1.0, %v2748_v46  ;;  %v4085_v55 = vadd.f32 %v1750_v57, %v3731_v12 }
 0x354   : > { %v2750_v44 = vpop.eup %2749  ;;  %v1754_v21 = vpop.f32.mrf.mxu0 }
 0x355   : > { %2763 = verf.f32 %v1859_v35  ;;  %v4088_v16 = vadd.f32 %v1754_v21, %v3727_v39  ;;  %v1916_v13 = vadd.f32 1.0, %v2750_v44  ;;  %v1860_v24 = vmul.f32 0.70710677, %v4085_v55 }
 0x356   : > { %v2752_v30 = vpop.eup %2751  ;;  %v1756_v42 = vpop.f32.mrf.mxu0  ;;  %v1947_v50 = vmul.f32 %v1915_v25, %v1819_v22  ;;  %v1828_v26 = vmul.f32 0.5, %v4085_v55 }
 0x357   : > { %v1861_v61 = vmul.f32 0.70710677, %v4088_v16  ;;  %v4093_v43 = vadd.f32 %v1756_v42, %v3731_v12  ;;  %v1948_v14 = vmul.f32 %v1916_v13, %v1820_v34  ;;  %2765 = verf.f32 %v1860_v24 }
 0x358   : > { %v2754_v40 = vpop.eup %2753  ;;  %v1760_v5 = vpop.f32.mrf.mxu0  ;;  %v1917_v15 = vadd.f32 1.0, %v2752_v30  ;;  %v1827_v34 = vmul.f32 0.5, %v4081_v37 }
 0x359   : > { %2767 = verf.f32 %v1861_v61  ;;  %v1862_v8 = vmul.f32 0.70710677, %v4093_v43  ;;  %v4097_v2 = vadd.f32 %v1760_v5, %v3727_v39  ;;  %2043 = vmatprep.mubr.f32.mxu0 %v1948_v14  ;;  %v1918_v63 = vadd.f32 1.0, %v2754_v40 }
 0x35a   : > { %v2756_v36 = vpop.eup %2755  ;;  %v1762_v3 = vpop.f32.mrf.mxu0  ;;  %2044 = vmatmul.mubr.f32.vlgmr.msra.gmra.mxu0 %v1947_v50  ;;  %v1949_v51 = vmul.f32 %v1917_v15, %v1821_v18  ;;  %v1830_v15 = vmul.f32 0.5, %v4093_v43 }
 0x35b   : > { %2769 = verf.f32 %v1862_v8  ;;  %v1863_v32 = vmul.f32 0.70710677, %v4097_v2  ;;  %v4101_v38 = vadd.f32 %v1762_v3, %v3731_v12  ;;  %v1950_v9 = vmul.f32 %v1918_v63, %v1822_v1 }
 0x35c   : > { %v2758_v49 = vpop.eup %2757  ;;  %v1766_v31 = vpop.f32.mrf.mxu0  ;;  %v1919_v20 = vadd.f32 1.0, %v2756_v36  ;;  %v1829_v3 = vmul.f32 0.5, %v4088_v16  ;;  %v1831_v16 = vmul.f32 0.5, %v4097_v2 }
 0x35d   : > { %2771 = verf.f32 %v1863_v32  ;;  %v1864_v17 = vmul.f32 0.70710677, %v4101_v38  ;;  %v4105_v48 = vadd.f32 %v1766_v31, %v3727_v39  ;;  %2048 = vmatprep.mubr.f32.mxu0 %v1950_v9  ;;  %v1920_v11 = vadd.f32 1.0, %v2758_v49 }
 0x35e   : > { %v2760_v33 = vpop.eup %2759  ;;  %v1768_v60 = vpop.f32.mrf.mxu0  ;;  %2049 = vmatmul.mubr.f32.gmra.mxu0 %v1949_v51  ;;  %v1951_v28 = vmul.f32 %v1919_v20, %v1823_v4 }
 0x35f   : > { %2773 = verf.f32 %v1864_v17  ;;  %v1865_v53 = vmul.f32 0.70710677, %v4105_v48  ;;  %v4109_v29 = vadd.f32 %v1768_v60, %v3731_v12  ;;  %v1952_v7 = vmul.f32 %v1920_v11, %v1824_v59 }
 0x360   : > { %v2762_v45 = vpop.eup %2761  ;;  %v1772_v54 = vpop.f32.mrf.mxu0  ;;  %v1921_v52 = vadd.f32 1.0, %v2760_v33  ;;  %v1832_v33 = vmul.f32 0.5, %v4101_v38 }
 0x361   : > { %2775 = verf.f32 %v1865_v53  ;;  %v1866_v10 = vmul.f32 0.70710677, %v4109_v29  ;;  %v4113_v0 = vadd.f32 %v1772_v54, %v3727_v39  ;;  %2053 = vmatprep.mubr.f32.mxu0 %v1952_v7  ;;  %v1922_v56 = vadd.f32 1.0, %v2762_v45 }
 0x362   : > { %v2764_v19 = vpop.eup %2763  ;;  %v1774_v23 = vpop.f32.mrf.mxu0  ;;  %2054 = vmatmul.mubr.f32.gmra.mxu0 %v1951_v28  ;;  %v1953_v47 = vmul.f32 %v1921_v52, %v1825_v27  ;;  %v1834_v52 = vmul.f32 0.5, %v4109_v29 }
 0x363   : > { %2777 = verf.f32 %v1866_v10  ;;  %v1867_v58 = vmul.f32 0.70710677, %v4113_v0  ;;  %v1923_v62 = vadd.f32 1.0, %v2764_v19  ;;  %v4119_v46 = vadd.f32 %v1774_v23, %v3731_v12 }
 0x364   : > { %v1778_v57 = vpop.f32.mrf.mxu0  ;;  %v1954_v35 = vmul.f32 %v1922_v56, %v1826_v41  ;;  %v2766_v44 = vpop.eup %2765  ;;  %v1833_v23 = vmul.f32 0.5, %v4105_v48  ;;  %v1835_v48 = vmul.f32 0.5, %v4113_v0 }
 0x365   : > { %2779 = verf.f32 %v1867_v58  ;;  %v4122_v25 = vadd.f32 %v1778_v57, %v3727_v39  ;;  %v1868_v13 = vmul.f32 0.70710677, %v4119_v46  ;;  %v1924_v22 = vadd.f32 1.0, %v2766_v44 }
 0x366   : > { %v2768_v21 = vpop.eup %2767  ;;  %2058 = vmatprep.mubr.f32.mxu0 %v1954_v35  ;;  %v1780_v30 = vpop.f32.mrf.mxu0  ;;  %v1955_v14 = vmul.f32 %v1923_v62, %v1827_v34  ;;  %v1836_v34 = vmul.f32 0.5, %v4119_v46 }
 0x367   : > { %v1869_v24 = vmul.f32 0.70710677, %v4122_v25  ;;  %v4129_v42 = vadd.f32 %v1780_v30, %v3731_v12  ;;  %2059 = vmatmul.mubr.f32.gmra.mxu0 %v1953_v47  ;;  %2781 = verf.f32 %v1868_v13  ;;  %v1956_v50 = vmul.f32 %v1924_v22, %v1828_v26 }
 0x368   : > { %v2770_v61 = vpop.eup %2769  ;;  %v1784_v40 = vpop.f32.mrf.mxu0  ;;  %v1925_v5 = vadd.f32 1.0, %v2768_v21 }
 0x369   : > { %2783 = verf.f32 %v1869_v24  ;;  %v1870_v37 = vmul.f32 0.70710677, %v4129_v42  ;;  %v4133_v55 = vadd.f32 %v1784_v40, %v3727_v39  ;;  %2063 = vmatprep.mubr.f32.mxu1 %v1956_v50  ;;  %v1926_v1 = vadd.f32 1.0, %v2770_v61 }
 0x36a   : > { %v2772_v8 = vpop.eup %2771  ;;  %v1786_v36 = vpop.f32.mrf.mxu0  ;;  %2064 = vmatmul.mubr.f32.vlgmr.msra.gmra.mxu1 %v1955_v14  ;;  %v1957_v17 = vmul.f32 %v1925_v5, %v1829_v3  ;;  %v1838_v5 = vmul.f32 0.5, %v4129_v42 }
 0x36b   : > { %2785 = verf.f32 %v1870_v37  ;;  %v1871_v63 = vmul.f32 0.70710677, %v4133_v55  ;;  %v4139_v18 = vadd.f32 %v1786_v36, %v3731_v12  ;;  %v1958_v31 = vmul.f32 %v1926_v1, %v1830_v15 }
 0x36c   : > { %v2774_v32 = vpop.eup %2773  ;;  %v1790_v49 = vpop.f32.mrf.mxu0  ;;  %v1927_v9 = vadd.f32 1.0, %v2772_v8  ;;  %v1837_v36 = vmul.f32 0.5, %v4122_v25 }
 0x36d   : > { %2787 = verf.f32 %v1871_v63  ;;  %v1872_v20 = vmul.f32 0.70710677, %v4139_v18  ;;  %v4143_v43 = vadd.f32 %v1790_v49, %v3727_v39  ;;  %2068 = vmatprep.mubr.f32.mxu1 %v1958_v31  ;;  %v1928_v59 = vadd.f32 1.0, %v2774_v32 }
 0x36e   : > { %v2776_v51 = vpop.eup %2775  ;;  %v1792_v4 = vpop.f32.mrf.mxu0  ;;  %2069 = vmatmul.mubr.f32.gmra.mxu1 %v1957_v17  ;;  %v1959_v7 = vmul.f32 %v1927_v9, %v1831_v16  ;;  %v1840_v25 = vmul.f32 0.5, %v4139_v18 }
 0x36f   : > { %2789 = verf.f32 %v1872_v20  ;;  %v1873_v60 = vmul.f32 0.70710677, %v4143_v43  ;;  %v4149_v11 = vadd.f32 %v1792_v4, %v3731_v12  ;;  %v1960_v54 = vmul.f32 %v1928_v59, %v1832_v33 }
 0x370   : > { %v2778_v53 = vpop.eup %2777  ;;  %v1796_v45 = vpop.f32.mrf.mxu0  ;;  %v1929_v38 = vadd.f32 1.0, %v2776_v51  ;;  %v1839_v51 = vmul.f32 0.5, %v4133_v55  ;;  %v1841_v18 = vmul.f32 0.5, %v4143_v43 }
 0x371   : > { %2791 = verf.f32 %v1873_v60  ;;  %v1874_v28 = vmul.f32 0.70710677, %v4149_v11  ;;  %v4153_v2 = vadd.f32 %v1796_v45, %v3727_v39  ;;  %2073 = vmatprep.mubr.f32.mxu1 %v1960_v54  ;;  %v1930_v41 = vadd.f32 1.0, %v2778_v53 }
 0x372   : > { %v2780_v10 = vpop.eup %2779  ;;  %v1798_v19 = vpop.f32.mrf.mxu0  ;;  %2074 = vmatmul.mubr.f32.gmra.mxu1 %v1959_v7  ;;  %v1961_v47 = vmul.f32 %v1929_v38, %v1833_v23  ;;  %v1842_v53 = vmul.f32 0.5, %v4149_v11 }
 0x373   : > { %2793 = verf.f32 %v1874_v28  ;;  %v1875_v56 = vmul.f32 0.70710677, %v4153_v2  ;;  %v4159_v27 = vadd.f32 %v1798_v19, %v3731_v12  ;;  %v1962_v62 = vmul.f32 %v1930_v41, %v1834_v52 }
 0x374   : > { %v1802_v58 = vpop.f32.mrf.mxu0  ;;  %v1931_v57 = vadd.f32 1.0, %v2780_v10  ;;  %v2782_v35 = vpop.eup %2781  ;;  %v1843_v23 = vmul.f32 0.5, %v4153_v2 }
 0x375   : > { %2795 = verf.f32 %v1875_v56  ;;  %v1876_v44 = vmul.f32 0.70710677, %v4159_v27  ;;  %v4163_v29 = vadd.f32 %v1802_v58, %v3727_v39  ;;  %2078 = vmatprep.mubr.f32.mxu1 %v1962_v62  ;;  %v1932_v13 = vadd.f32 1.0, %v2782_v35 }
 0x376   : > { %v2784_v21 = vpop.eup %2783  ;;  %v1804_v26 = vpop.f32.mrf.mxu0  ;;  %2079 = vmatmul.mubr.f32.gmra.mxu1 %v1961_v47  ;;  %v1963_v40 = vmul.f32 %v1931_v57, %v1835_v48 }
 0x377   : > { %2797 = verf.f32 %v1876_v44  ;;  %v1877_v30 = vmul.f32 0.70710677, %v4163_v29  ;;  %v1805_v22 = vadd.f32 %v1804_v26, %v3731_v12  ;;  %v1964_v14 = vmul.f32 %v1932_v13, %v1836_v34 }
 0x378   : > { %v2786_v24 = vpop.eup %2785  ;;  %v1808_v61 = vpop.f32.mrf.mxu0  ;;  %v1933_v0 = vadd.f32 1.0, %v2784_v21  ;;  %v1845_v47 = vmul.f32 0.5, %v4163_v29 }
 0x379   : > { %2799 = verf.f32 %v1877_v30  ;;  %v1878_v50 = vmul.f32 0.70710677, %v1805_v22  ;;  %v4170_v37 = vadd.f32 %v1808_v61, %v3727_v39  ;;  %2083 = vmatprep.mubr.f32.mxu1 %v1964_v14  ;;  %v1934_v15 = vadd.f32 1.0, %v2786_v24 }
 0x37a   : > { %v2788_v46 = vpop.eup %2787  ;;  %v1810_v8 = vpop.f32.mrf.mxu0  ;;  %2084 = vmatmul.mubr.f32.gmra.mxu1 %v1963_v40  ;;  %v1965_v42 = vmul.f32 %v1933_v0, %v1837_v36  ;;  %v1846_v62 = vmul.f32 0.5, %v1805_v22 }
 0x37b   : > { %2801 = verf.f32 %v1878_v50  ;;  %v1879_v1 = vmul.f32 0.70710677, %v4170_v37  ;;  %v1811_v3 = vadd.f32 %v1810_v8, %v3731_v12  ;;  %v1966_v49 = vmul.f32 %v1934_v15, %v1838_v5 }
 0x37c   : > { %v2790_v63 = vpop.eup %2789  ;;  %v1814_v32 = vpop.f32.mrf.mxu0  ;;  %v1935_v31 = vadd.f32 1.0, %v2788_v46  ;;  %v1847_v30 = vmul.f32 0.5, %v4170_v37 }
 0x37d   : > { %2803 = verf.f32 %v1879_v1  ;;  %v1880_v9 = vmul.f32 0.70710677, %v1811_v3  ;;  %v1815_v20 = vadd.f32 %v1814_v32, %v3727_v39  ;;  %2088 = vmatprep.mubr.f32.mxu1 %v1966_v49  ;;  %v1936_v33 = vadd.f32 1.0, %v2790_v63 }
 0x37e   : > { %v2792_v17 = vpop.eup %2791  ;;  %v1816_v16 = vpop.f32.mrf.mxu0  ;;  %2089 = vmatmul.mubr.f32.gmra.mxu1 %v1965_v42  ;;  %v1967_v54 = vmul.f32 %v1935_v31, %v1839_v51  ;;  %v1848_v48 = vmul.f32 0.5, %v1811_v3 }
 0x37f   : > { %2805 = verf.f32 %v1880_v9  ;;  %v1881_v4 = vmul.f32 0.70710677, %v1815_v20  ;;  %v1817_v59 = vadd.f32 %v1816_v16, %v3731_v12  ;;  %v1968_v45 = vmul.f32 %v1936_v33, %v1840_v25 }
 0x380   : > { %v2794_v60 = vpop.eup %2793  ;;  %v1937_v28 = vadd.f32 1.0, %v2792_v17  ;;  %v1844_v12 = vmul.f32 0.5, %v4159_v27  ;;  %v1849_v50 = vmul.f32 0.5, %v1815_v20 }
 0x381   : > { %2807 = verf.f32 %v1881_v4  ;;  %v1882_v39 = vmul.f32 0.70710677, %v1817_v59  ;;  %v1938_v7 = vadd.f32 1.0, %v2794_v60  ;;  %2093 = vmatprep.mubr.f32.mxu1 %v1968_v45  ;;  %v1850_v61 = vmul.f32 0.5, %v1817_v59 }
 0x382   : > { %v2796_v55 = vpop.eup %2795  ;;  %2094 = vmatmul.mubr.f32.gmra.mxu1 %v1967_v54  ;;  %v1969_v52 = vmul.f32 %v1937_v28, %v1841_v18 }
 0x383   : > { %2809 = verf.f32 %v1882_v39  ;;  %v1970_v38 = vmul.f32 %v1938_v7, %v1842_v53  ;;  %v1939_v11 = vadd.f32 1.0, %v2796_v55 }
 0x384   : > { %v2798_v10 = vpop.eup %2797 }
 0x385   : > { %2098 = vmatprep.mubr.f32.mxu1 %v1970_v38  ;;  %v1940_v19 = vadd.f32 1.0, %v2798_v10  ;;  %v1971_v57 = vmul.f32 %v1939_v11, %v1843_v23 }
 0x386   : > { %v2800_v41 = vpop.eup %2799  ;;  %2099 = vmatmul.mubr.f32.gmra.mxu1 %v1969_v52 }
 0x387   : > { %v1972_v56 = vmul.f32 %v1940_v19, %v1844_v12  ;;  %v1941_v35 = vadd.f32 1.0, %v2800_v41 }
 0x388   : > { %v2802_v58 = vpop.eup %2801 }
 0x389   : > { %2103 = vmatprep.mubr.f32.mxu1 %v1972_v56  ;;  %v1942_v43 = vadd.f32 1.0, %v2802_v58  ;;  %v1973_v34 = vmul.f32 %v1941_v35, %v1845_v47 }
 0x38a   : > { %v2804_v44 = vpop.eup %2803  ;;  %2104 = vmatmul.mubr.f32.gmra.mxu1 %v1971_v57 }
 0x38b   : > { %v1974_v27 = vmul.f32 %v1942_v43, %v1846_v62  ;;  %v1943_v13 = vadd.f32 1.0, %v2804_v44 }
 0x38c   : > { %v2806_v21 = vpop.eup %2805 }
 0x38d   : > { %2108 = vmatprep.mubr.f32.mxu1 %v1974_v27  ;;  %v1944_v26 = vadd.f32 1.0, %v2806_v21  ;;  %v1975_v14 = vmul.f32 %v1943_v13, %v1847_v30 }
 0x38e   : > { %v2808_v2 = vpop.eup %2807  ;;  %2109 = vmatmul.mubr.f32.gmra.mxu1 %v1973_v34 }
 0x38f   : > { %v1976_v22 = vmul.f32 %v1944_v26, %v1848_v48  ;;  %v1945_v29 = vadd.f32 1.0, %v2808_v2 }
 0x390   : > { %v2810_v24 = vpop.eup %2809 }
 0x391   : > { %2113 = vmatprep.mubr.f32.mxu1 %v1976_v22  ;;  %v1946_v40 = vadd.f32 1.0, %v2810_v24  ;;  %v1977_v46 = vmul.f32 %v1945_v29, %v1849_v50 }
 0x392   : > { %2114 = vmatmul.mubr.f32.gmra.mxu1 %v1975_v14 }
 0x393   : > { %v1978_v0 = vmul.f32 %v1946_v40, %v1850_v61 }
 0x395   : > { %2118 = vmatprep.mubr.f32.mxu1 %v1978_v0 }
 0x396   : > { %2119 = vmatmul.mubr.f32.gmra.mxu1 %v1977_v46 }
 0x41a   : > { %v2391_v5 = vpop.f32.mrf.mxu0 }
 0x41c   : > { %v2392_v8 = vpop.f32.mrf.mxu0 }
 0x41d   : > { %v2393_v37 = vadd.f32 %v2392_v8, %v2391_v5 }
 0x41e   : > { %v2394_v36 = vpop.f32.mrf.mxu0 }
 0x41f   : > { %v2046_v15 = vadd.f32 %v2393_v37, %v4028_v6 }
 0x420   : > { %v2395_v1 = vpop.f32.mrf.mxu0 }
 0x421   : > { %2124 = vst [vmem:[%s4033_s14 + $0x80] sm:$0xff] %v2046_v15  ;;  %v2396_v3 = vadd.f32 %v2395_v1, %v2394_v36 }
 0x422   : > { %v2397_v63 = vpop.f32.mrf.mxu0 }
 0x423   : > { %v2051_v32 = vadd.f32 %v2396_v3, %v4028_v6 }
 0x424   : > { %v2398_v49 = vpop.f32.mrf.mxu0 }
 0x425   : > { %2125 = vst [vmem:[%s4033_s14 + $0x88] sm:$0xff] %v2051_v32  ;;  %v2399_v31 = vadd.f32 %v2398_v49, %v2397_v63 }
 0x427   : > { %v2400_v9 = vpop.f32.mrf.mxu0  ;;  %v2056_v20 = vadd.f32 %v2399_v31, %v4028_v6 }
 0x429   : > { %v2401_v42 = vpop.f32.mrf.mxu0  ;;  %2126 = vst [vmem:[%s4033_s14 + $0x90] sm:$0xff] %v2056_v20 }
 0x42a   : > { %v2402_v17 = vadd.f32 %v2401_v42, %v2400_v9  ;;  %v2403_v51 = vpop.f32.mrf.mxu1 }
 0x42c   : > { %v2061_v25 = vadd.f32 %v2402_v17, %v4028_v6  ;;  %v2404_v16 = vpop.f32.mrf.mxu1 }
 0x42d   : > { %v2405_v33 = vadd.f32 %v2404_v16, %v2403_v51 }
 0x42e   : > { %2127 = vst [vmem:[%s4033_s14 + $0x98] sm:$0xff] %v2061_v25  ;;  %v2406_v4 = vpop.f32.mrf.mxu1 }
 0x42f   : > { %v2066_v59 = vadd.f32 %v2405_v33, %v4028_v6 }
 0x430   : > { %v2407_v60 = vpop.f32.mrf.mxu1 }
 0x431   : > { %2128 = vst [vmem:[%s4033_s14 + $0xa0] sm:$0xff] %v2066_v59  ;;  %v2408_v53 = vadd.f32 %v2407_v60, %v2406_v4 }
 0x432   : > { %v2409_v45 = vpop.f32.mrf.mxu1 }
 0x433   : > { %v2071_v54 = vadd.f32 %v2408_v53, %v4028_v6 }
 0x434   : > { %v2410_v39 = vpop.f32.mrf.mxu1 }
 0x435   : > { %2129 = vst [vmem:[%s4033_s14 + $0xa8] sm:$0xff] %v2071_v54  ;;  %v2411_v7 = vadd.f32 %v2410_v39, %v2409_v45 }
 0x436   : > { %v2412_v28 = vpop.f32.mrf.mxu1 }
 0x437   : > { %v2076_v55 = vadd.f32 %v2411_v7, %v4028_v6 }
 0x438   : > { %v2413_v18 = vpop.f32.mrf.mxu1 }
 0x439   : > { %2130 = vst [vmem:[%s4033_s14 + $0xb0] sm:$0xff] %v2076_v55  ;;  %v2414_v38 = vadd.f32 %v2413_v18, %v2412_v28 }
 0x43a   : > { %v2415_v10 = vpop.f32.mrf.mxu1 }
 0x43b   : > { %v2081_v12 = vadd.f32 %v2414_v38, %v4028_v6 }
 0x43c   : > { %v2416_v52 = vpop.f32.mrf.mxu1 }
 0x43d   : > { %2131 = vst [vmem:[%s4033_s14 + $0xb8] sm:$0xff] %v2081_v12  ;;  %v2417_v19 = vadd.f32 %v2416_v52, %v2415_v10 }
 0x43e   : > { %v2418_v11 = vpop.f32.mrf.mxu1 }
 0x43f   : > { %v2086_v41 = vadd.f32 %v2417_v19, %v4028_v6 }
 0x440   : > { %v2419_v23 = vpop.f32.mrf.mxu1 }
 0x441   : > { %2132 = vst [vmem:[%s4033_s14 + $0xc0] sm:$0xff] %v2086_v41  ;;  %v2420_v56 = vadd.f32 %v2419_v23, %v2418_v11 }
 0x442   : > { %v2421_v58 = vpop.f32.mrf.mxu1 }
 0x443   : > { %v2091_v62 = vadd.f32 %v2420_v56, %v4028_v6 }
 0x444   : > { %v2422_v57 = vpop.f32.mrf.mxu1 }
 0x445   : > { %2133 = vst [vmem:[%s4033_s14 + $0xc8] sm:$0xff] %v2091_v62  ;;  %v2423_v43 = vadd.f32 %v2422_v57, %v2421_v58 }
 0x446   : > { %v2424_v35 = vpop.f32.mrf.mxu1 }
 0x447   : > { %v2096_v44 = vadd.f32 %v2423_v43, %v4028_v6 }
 0x448   : > { %v2425_v47 = vpop.f32.mrf.mxu1 }
 0x449   : > { %2134 = vst [vmem:[%s4033_s14 + $0xd0] sm:$0xff] %v2096_v44  ;;  %v2426_v27 = vadd.f32 %v2425_v47, %v2424_v35 }
 0x44a   : > { %v2427_v21 = vpop.f32.mrf.mxu1 }
 0x44b   : > { %v2101_v48 = vadd.f32 %v2426_v27, %v4028_v6 }
 0x44c   : > { %v2428_v34 = vpop.f32.mrf.mxu1 }
 0x44d   : > { %2135 = vst [vmem:[%s4033_s14 + $0xd8] sm:$0xff] %v2101_v48  ;;  %v2429_v26 = vadd.f32 %v2428_v34, %v2427_v21 }
 0x44e   : > { %v2430_v13 = vpop.f32.mrf.mxu1 }
 0x44f   : > { %v2106_v2 = vadd.f32 %v2429_v26, %v4028_v6 }
 0x450   : > { %v2431_v30 = vpop.f32.mrf.mxu1 }
 0x451   : > { %2136 = vst [vmem:[%s4033_s14 + $0xe0] sm:$0xff] %v2106_v2  ;;  %v2432_v22 = vadd.f32 %v2431_v30, %v2430_v13 }
 0x452   : > { %v2433_v24 = vpop.f32.mrf.mxu1 }
 0x453   : > { %v2111_v61 = vadd.f32 %v2432_v22, %v4028_v6 }
 0x454   : > { %v2434_v14 = vpop.f32.mrf.mxu1 }
 0x455   : > { %2137 = vst [vmem:[%s4033_s14 + $0xe8] sm:$0xff] %v2111_v61  ;;  %v2435_v40 = vadd.f32 %v2434_v14, %v2433_v24 }
 0x456   : > { %v2436_v29 = vpop.f32.mrf.mxu1 }
 0x457   : > { %v2116_v50 = vadd.f32 %v2435_v40, %v4028_v6 }
 0x458   : > { %v2437_v0 = vpop.f32.mrf.mxu1 }
 0x459   : > { %2138 = vst [vmem:[%s4033_s14 + $0xf0] sm:$0xff] %v2116_v50  ;;  %v2438_v46 = vadd.f32 %v2437_v0, %v2436_v29 }
 0x45b   : > { %v2121_v5 = vadd.f32 %v2438_v46, %v4028_v6 }
 0x45d   : > { %2139 = vst [vmem:[%s4033_s14 + $0xf8] sm:$0xff] %v2121_v5 }
 0x45e   : > { %3026 = shalt.err (!%p3023_p9)
}
 0x45f   : > { %s3027_s10 = scalar_lea.hbm %s4221_s1, 4096  ;;  %s3031_s29 = scalar_lea.hbm %s4274_s7, 16384 }
 0x460   : > { %p3028_p1 = scmp.ne.s32.totalorder %s4221_s1, %s3027_s10  ;;  %p3032_p10 = scmp.lt.s32.totalorder %s4221_s1, %s4274_s7 }
 0x461   : > { %p3033_p12 = scmp.lt.s32.totalorder %s3031_s29, %s3027_s10 }
 0x462   : > { %p3029_p8 = pnand %p3028_p1, %p4309_p6 }
 0x463   : > { %p3034_p2 = por %p3033_p12, %p3032_p10 }
 0x464   : > { %p3030_p5 = pneg %p3029_p8 }
 0x466   : > { %p3035_p4 = pnand %p3034_p2, %p3030_p5 }
 0x468   : > { %3038 = shalt.err (!%p3035_p4)
}
 0x469   : > { %s3097_s11 = smov 128   ;;  %s3098_s23 = smov 8  }
 0x46a   : > { %2485 = dma.vmem_to_hbm [thread:$0]  (%p4309_p6), %s4223_s22, 4096, %s4221_s1, %s2141_s16, %s3097_s11, %s3097_s11, %s3098_s23  }
 0x46b PF: > { %p2512_p11 = scmp.ge.s32.totalorder %s3085_s27, 2  ;;  %s2169_s18 = sand.u32 1, %s3073_s24  }
 0x46c   : > { %p4310_p13 = scmp.ne.s32.totalorder %s4289_s8, 0  ;;  %s2170_s28 = scalar_lea.sflag [#allocation4], %s2169_s18 }
 0x46e   : > { %p2502_p3 = pnand %p2512_p11, %p4310_p13 }
 0x470   : > { %p2503_p0 = pneg %p2502_p3 }
 0x472   : > { %3068 = dma.done.wait (%p2503_p0), %s2170_s28, 4096  }
 0x473   : > { %3070 = vsyncadd (%p2503_p0), %s2170_s28, 4294963200  ;;  %p22_p7 = scmp.ge.s32.totalorder %s3221_s17, 6   ;;  %s4311_s24 = smov %s3077_s25 }
 0x474   : > { %s4312_s25 = smov %s3081_s26  ;;  %s4313_s26 = smov %s3231_s20 }
 0x475   : > { %s4314_s27 = smov %s3221_s17  ;;  %24 = sbr.rel (!%p22_p7) target bundleno = 9 (0x9), region = 105 }
 0x47a   :  { %2175 = vsyncpa [#allocation3], 1 }
 0x47b   :  { %2177 = vsyncpa [#allocation3 + $0x1], 1 }
 0x47c   :  { %2178 = vsyncpa [#allocation6], 1 }
 0x47d   :  { %2179 = vsyncpa [#allocation9], 1 }
 0x47e   :  { %2180 = vsyncpa [#allocation4], 1 }
 0x47f   :  { %2182 = vsyncpa [#allocation4 + $0x1], 1 }

</bundles_post_ra>
